<compile_context>
chip_gen: v7x
topology: tpu7x:2x2x1
jax: 0.10.0
libtpu: 0.0.40
codegen_flags: <defaults>
</compile_context>

<pallas_src>
import functools
import math

import jax
import jax.numpy as jnp
from jax.experimental import pallas as pl
from jax.experimental.pallas import tpu as pltpu


# ------------------------------- tiling utils -------------------------------

_TM = 512   # matmul row tile (sublanes)
_TN = 512   # matmul output-column tile (lanes)
_TK = 512   # matmul reduction tile


def _round_up(x, m):
    return ((x + m - 1) // m) * m


def _pick_tile(dim, max_tile, align):
    """Largest divisor of `dim` that is <= max_tile and a multiple of `align`.

    Falls back to the full dim (single block, always legal) if none exists.
    """
    best = None
    for t in range(align, min(dim, max_tile) + 1, align):
        if dim % t == 0:
            best = t
    return dim if best is None else best


def _seq_pad(s):
    # pad short sequences to 16 (bf16 sublane packing); long ones to 128 so
    # the KV axis can be tiled with 128-aligned flash tiles.
    return _round_up(s, 16) if s <= 256 else _round_up(s, 128)


# ----------------------------- Pallas kernels ------------------------------

def _matmul_kernel(*refs, relu, has_residual):
    # Tiled o = x @ w + b [+ residual] with K accumulated in VMEM f32 scratch.
    if has_residual:
        x_ref, w_ref, b_ref, r_ref, o_ref, acc_ref = refs
    else:
        x_ref, w_ref, b_ref, o_ref, acc_ref = refs
        r_ref = None

    @pl.when(pl.program_id(2) == 0)
    def _():
        acc_ref[...] = jnp.zeros_like(acc_ref)

    acc_ref[...] += jnp.dot(x_ref[...], w_ref[...],
                            preferred_element_type=jnp.float32)

    @pl.when(pl.program_id(2) == pl.num_programs(2) - 1)
    def _():
        r = acc_ref[...] + b_ref[...]
        if relu:
            r = jnp.maximum(r, 0.0)
        if has_residual:
            r = r + r_ref[...]
        o_ref[...] = r.astype(o_ref.dtype)


def _layernorm_kernel(x_ref, g_ref, b_ref, o_ref):
    x = x_ref[...]
    mu = jnp.mean(x, axis=-1, keepdims=True)
    var = jnp.mean(jnp.square(x - mu), axis=-1, keepdims=True)
    o_ref[...] = ((x - mu) * jax.lax.rsqrt(var + 1e-5) * g_ref[...]
                  + b_ref[...]).astype(o_ref.dtype)


def _flash_attn_kernel(q_ref, kv_ref, msk_ref, o_ref, acc_ref, m_sc, l_sc,
                       *, heads):
    # q_ref: (1, tq, D) bf16; kv_ref: (1, tk, 2D) bf16 (K | V packed);
    # msk_ref: (1, 1|tq, tk) f32; o_ref: (1, tq, D) bf16.
    # Heads stay packed along lanes; online softmax over the Sk grid axis.
    ki = pl.program_id(2)
    D = o_ref.shape[-1]
    dh = D // heads

    @pl.when(ki == 0)
    def _():
        m_sc[...] = jnp.full(m_sc.shape, -jnp.inf, jnp.float32)
        l_sc[...] = jnp.zeros_like(l_sc)
        acc_ref[...] = jnp.zeros_like(acc_ref)

    # additive mask bias computed once per (qi, ki) step, shared across heads;
    # (1, tk) padding masks broadcast over the tq query rows in-register.
    bias = jnp.where(msk_ref[0] > 0, 0.0, -1e9).astype(jnp.float32)

    q = q_ref[0]
    kv = kv_ref[0]
    for h in range(heads):                       # static unroll, H is small
        lo, hi = h * dh, (h + 1) * dh
        qh = q[:, lo:hi]                         # 1/sqrt(dh) folded into Wq
        kh = kv[:, lo:hi]
        vh = kv[:, D + lo:D + hi]
        s = jax.lax.dot_general(qh, kh, (((1,), (1,)), ((), ())),
                                preferred_element_type=jnp.float32) + bias
        m_prev = m_sc[:, h:h + 1]
        m_new = jnp.maximum(m_prev, jnp.max(s, axis=-1, keepdims=True))
        alpha = jnp.exp(m_prev - m_new)
        p = jnp.exp(s - m_new)
        l_sc[:, h:h + 1] = alpha * l_sc[:, h:h + 1] + jnp.sum(
            p, axis=-1, keepdims=True)
        acc_ref[:, lo:hi] = alpha * acc_ref[:, lo:hi] + jnp.dot(
            p.astype(jnp.bfloat16), vh, preferred_element_type=jnp.float32)
        m_sc[:, h:h + 1] = m_new

    @pl.when(ki == pl.num_programs(2) - 1)
    def _():
        inv_l = pl.reciprocal(l_sc[...], approx=True)    # EUP slot
        for h in range(heads):
            lo, hi = h * dh, (h + 1) * dh
            acc_ref[:, lo:hi] = acc_ref[:, lo:hi] * inv_l[:, h:h + 1]
        o_ref[0] = acc_ref[...].astype(o_ref.dtype)      # one lane-dense store


def _lse_kernel(x_ref, o_ref, m_sc, l_sc):
    # Streaming (vocab-tiled) logsumexp over rows; padded logit columns carry
    # a -1e30 bias so they contribute nothing.
    j = pl.program_id(1)

    @pl.when(j == 0)
    def _():
        m_sc[...] = jnp.full(m_sc.shape, -jnp.inf, jnp.float32)
        l_sc[...] = jnp.zeros_like(l_sc)

    x = x_ref[...]
    m_new = jnp.maximum(m_sc[...], jnp.max(x, axis=-1, keepdims=True))
    l_sc[...] = l_sc[...] * jnp.exp(m_sc[...] - m_new) + jnp.sum(
        jnp.exp(x - m_new), axis=-1, keepdims=True)
    m_sc[...] = m_new

    @pl.when(j == pl.num_programs(1) - 1)
    def _():
        o_ref[...] = m_sc[...] + jnp.log(l_sc[...])


# ----------------------------- kernel wrappers ------------------------------

def matmul(x, w, b, *, residual=None, relu=False, out_dtype=jnp.bfloat16,
           tm_max=_TM, tn_max=_TN, tk_max=_TK):
    """Tiled (M,N,K) o = x @ w + b [+ residual]; inputs pre-padded / bf16."""
    M, K = x.shape
    Kw, N = w.shape
    assert K == Kw, (x.shape, w.shape)
    tm = _pick_tile(M, tm_max, 16)
    tn = _pick_tile(N, tn_max, 128)
    tk = _pick_tile(K, tk_max, 128)
    in_specs = [pl.BlockSpec((tm, tk), lambda i, j, k: (i, k)),
                pl.BlockSpec((tk, tn), lambda i, j, k: (k, j)),
                pl.BlockSpec((1, tn), lambda i, j, k: (0, j))]
    args = [x, w, b]
    if residual is not None:
        in_specs.append(pl.BlockSpec((tm, tn), lambda i, j, k: (i, j)))
        args.append(residual)
    return pl.pallas_call(
        functools.partial(_matmul_kernel, relu=relu,
                          has_residual=residual is not None),
        grid=(M // tm, N // tn, K // tk),
        in_specs=in_specs,
        out_specs=pl.BlockSpec((tm, tn), lambda i, j, k: (i, j)),
        out_shape=jax.ShapeDtypeStruct((M, N), out_dtype),
        scratch_shapes=[pltpu.VMEM((tm, tn), jnp.float32)],
        compiler_params=pltpu.CompilerParams(
            dimension_semantics=("parallel", "parallel", "arbitrary")),
    )(*args)


def layernorm(x2d, ln, out_dtype=jnp.bfloat16):
    """Row-parallel LayerNorm(f32) -> bf16 normalized activation."""
    M, D = x2d.shape
    tm = _pick_tile(M, 512, 16)
    return pl.pallas_call(
        _layernorm_kernel,
        grid=(M // tm,),
        in_specs=[pl.BlockSpec((tm, D), lambda i: (i, 0)),
                  pl.BlockSpec((1, D), lambda i: (0, 0)),
                  pl.BlockSpec((1, D), lambda i: (0, 0))],
        out_specs=pl.BlockSpec((tm, D), lambda i: (i, 0)),
        out_shape=jax.ShapeDtypeStruct((M, D), out_dtype),
        compiler_params=pltpu.CompilerParams(dimension_semantics=("parallel",)),
    )(x2d, ln["g"], ln["b"])


def flash_attention(q, kv, mask, heads, *, q_tile=256, kv_tile=512):
    """q: (B,Sq,D) bf16; kv: (B,Sk,2D) bf16; mask: (B,1|Sq,Sk) f32 -> bf16."""
    B, Sq, D = q.shape
    _, Sk, twoD = kv.shape
    assert twoD == 2 * D and D % heads == 0
    Mq = mask.shape[1]
    tq = _pick_tile(Sq, q_tile, 16)
    tk = _pick_tile(Sk, kv_tile, 128)
    mq_blk = 1 if Mq == 1 else tq
    if Mq == 1:
        mask_map = lambda b, qi, ki: (b, 0, ki)
    else:
        mask_map = lambda b, qi, ki: (b, qi, ki)
    return pl.pallas_call(
        functools.partial(_flash_attn_kernel, heads=heads),
        grid=(B, Sq // tq, Sk // tk),
        in_specs=[pl.BlockSpec((1, tq, D), lambda b, qi, ki: (b, qi, 0)),
                  pl.BlockSpec((1, tk, twoD), lambda b, qi, ki: (b, ki, 0)),
                  pl.BlockSpec((1, mq_blk, tk), mask_map)],
        out_specs=pl.BlockSpec((1, tq, D), lambda b, qi, ki: (b, qi, 0)),
        out_shape=jax.ShapeDtypeStruct((B, Sq, D), jnp.bfloat16),
        scratch_shapes=[pltpu.VMEM((tq, D), jnp.float32),
                        pltpu.VMEM((tq, heads), jnp.float32),
                        pltpu.VMEM((tq, heads), jnp.float32)],
        compiler_params=pltpu.CompilerParams(
            dimension_semantics=("parallel", "parallel", "arbitrary")),
    )(q, kv, mask)


def logsumexp_rows(x):
    """Per-row streaming logsumexp over a lane-padded logits matrix."""
    M, N = x.shape
    tm = _pick_tile(M, 512, 8)
    tn = _pick_tile(N, 512, 128)
    return pl.pallas_call(
        _lse_kernel,
        grid=(M // tm, N // tn),
        in_specs=[pl.BlockSpec((tm, tn), lambda i, j: (i, j))],
        out_specs=pl.BlockSpec((tm, 1), lambda i, j: (i, 0)),
        out_shape=jax.ShapeDtypeStruct((M, 1), jnp.float32),
        scratch_shapes=[pltpu.VMEM((tm, 1), jnp.float32),
                        pltpu.VMEM((tm, 1), jnp.float32)],
        compiler_params=pltpu.CompilerParams(
            dimension_semantics=("parallel", "arbitrary")),
    )(x)


def generator(xn2, w, b, vocab):
    """Fused Linear + log_softmax: tiled logits + streaming logsumexp."""
    logits = matmul(xn2, w, b, out_dtype=jnp.float32)   # (M, Vp), pad cols -1e30
    lse = logsumexp_rows(logits)                        # (M, 1)
    # TODO(synk): final broadcast-subtract + vocab slice stays a fused XLA op.
    return logits[:, :vocab] - lse


# ------------------------------- model glue ---------------------------------

def positional_encoding(S, D):
    pos = jnp.arange(S, dtype=jnp.float32)[:, None]
    idx = jnp.arange(0, D, 2, dtype=jnp.float32)[None, :]
    angles = pos / jnp.power(10000.0, idx / D)
    pe = jnp.zeros((S, D), jnp.float32)
    pe = pe.at[:, 0::2].set(jnp.sin(angles))
    pe = pe.at[:, 1::2].set(jnp.cos(angles))
    return pe


def embed(tokens, table, d_model, Sp):
    # TODO(synk): embedding gather + sinusoidal PE stay in XLA (a Pallas
    # scalar-prefetch gather gives no win at these sizes).
    B, S = tokens.shape
    tok = jnp.pad(tokens, ((0, 0), (0, Sp - S)))
    e = table[tok] * math.sqrt(d_model)
    return e + positional_encoding(Sp, d_model)[None]


def _pad_mask(mask, Sq, Sq_p, Sk_p):
    """Pad a (B,1,Sk) or (B,Sq,Sk) mask; padded keys masked out (zeros)."""
    mask = mask.astype(jnp.float32)
    B, Mq, Sk = mask.shape
    if Mq == 1:
        return jnp.pad(mask, ((0, 0), (0, 0), (0, Sk_p - Sk)))
    assert Mq == Sq, (mask.shape, Sq)
    return jnp.pad(mask, ((0, 0), (0, Sq_p - Mq), (0, Sk_p - Sk)))


def _attention_block(x3, xn2, p, mask, heads):
    # self-attention sublayer: Q/KV from the normalized stream, residual fused.
    B, Sp, D = x3.shape
    M = B * Sp
    q = matmul(xn2, p["wq"], p["bq"])                     # bf16, scale folded in
    kv = matmul(xn2, p["wkv"], p["bkv"])                  # bf16 (M, 2D)
    attn = flash_attention(q.reshape(B, Sp, D), kv.reshape(B, Sp, 2 * D),
                           mask, heads)
    out = matmul(attn.reshape(M, D), p["wo"], p["bo"],
                 residual=x3.reshape(M, D), out_dtype=jnp.float32)
    return out.reshape(B, Sp, D)


def _cross_attention_block(x3, xn2, mem3, p, mask, heads):
    # cross-attention: Q from normalized decoder stream, K/V from the (final-
    # normed) encoder memory fed raw through this layer's KV projection.
    B, Stp, D = x3.shape
    Ssp = mem3.shape[1]
    M = B * Stp
    q = matmul(xn2, p["wq"], p["bq"])
    kv = matmul(mem3.reshape(B * Ssp, D), p["wkv"], p["bkv"])
    attn = flash_attention(q.reshape(B, Stp, D), kv.reshape(B, Ssp, 2 * D),
                           mask, heads)
    out = matmul(attn.reshape(M, D), p["wo"], p["bo"],
                 residual=x3.reshape(M, D), out_dtype=jnp.float32)
    return out.reshape(B, Stp, D)


def _ffn_block(x3, xn2, p):
    B, Sp, D = x3.shape
    M = B * Sp
    h = matmul(xn2, p["w1"], p["b1"], relu=True)          # bf16 (M, d_ff_p)
    out = matmul(h, p["w2"], p["b2"],
                 residual=x3.reshape(M, D), out_dtype=jnp.float32)
    return out.reshape(B, Sp, D)


def encoder_layer(x, mask, p, heads):
    D = x.shape[-1]
    xn = layernorm(x.reshape(-1, D), p["ln1"])
    x = _attention_block(x, xn, p["attn"], mask, heads)
    xn = layernorm(x.reshape(-1, D), p["ln2"])
    x = _ffn_block(x, xn, p["ffn"])
    return x


def decoder_layer(x, mem3, src_mask, tgt_mask, p, heads):
    D = x.shape[-1]
    xn = layernorm(x.reshape(-1, D), p["ln1"])
    x = _attention_block(x, xn, p["self_attn"], tgt_mask, heads)
    xn = layernorm(x.reshape(-1, D), p["ln2"])
    x = _cross_attention_block(x, xn, mem3, p["cross_attn"], src_mask, heads)
    xn = layernorm(x.reshape(-1, D), p["ln3"])
    x = _ffn_block(x, xn, p["ffn"])
    return x


def forward(params, source_inputs, target_inputs, source_mask, target_mask,
            *, heads, d_model):
    # TODO(synk): dropout layers are identity here (inference/eval semantics).
    B, Ss = source_inputs.shape
    _, St = target_inputs.shape
    V = params["embed"].shape[0]
    Ssp, Stp = _seq_pad(Ss), _seq_pad(St)

    src_mask_enc = _pad_mask(source_mask, Ss, Ssp, Ssp)   # (B, 1|Ssp, Ssp)
    src_mask_dec = _pad_mask(source_mask, St, Stp, Ssp)   # (B, 1|Stp, Ssp)
    tgt_mask_p = _pad_mask(target_mask, St, Stp, Stp)     # (B, 1|Stp, Stp)

    # ---- encoder ----
    x = embed(source_inputs, params["embed"], d_model, Ssp)
    for p in params["enc_layers"]:
        x = encoder_layer(x, src_mask_enc, p, heads)
    memory = layernorm(x.reshape(-1, d_model), params["enc_ln"])
    memory = memory.reshape(B, Ssp, d_model)              # bf16

    # ---- decoder ----
    y = embed(target_inputs, params["embed"], d_model, Stp)
    for p in params["dec_layers"]:
        y = decoder_layer(y, memory, src_mask_dec, tgt_mask_p, p, heads)
    yn = layernorm(y.reshape(-1, d_model), params["dec_ln"])

    # ---- generator (linear + log_softmax) ----
    logp = generator(yn, params["gen"]["w"], params["gen"]["b"], vocab=V)
    return logp.reshape(B, Stp, V)[:, :St]


# ------------------------------ parameter init -------------------------------

def init_params(key, vocab, d_model, d_ff, blocks, heads):
    assert d_model % 8 == 0 and d_model % heads == 0
    d_ff_p = _round_up(d_ff, 128)
    vocab_p = _round_up(vocab, 128)
    attn_scale = 1.0 / math.sqrt(d_model // heads)
    keys = iter(jax.random.split(key, 4096))

    def xavier(din, dout, pad_in=0, pad_out=0, scale=1.0, dtype=jnp.bfloat16):
        limit = math.sqrt(6.0 / (din + dout))
        w = jax.random.uniform(next(keys), (din, dout), jnp.float32,
                               -limit, limit) * scale
        pi = max(pad_in, din) - din
        po = max(pad_out, dout) - dout
        if pi or po:
            w = jnp.pad(w, ((0, pi), (0, po)))
        return w.astype(dtype)

    def bias(n, pad_to=0, pad_value=0.0):
        b = jnp.zeros((1, n), jnp.float32)
        if pad_to > n:
            b = jnp.pad(b, ((0, 0), (0, pad_to - n)), constant_values=pad_value)
        return b

    def ln_init():
        return {"g": jnp.ones((1, d_model), jnp.float32),
                "b": jnp.zeros((1, d_model), jnp.float32)}

    def attn_params():
        wkv = jnp.concatenate(
            [xavier(d_model, d_model) for _ in range(2)], axis=1)
        return {"wq": xavier(d_model, d_model, scale=attn_scale),  # scale folded
                "bq": bias(d_model),
                "wkv": wkv, "bkv": bias(2 * d_model),
                "wo": xavier(d_model, d_model), "bo": bias(d_model)}

    def ffn_params():
        return {"w1": xavier(d_model, d_ff, pad_out=d_ff_p),
                "b1": bias(d_ff, pad_to=d_ff_p),
                "w2": xavier(d_ff, d_model, pad_in=d_ff_p),
                "b2": bias(d_model)}

    def enc_layer():
        return {"ln1": ln_init(), "attn": attn_params(),
                "ln2": ln_init(), "ffn": ffn_params()}

    def dec_layer():
        return {"ln1": ln_init(), "self_attn": attn_params(),
                "ln2": ln_init(), "cross_attn": attn_params(),
                "ln3": ln_init(), "ffn": ffn_params()}

    return {
        "embed": xavier(vocab, d_model, dtype=jnp.float32),
        "enc_layers": [enc_layer() for _ in range(blocks)],
        "enc_ln": ln_init(),
        "dec_layers": [dec_layer() for _ in range(blocks)],
        "dec_ln": ln_init(),
        # generator weight padded to a 128-multiple vocab; padded bias columns
        # get -1e30 so the streaming logsumexp ignores them.
        "gen": {"w": xavier(d_model, vocab, pad_out=vocab_p),
                "b": bias(vocab, pad_to=vocab_p, pad_value=-1e30)},
    }


# ---------------------------------- main -------------------------------------

if __name__ == "__main__":
    B, S_SRC, S_TGT = 2, 8, 8
    VOCAB, D_MODEL, D_FF, BLOCKS, HEADS = 50, 32, 64, 2, 4

    key = jax.random.PRNGKey(0)
    pkey, skey, tkey = jax.random.split(key, 3)

    params = init_params(pkey, VOCAB, D_MODEL, D_FF, BLOCKS, HEADS)

    source_inputs = jax.random.randint(skey, (B, S_SRC), 0, VOCAB, dtype=jnp.int32)
    target_inputs = jax.random.randint(tkey, (B, S_TGT), 0, VOCAB, dtype=jnp.int32)
    # source mask: padding-style (B, 1, S_src), all ones (no padding)
    source_mask = jnp.ones((B, 1, S_SRC), jnp.float32)
    # target mask: causal (subsequent_mask) & no padding, full (B, S_tgt, S_tgt)
    target_mask = jnp.broadcast_to(
        jnp.tril(jnp.ones((S_TGT, S_TGT), jnp.float32)), (B, S_TGT, S_TGT))

    fwd = jax.jit(functools.partial(forward, heads=HEADS, d_model=D_MODEL))
    out = fwd(params, source_inputs, target_inputs, source_mask, target_mask)
    out = jax.block_until_ready(out)

    assert out.shape == (B, S_TGT, VOCAB), out.shape
    assert bool(jnp.all(jnp.isfinite(out)))
    # generator output is log_softmax -> each row sums (in prob space) to 1
    assert bool(jnp.allclose(jnp.sum(jnp.exp(out), axis=-1), 1.0, atol=1e-3))

    print("KERNEL_OK")
</pallas_src>

<mosaic_0001>
module attributes {stable_mosaic.version = 11 : i64} {
  func.func @_layernorm_kernel(%arg0: i32, %arg1: memref<32x32xf32, #tpu.memory_space<vmem>>, %arg2: memref<1x32xf32, #tpu.memory_space<vmem>>, %arg3: memref<1x32xf32, #tpu.memory_space<vmem>>, %arg4: memref<32x32xbf16, #tpu.memory_space<vmem>>) attributes {dimension_semantics = [#tpu.dimension_semantics<parallel>], iteration_bounds = array<i64: 1>, scalar_prefetch = 0 : i64, scratch_operands = 0 : i64, tpu.core_type = #tpu.core_type<tc>, window_params = [{transform_indices = @transform_0, window_bounds = array<i64: 32, 32>}, {pipeline_mode = #tpu.pipeline_mode<synchronous>, transform_indices = @transform_1, window_bounds = array<i64: 1, 32>}, {pipeline_mode = #tpu.pipeline_mode<synchronous>, transform_indices = @transform_2, window_bounds = array<i64: 1, 32>}, {transform_indices = @transform_3, window_bounds = array<i64: 32, 32>}]} {
    %c0 = arith.constant 0 : index
    %c0_0 = arith.constant 0 : index
    %0 = vector.load %arg1[%c0, %c0_0] : memref<32x32xf32, #tpu.memory_space<vmem>>, vector<32x32xf32>
    %cst = arith.constant dense<0.000000e+00> : vector<32xf32>
    %1 = vector.multi_reduction <add>, %0, %cst [1] : vector<32x32xf32> to vector<32xf32>
    %2 = vector.shape_cast %1 : vector<32xf32> to vector<32x1xf32>
    %cst_1 = arith.constant 3.200000e+01 : f32
    %3 = vector.broadcast %cst_1 : f32 to vector<32x1xf32>
    %4 = arith.divf %2, %3 : vector<32x1xf32>
    %5 = vector.broadcast %4 : vector<32x1xf32> to vector<32x32xf32>
    %6 = arith.subf %0, %5 : vector<32x32xf32>
    %7 = arith.mulf %6, %6 : vector<32x32xf32>
    %cst_2 = arith.constant dense<0.000000e+00> : vector<32xf32>
    %8 = vector.multi_reduction <add>, %7, %cst_2 [1] : vector<32x32xf32> to vector<32xf32>
    %9 = vector.shape_cast %8 : vector<32xf32> to vector<32x1xf32>
    %cst_3 = arith.constant 3.200000e+01 : f32
    %10 = vector.broadcast %cst_3 : f32 to vector<32x1xf32>
    %11 = arith.divf %9, %10 : vector<32x1xf32>
    %12 = vector.broadcast %4 : vector<32x1xf32> to vector<32x32xf32>
    %13 = arith.subf %0, %12 : vector<32x32xf32>
    %cst_4 = arith.constant 9.99999974E-6 : f32
    %14 = vector.broadcast %cst_4 : f32 to vector<32x1xf32>
    %15 = arith.addf %11, %14 : vector<32x1xf32>
    %16 = math.rsqrt %15 : vector<32x1xf32>
    %17 = vector.broadcast %16 : vector<32x1xf32> to vector<32x32xf32>
    %18 = arith.mulf %13, %17 : vector<32x32xf32>
    %c0_5 = arith.constant 0 : index
    %c0_6 = arith.constant 0 : index
    %19 = vector.load %arg2[%c0_5, %c0_6] : memref<1x32xf32, #tpu.memory_space<vmem>>, vector<1x32xf32>
    %20 = vector.broadcast %19 : vector<1x32xf32> to vector<32x32xf32>
    %21 = arith.mulf %18, %20 : vector<32x32xf32>
    %c0_7 = arith.constant 0 : index
    %c0_8 = arith.constant 0 : index
    %22 = vector.load %arg3[%c0_7, %c0_8] : memref<1x32xf32, #tpu.memory_space<vmem>>, vector<1x32xf32>
    %23 = vector.broadcast %22 : vector<1x32xf32> to vector<32x32xf32>
    %24 = arith.addf %21, %23 : vector<32x32xf32>
    %25 = arith.truncf %24 : vector<32x32xf32> to vector<32x32xbf16>
    %c0_9 = arith.constant 0 : index
    %c0_10 = arith.constant 0 : index
    %26 = vector.load %arg4[%c0_9, %c0_10] : memref<32x32xbf16, #tpu.memory_space<vmem>>, vector<32x32xbf16>
    tpu.vector_store %arg4[%c0_9, %c0_10], %25 {strides = array<i32>} : memref<32x32xbf16, #tpu.memory_space<vmem>>, vector<32x32xbf16>,
    return
  }
  func.func @transform_0(%arg0: i32) -> (i32, i32) {
    %c0_i32 = arith.constant 0 : i32
    %c0_i32_0 = arith.constant 0 : i32
    return %arg0, %c0_i32 : i32, i32
  }
  func.func @transform_1(%arg0: i32) -> (i32, i32) {
    %c0_i32 = arith.constant 0 : i32
    %c0_i32_0 = arith.constant 0 : i32
    %c0_i32_1 = arith.constant 0 : i32
    return %c0_i32, %c0_i32_0 : i32, i32
  }
  func.func @transform_2(%arg0: i32) -> (i32, i32) {
    %c0_i32 = arith.constant 0 : i32
    %c0_i32_0 = arith.constant 0 : i32
    %c0_i32_1 = arith.constant 0 : i32
    return %c0_i32, %c0_i32_0 : i32, i32
  }
  func.func @transform_3(%arg0: i32) -> (i32, i32) {
    %c0_i32 = arith.constant 0 : i32
    %c0_i32_0 = arith.constant 0 : i32
    return %arg0, %c0_i32 : i32, i32
  }
}

module attributes {stable_mosaic.version = 11 : i64} {
  func.func @_matmul_kernel(%arg0: i32, %arg1: i32, %arg2: i32, %arg3: memref<32x32xbf16, #tpu.memory_space<vmem>>, %arg4: memref<32x64xbf16, #tpu.memory_space<vmem>>, %arg5: memref<1x64xf32, #tpu.memory_space<vmem>>, %arg6: memref<32x64xbf16, #tpu.memory_space<vmem>>, %arg7: memref<32x64xf32, #tpu.memory_space<vmem>>) attributes {dimension_semantics = [#tpu.dimension_semantics<parallel>, #tpu.dimension_semantics<parallel>, #tpu.dimension_semantics<arbitrary>], iteration_bounds = array<i64: 1, 1, 1>, scalar_prefetch = 0 : i64, scratch_operands = 1 : i64, tpu.core_type = #tpu.core_type<tc>, window_params = [{transform_indices = @transform_0, window_bounds = array<i64: 32, 32>}, {transform_indices = @transform_1, window_bounds = array<i64: 32, 64>}, {transform_indices = @transform_2, window_bounds = array<i64: 1, 64>}, {transform_indices = @transform_3, window_bounds = array<i64: 32, 64>}]} {
    %c0_i32 = arith.constant 0 : i32
    %0 = arith.cmpi eq, %arg2, %c0_i32 : i32
    %1 = arith.extui %0 : i1 to i32
    %c0_i32_0 = arith.constant 0 : i32
    %2 = arith.cmpi ne, %1, %c0_i32_0 : i32
    scf.if %2 {
      %cst_10 = arith.constant 0.000000e+00 : f32
      %12 = vector.broadcast %cst_10 : f32 to vector<32x64xf32>
      %c0_11 = arith.constant 0 : index
      %c0_12 = arith.constant 0 : index
      %13 = vector.load %arg7[%c0_11, %c0_12] : memref<32x64xf32, #tpu.memory_space<vmem>>, vector<32x64xf32>
      tpu.vector_store %arg7[%c0_11, %c0_12], %12 {strides = array<i32>} : memref<32x64xf32, #tpu.memory_space<vmem>>, vector<32x64xf32>,
    } else {
    }
    %c0 = arith.constant 0 : index
    %c0_1 = arith.constant 0 : index
    %3 = vector.load %arg7[%c0, %c0_1] : memref<32x64xf32, #tpu.memory_space<vmem>>, vector<32x64xf32>
    %c0_2 = arith.constant 0 : index
    %c0_3 = arith.constant 0 : index
    %4 = vector.load %arg3[%c0_2, %c0_3] : memref<32x32xbf16, #tpu.memory_space<vmem>>, vector<32x32xbf16>
    %c0_4 = arith.constant 0 : index
    %c0_5 = arith.constant 0 : index
    %5 = vector.load %arg4[%c0_4, %c0_5] : memref<32x64xbf16, #tpu.memory_space<vmem>>, vector<32x64xbf16>
    %cst = arith.constant dense<0.000000e+00> : vector<32x64xf32>
    %6 = tpu.matmul %4, %5, %cst {dimension_numbers = #tpu.dot_dimension_numbers<[1], [0], [0], [1], [0, 0, 1, 1], [], []>} : vector<32x32xbf16>, vector<32x64xbf16>, vector<32x64xf32> -> vector<32x64xf32>
    %7 = arith.addf %3, %6 : vector<32x64xf32>
    %c0_6 = arith.constant 0 : index
    %c0_7 = arith.constant 0 : index
    %8 = vector.load %arg7[%c0_6, %c0_7] : memref<32x64xf32, #tpu.memory_space<vmem>>, vector<32x64xf32>
    tpu.vector_store %arg7[%c0_6, %c0_7], %7 {strides = array<i32>} : memref<32x64xf32, #tpu.memory_space<vmem>>, vector<32x64xf32>,
    %c0_i32_8 = arith.constant 0 : i32
    %9 = arith.cmpi eq, %arg2, %c0_i32_8 : i32
    %10 = arith.extui %9 : i1 to i32
    %c0_i32_9 = arith.constant 0 : i32
    %11 = arith.cmpi ne, %10, %c0_i32_9 : i32
    scf.if %11 {
      %c0_10 = arith.constant 0 : index
      %c0_11 = arith.constant 0 : index
      %12 = vector.load %arg7[%c0_10, %c0_11] : memref<32x64xf32, #tpu.memory_space<vmem>>, vector<32x64xf32>
      %c0_12 = arith.constant 0 : index
      %c0_13 = arith.constant 0 : index
      %13 = vector.load %arg5[%c0_12, %c0_13] : memref<1x64xf32, #tpu.memory_space<vmem>>, vector<1x64xf32>
      %14 = vector.broadcast %13 : vector<1x64xf32> to vector<32x64xf32>
      %15 = arith.addf %12, %14 : vector<32x64xf32>
      %16 = arith.truncf %15 : vector<32x64xf32> to vector<32x64xbf16>
      %c0_14 = arith.constant 0 : index
      %c0_15 = arith.constant 0 : index
      %17 = vector.load %arg6[%c0_14, %c0_15] : memref<32x64xbf16, #tpu.memory_space<vmem>>, vector<32x64xbf16>
      tpu.vector_store %arg6[%c0_14, %c0_15], %16 {strides = array<i32>} : memref<32x64xbf16, #tpu.memory_space<vmem>>, vector<32x64xbf16>,
    } else {
    }
    return
  }
  func.func @transform_0(%arg0: i32, %arg1: i32, %arg2: i32) -> (i32, i32) {
    %c0_i32 = arith.constant 0 : i32
    return %arg0, %arg2 : i32, i32
  }
  func.func @transform_1(%arg0: i32, %arg1: i32, %arg2: i32) -> (i32, i32) {
    %c0_i32 = arith.constant 0 : i32
    return %arg2, %arg1 : i32, i32
  }
  func.func @transform_2(%arg0: i32, %arg1: i32, %arg2: i32) -> (i32, i32) {
    %c0_i32 = arith.constant 0 : i32
    %c0_i32_0 = arith.constant 0 : i32
    return %c0_i32, %arg1 : i32, i32
  }
  func.func @transform_3(%arg0: i32, %arg1: i32, %arg2: i32) -> (i32, i32) {
    %c0_i32 = arith.constant 0 : i32
    return %arg0, %arg1 : i32, i32
  }
}

module attributes {stable_mosaic.version = 11 : i64} {
  func.func @_matmul_kernel(%arg0: i32, %arg1: i32, %arg2: i32, %arg3: memref<32x32xbf16, #tpu.memory_space<vmem>>, %arg4: memref<32x32xbf16, #tpu.memory_space<vmem>>, %arg5: memref<1x32xf32, #tpu.memory_space<vmem>>, %arg6: memref<32x32xbf16, #tpu.memory_space<vmem>>, %arg7: memref<32x32xf32, #tpu.memory_space<vmem>>) attributes {dimension_semantics = [#tpu.dimension_semantics<parallel>, #tpu.dimension_semantics<parallel>, #tpu.dimension_semantics<arbitrary>], iteration_bounds = array<i64: 1, 1, 1>, scalar_prefetch = 0 : i64, scratch_operands = 1 : i64, tpu.core_type = #tpu.core_type<tc>, window_params = [{transform_indices = @transform_0, window_bounds = array<i64: 32, 32>}, {transform_indices = @transform_1, window_bounds = array<i64: 32, 32>}, {transform_indices = @transform_2, window_bounds = array<i64: 1, 32>}, {transform_indices = @transform_3, window_bounds = array<i64: 32, 32>}]} {
    %c0_i32 = arith.constant 0 : i32
    %0 = arith.cmpi eq, %arg2, %c0_i32 : i32
    %1 = arith.extui %0 : i1 to i32
    %c0_i32_0 = arith.constant 0 : i32
    %2 = arith.cmpi ne, %1, %c0_i32_0 : i32
    scf.if %2 {
      %cst_10 = arith.constant 0.000000e+00 : f32
      %12 = vector.broadcast %cst_10 : f32 to vector<32x32xf32>
      %c0_11 = arith.constant 0 : index
      %c0_12 = arith.constant 0 : index
      %13 = vector.load %arg7[%c0_11, %c0_12] : memref<32x32xf32, #tpu.memory_space<vmem>>, vector<32x32xf32>
      tpu.vector_store %arg7[%c0_11, %c0_12], %12 {strides = array<i32>} : memref<32x32xf32, #tpu.memory_space<vmem>>, vector<32x32xf32>,
    } else {
    }
    %c0 = arith.constant 0 : index
    %c0_1 = arith.constant 0 : index
    %3 = vector.load %arg7[%c0, %c0_1] : memref<32x32xf32, #tpu.memory_space<vmem>>, vector<32x32xf32>
    %c0_2 = arith.constant 0 : index
    %c0_3 = arith.constant 0 : index
    %4 = vector.load %arg3[%c0_2, %c0_3] : memref<32x32xbf16, #tpu.memory_space<vmem>>, vector<32x32xbf16>
    %c0_4 = arith.constant 0 : index
    %c0_5 = arith.constant 0 : index
    %5 = vector.load %arg4[%c0_4, %c0_5] : memref<32x32xbf16, #tpu.memory_space<vmem>>, vector<32x32xbf16>
    %cst = arith.constant dense<0.000000e+00> : vector<32x32xf32>
    %6 = tpu.matmul %4, %5, %cst {dimension_numbers = #tpu.dot_dimension_numbers<[1], [0], [0], [1], [0, 0, 1, 1], [], []>} : vector<32x32xbf16>, vector<32x32xbf16>, vector<32x32xf32> -> vector<32x32xf32>
    %7 = arith.addf %3, %6 : vector<32x32xf32>
    %c0_6 = arith.constant 0 : index
    %c0_7 = arith.constant 0 : index
    %8 = vector.load %arg7[%c0_6, %c0_7] : memref<32x32xf32, #tpu.memory_space<vmem>>, vector<32x32xf32>
    tpu.vector_store %arg7[%c0_6, %c0_7], %7 {strides = array<i32>} : memref<32x32xf32, #tpu.memory_space<vmem>>, vector<32x32xf32>,
    %c0_i32_8 = arith.constant 0 : i32
    %9 = arith.cmpi eq, %arg2, %c0_i32_8 : i32
    %10 = arith.extui %9 : i1 to i32
    %c0_i32_9 = arith.constant 0 : i32
    %11 = arith.cmpi ne, %10, %c0_i32_9 : i32
    scf.if %11 {
      %c0_10 = arith.constant 0 : index
      %c0_11 = arith.constant 0 : index
      %12 = vector.load %arg7[%c0_10, %c0_11] : memref<32x32xf32, #tpu.memory_space<vmem>>, vector<32x32xf32>
      %c0_12 = arith.constant 0 : index
      %c0_13 = arith.constant 0 : index
      %13 = vector.load %arg5[%c0_12, %c0_13] : memref<1x32xf32, #tpu.memory_space<vmem>>, vector<1x32xf32>
      %14 = vector.broadcast %13 : vector<1x32xf32> to vector<32x32xf32>
      %15 = arith.addf %12, %14 : vector<32x32xf32>
      %16 = arith.truncf %15 : vector<32x32xf32> to vector<32x32xbf16>
      %c0_14 = arith.constant 0 : index
      %c0_15 = arith.constant 0 : index
      %17 = vector.load %arg6[%c0_14, %c0_15] : memref<32x32xbf16, #tpu.memory_space<vmem>>, vector<32x32xbf16>
      tpu.vector_store %arg6[%c0_14, %c0_15], %16 {strides = array<i32>} : memref<32x32xbf16, #tpu.memory_space<vmem>>, vector<32x32xbf16>,
    } else {
    }
    return
  }
  func.func @transform_0(%arg0: i32, %arg1: i32, %arg2: i32) -> (i32, i32) {
    %c0_i32 = arith.constant 0 : i32
    return %arg0, %arg2 : i32, i32
  }
  func.func @transform_1(%arg0: i32, %arg1: i32, %arg2: i32) -> (i32, i32) {
    %c0_i32 = arith.constant 0 : i32
    return %arg2, %arg1 : i32, i32
  }
  func.func @transform_2(%arg0: i32, %arg1: i32, %arg2: i32) -> (i32, i32) {
    %c0_i32 = arith.constant 0 : i32
    %c0_i32_0 = arith.constant 0 : i32
    return %c0_i32, %arg1 : i32, i32
  }
  func.func @transform_3(%arg0: i32, %arg1: i32, %arg2: i32) -> (i32, i32) {
    %c0_i32 = arith.constant 0 : i32
    return %arg0, %arg1 : i32, i32
  }
}

module attributes {stable_mosaic.version = 11 : i64} {
  func.func @_flash_attn_kernel(%arg0: i32, %arg1: i32, %arg2: i32, %arg3: memref<1x16x32xbf16, #tpu.memory_space<vmem>>, %arg4: memref<1x16x64xbf16, #tpu.memory_space<vmem>>, %arg5: memref<1x1x16xf32, #tpu.memory_space<vmem>>, %arg6: memref<1x16x32xbf16, #tpu.memory_space<vmem>>, %arg7: memref<16x32xf32, #tpu.memory_space<vmem>>, %arg8: memref<16x4xf32, #tpu.memory_space<vmem>>, %arg9: memref<16x4xf32, #tpu.memory_space<vmem>>) attributes {dimension_semantics = [#tpu.dimension_semantics<parallel>, #tpu.dimension_semantics<parallel>, #tpu.dimension_semantics<arbitrary>], iteration_bounds = array<i64: 2, 1, 1>, scalar_prefetch = 0 : i64, scratch_operands = 3 : i64, tpu.core_type = #tpu.core_type<tc>, window_params = [{transform_indices = @transform_0, window_bounds = array<i64: 1, 16, 32>}, {transform_indices = @transform_1, window_bounds = array<i64: 1, 16, 64>}, {transform_indices = @transform_2, window_bounds = array<i64: 1, 1, 16>}, {transform_indices = @transform_3, window_bounds = array<i64: 1, 16, 32>}]} {
    %c0_i32 = arith.constant 0 : i32
    %0 = arith.cmpi eq, %arg2, %c0_i32 : i32
    %1 = arith.extui %0 : i1 to i32
    %c0_i32_0 = arith.constant 0 : i32
    %2 = arith.cmpi ne, %1, %c0_i32_0 : i32
    scf.if %2 {
      %cst_71 = arith.constant 0xFF800000 : f32
      %133 = vector.broadcast %cst_71 : f32 to vector<16x4xf32>
      %c0_72 = arith.constant 0 : index
      %c0_73 = arith.constant 0 : index
      %134 = vector.load %arg8[%c0_72, %c0_73] : memref<16x4xf32, #tpu.memory_space<vmem>>, vector<16x4xf32>
      tpu.vector_store %arg8[%c0_72, %c0_73], %133 {strides = array<i32>} : memref<16x4xf32, #tpu.memory_space<vmem>>, vector<16x4xf32>,
      %cst_74 = arith.constant 0.000000e+00 : f32
      %135 = vector.broadcast %cst_74 : f32 to vector<16x4xf32>
      %c0_75 = arith.constant 0 : index
      %c0_76 = arith.constant 0 : index
      %136 = vector.load %arg9[%c0_75, %c0_76] : memref<16x4xf32, #tpu.memory_space<vmem>>, vector<16x4xf32>
      tpu.vector_store %arg9[%c0_75, %c0_76], %135 {strides = array<i32>} : memref<16x4xf32, #tpu.memory_space<vmem>>, vector<16x4xf32>,
      %cst_77 = arith.constant 0.000000e+00 : f32
      %137 = vector.broadcast %cst_77 : f32 to vector<16x32xf32>
      %c0_78 = arith.constant 0 : index
      %c0_79 = arith.constant 0 : index
      %138 = vector.load %arg7[%c0_78, %c0_79] : memref<16x32xf32, #tpu.memory_space<vmem>>, vector<16x32xf32>
      tpu.vector_store %arg7[%c0_78, %c0_79], %137 {strides = array<i32>} : memref<16x32xf32, #tpu.memory_space<vmem>>, vector<16x32xf32>,
    } else {
    }
    %c0 = arith.constant 0 : index
    %c0_1 = arith.constant 0 : index
    %c0_2 = arith.constant 0 : index
    %3 = vector.load %arg5[%c0, %c0_1, %c0_2] : memref<1x1x16xf32, #tpu.memory_space<vmem>>, vector<1x1x16xf32>
    %4 = vector.shape_cast %3 : vector<1x1x16xf32> to vector<1x16xf32>
    %cst = arith.constant 0.000000e+00 : f32
    %5 = vector.broadcast %cst : f32 to vector<1x16xf32>
    %6 = arith.cmpf ogt, %4, %5 : vector<1x16xf32>
    %cst_3 = arith.constant 0.000000e+00 : f32
    %cst_4 = arith.constant -1.000000e+09 : f32
    %7 = vector.broadcast %cst_3 : f32 to vector<1x16xf32>
    %8 = vector.broadcast %cst_4 : f32 to vector<1x16xf32>
    %9 = arith.select %6, %7, %8 : vector<1x16xi1>, vector<1x16xf32>
    %c0_5 = arith.constant 0 : index
    %c0_6 = arith.constant 0 : index
    %c0_7 = arith.constant 0 : index
    %10 = vector.load %arg3[%c0_5, %c0_6, %c0_7] : memref<1x16x32xbf16, #tpu.memory_space<vmem>>, vector<1x16x32xbf16>
    %11 = vector.shape_cast %10 : vector<1x16x32xbf16> to vector<16x32xbf16>
    %c0_8 = arith.constant 0 : index
    %c0_9 = arith.constant 0 : index
    %c0_10 = arith.constant 0 : index
    %12 = vector.load %arg4[%c0_8, %c0_9, %c0_10] : memref<1x16x64xbf16, #tpu.memory_space<vmem>>, vector<1x16x64xbf16>
    %13 = vector.shape_cast %12 : vector<1x16x64xbf16> to vector<16x64xbf16>
    %14 = vector.extract_strided_slice %11 {offsets = [0, 0], sizes = [16, 8], strides = [1, 1]} : vector<16x32xbf16> to vector<16x8xbf16>
    %15 = vector.extract_strided_slice %13 {offsets = [0, 0], sizes = [16, 8], strides = [1, 1]} : vector<16x64xbf16> to vector<16x8xbf16>
    %16 = vector.extract_strided_slice %13 {offsets = [0, 32], sizes = [16, 8], strides = [1, 1]} : vector<16x64xbf16> to vector<16x8xbf16>
    %cst_11 = arith.constant dense<0.000000e+00> : vector<16x16xf32>
    %17 = tpu.matmul %14, %15, %cst_11 {dimension_numbers = #tpu.dot_dimension_numbers<[1], [1], [0], [0], [0, 0, 1, 0], [], []>} : vector<16x8xbf16>, vector<16x8xbf16>, vector<16x16xf32> -> vector<16x16xf32>
    %18 = vector.broadcast %9 : vector<1x16xf32> to vector<16x16xf32>
    %19 = arith.addf %17, %18 : vector<16x16xf32>
    %c0_12 = arith.constant 0 : index
    %c0_13 = arith.constant 0 : index
    %20 = vector.load %arg8[%c0_12, %c0_13] : memref<16x4xf32, #tpu.memory_space<vmem>>, vector<16x1xf32>
    %cst_14 = arith.constant dense<0xFF800000> : vector<16xf32>
    %21 = vector.multi_reduction <maximumf>, %19, %cst_14 [1] : vector<16x16xf32> to vector<16xf32>
    %22 = vector.shape_cast %21 : vector<16xf32> to vector<16x1xf32>
    %23 = arith.maximumf %20, %22 : vector<16x1xf32>
    %24 = arith.subf %20, %23 : vector<16x1xf32>
    %25 = math.exp %24 : vector<16x1xf32>
    %26 = vector.broadcast %23 : vector<16x1xf32> to vector<16x16xf32>
    %27 = arith.subf %19, %26 : vector<16x16xf32>
    %28 = math.exp %27 : vector<16x16xf32>
    %c0_15 = arith.constant 0 : index
    %c0_16 = arith.constant 0 : index
    %29 = vector.load %arg9[%c0_15, %c0_16] : memref<16x4xf32, #tpu.memory_space<vmem>>, vector<16x1xf32>
    %30 = arith.mulf %25, %29 : vector<16x1xf32>
    %cst_17 = arith.constant dense<0.000000e+00> : vector<16xf32>
    %31 = vector.multi_reduction <add>, %28, %cst_17 [1] : vector<16x16xf32> to vector<16xf32>
    %32 = vector.shape_cast %31 : vector<16xf32> to vector<16x1xf32>
    %33 = arith.addf %30, %32 : vector<16x1xf32>
    %c0_18 = arith.constant 0 : index
    %c0_19 = arith.constant 0 : index
    %34 = vector.load %arg9[%c0_18, %c0_19] : memref<16x4xf32, #tpu.memory_space<vmem>>, vector<16x1xf32>
    tpu.vector_store %arg9[%c0_18, %c0_19], %33 {strides = array<i32>} : memref<16x4xf32, #tpu.memory_space<vmem>>, vector<16x1xf32>,
    %c0_20 = arith.constant 0 : index
    %c0_21 = arith.constant 0 : index
    %35 = vector.load %arg7[%c0_20, %c0_21] : memref<16x32xf32, #tpu.memory_space<vmem>>, vector<16x8xf32>
    %36 = vector.broadcast %25 : vector<16x1xf32> to vector<16x8xf32>
    %37 = arith.mulf %36, %35 : vector<16x8xf32>
    %38 = arith.truncf %28 : vector<16x16xf32> to vector<16x16xbf16>
    %cst_22 = arith.constant dense<0.000000e+00> : vector<16x8xf32>
    %39 = tpu.matmul %38, %16, %cst_22 {dimension_numbers = #tpu.dot_dimension_numbers<[1], [0], [0], [1], [0, 0, 1, 1], [], []>} : vector<16x16xbf16>, vector<16x8xbf16>, vector<16x8xf32> -> vector<16x8xf32>
    %40 = arith.addf %37, %39 : vector<16x8xf32>
    %c0_23 = arith.constant 0 : index
    %c0_24 = arith.constant 0 : index
    %41 = vector.load %arg7[%c0_23, %c0_24] : memref<16x32xf32, #tpu.memory_space<vmem>>, vector<16x8xf32>
    tpu.vector_store %arg7[%c0_23, %c0_24], %40 {strides = array<i32>} : memref<16x32xf32, #tpu.memory_space<vmem>>, vector<16x8xf32>,
    %c0_25 = arith.constant 0 : index
    %c0_26 = arith.constant 0 : index
    %42 = vector.load %arg8[%c0_25, %c0_26] : memref<16x4xf32, #tpu.memory_space<vmem>>, vector<16x1xf32>
    tpu.vector_store %arg8[%c0_25, %c0_26], %23 {strides = array<i32>} : memref<16x4xf32, #tpu.memory_space<vmem>>, vector<16x1xf32>,
    %43 = vector.extract_strided_slice %11 {offsets = [0, 8], sizes = [16, 8], strides = [1, 1]} : vector<16x32xbf16> to vector<16x8xbf16>
    %44 = vector.extract_strided_slice %13 {offsets = [0, 8], sizes = [16, 8], strides = [1, 1]} : vector<16x64xbf16> to vector<16x8xbf16>
    %45 = vector.extract_strided_slice %13 {offsets = [0, 40], sizes = [16, 8], strides = [1, 1]} : vector<16x64xbf16> to vector<16x8xbf16>
    %cst_27 = arith.constant dense<0.000000e+00> : vector<16x16xf32>
    %46 = tpu.matmul %43, %44, %cst_27 {dimension_numbers = #tpu.dot_dimension_numbers<[1], [1], [0], [0], [0, 0, 1, 0], [], []>} : vector<16x8xbf16>, vector<16x8xbf16>, vector<16x16xf32> -> vector<16x16xf32>
    %47 = vector.broadcast %9 : vector<1x16xf32> to vector<16x16xf32>
    %48 = arith.addf %46, %47 : vector<16x16xf32>
    %c0_28 = arith.constant 0 : index
    %c1 = arith.constant 1 : index
    %49 = vector.load %arg8[%c0_28, %c1] : memref<16x4xf32, #tpu.memory_space<vmem>>, vector<16x1xf32>
    %cst_29 = arith.constant dense<0xFF800000> : vector<16xf32>
    %50 = vector.multi_reduction <maximumf>, %48, %cst_29 [1] : vector<16x16xf32> to vector<16xf32>
    %51 = vector.shape_cast %50 : vector<16xf32> to vector<16x1xf32>
    %52 = arith.maximumf %49, %51 : vector<16x1xf32>
    %53 = arith.subf %49, %52 : vector<16x1xf32>
    %54 = math.exp %53 : vector<16x1xf32>
    %55 = vector.broadcast %52 : vector<16x1xf32> to vector<16x16xf32>
    %56 = arith.subf %48, %55 : vector<16x16xf32>
    %57 = math.exp %56 : vector<16x16xf32>
    %c0_30 = arith.constant 0 : index
    %c1_31 = arith.constant 1 : index
    %58 = vector.load %arg9[%c0_30, %c1_31] : memref<16x4xf32, #tpu.memory_space<vmem>>, vector<16x1xf32>
    %59 = arith.mulf %54, %58 : vector<16x1xf32>
    %cst_32 = arith.constant dense<0.000000e+00> : vector<16xf32>
    %60 = vector.multi_reduction <add>, %57, %cst_32 [1] : vector<16x16xf32> to vector<16xf32>
    %61 = vector.shape_cast %60 : vector<16xf32> to vector<16x1xf32>
    %62 = arith.addf %59, %61 : vector<16x1xf32>
    %c0_33 = arith.constant 0 : index
    %c1_34 = arith.constant 1 : index
    %63 = vector.load %arg9[%c0_33, %c1_34] : memref<16x4xf32, #tpu.memory_space<vmem>>, vector<16x1xf32>
    tpu.vector_store %arg9[%c0_33, %c1_34], %62 {strides = array<i32>} : memref<16x4xf32, #tpu.memory_space<vmem>>, vector<16x1xf32>,
    %c0_35 = arith.constant 0 : index
    %c8 = arith.constant 8 : index
    %64 = vector.load %arg7[%c0_35, %c8] : memref<16x32xf32, #tpu.memory_space<vmem>>, vector<16x8xf32>
    %65 = vector.broadcast %54 : vector<16x1xf32> to vector<16x8xf32>
    %66 = arith.mulf %65, %64 : vector<16x8xf32>
    %67 = arith.truncf %57 : vector<16x16xf32> to vector<16x16xbf16>
    %cst_36 = arith.constant dense<0.000000e+00> : vector<16x8xf32>
    %68 = tpu.matmul %67, %45, %cst_36 {dimension_numbers = #tpu.dot_dimension_numbers<[1], [0], [0], [1], [0, 0, 1, 1], [], []>} : vector<16x16xbf16>, vector<16x8xbf16>, vector<16x8xf32> -> vector<16x8xf32>
    %69 = arith.addf %66, %68 : vector<16x8xf32>
    %c0_37 = arith.constant 0 : index
    %c8_38 = arith.constant 8 : index
    %70 = vector.load %arg7[%c0_37, %c8_38] : memref<16x32xf32, #tpu.memory_space<vmem>>, vector<16x8xf32>
    tpu.vector_store %arg7[%c0_37, %c8_38], %69 {strides = array<i32>} : memref<16x32xf32, #tpu.memory_space<vmem>>, vector<16x8xf32>,
    %c0_39 = arith.constant 0 : index
    %c1_40 = arith.constant 1 : index
    %71 = vector.load %arg8[%c0_39, %c1_40] : memref<16x4xf32, #tpu.memory_space<vmem>>, vector<16x1xf32>
    tpu.vector_store %arg8[%c0_39, %c1_40], %52 {strides = array<i32>} : memref<16x4xf32, #tpu.memory_space<vmem>>, vector<16x1xf32>,
    %72 = vector.extract_strided_slice %11 {offsets = [0, 16], sizes = [16, 8], strides = [1, 1]} : vector<16x32xbf16> to vector<16x8xbf16>
    %73 = vector.extract_strided_slice %13 {offsets = [0, 16], sizes = [16, 8], strides = [1, 1]} : vector<16x64xbf16> to vector<16x8xbf16>
    %74 = vector.extract_strided_slice %13 {offsets = [0, 48], sizes = [16, 8], strides = [1, 1]} : vector<16x64xbf16> to vector<16x8xbf16>
    %cst_41 = arith.constant dense<0.000000e+00> : vector<16x16xf32>
    %75 = tpu.matmul %72, %73, %cst_41 {dimension_numbers = #tpu.dot_dimension_numbers<[1], [1], [0], [0], [0, 0, 1, 0], [], []>} : vector<16x8xbf16>, vector<16x8xbf16>, vector<16x16xf32> -> vector<16x16xf32>
    %76 = vector.broadcast %9 : vector<1x16xf32> to vector<16x16xf32>
    %77 = arith.addf %75, %76 : vector<16x16xf32>
    %c0_42 = arith.constant 0 : index
    %c2 = arith.constant 2 : index
    %78 = vector.load %arg8[%c0_42, %c2] : memref<16x4xf32, #tpu.memory_space<vmem>>, vector<16x1xf32>
    %cst_43 = arith.constant dense<0xFF800000> : vector<16xf32>
    %79 = vector.multi_reduction <maximumf>, %77, %cst_43 [1] : vector<16x16xf32> to vector<16xf32>
    %80 = vector.shape_cast %79 : vector<16xf32> to vector<16x1xf32>
    %81 = arith.maximumf %78, %80 : vector<16x1xf32>
    %82 = arith.subf %78, %81 : vector<16x1xf32>
    %83 = math.exp %82 : vector<16x1xf32>
    %84 = vector.broadcast %81 : vector<16x1xf32> to vector<16x16xf32>
    %85 = arith.subf %77, %84 : vector<16x16xf32>
    %86 = math.exp %85 : vector<16x16xf32>
    %c0_44 = arith.constant 0 : index
    %c2_45 = arith.constant 2 : index
    %87 = vector.load %arg9[%c0_44, %c2_45] : memref<16x4xf32, #tpu.memory_space<vmem>>, vector<16x1xf32>
    %88 = arith.mulf %83, %87 : vector<16x1xf32>
    %cst_46 = arith.constant dense<0.000000e+00> : vector<16xf32>
    %89 = vector.multi_reduction <add>, %86, %cst_46 [1] : vector<16x16xf32> to vector<16xf32>
    %90 = vector.shape_cast %89 : vector<16xf32> to vector<16x1xf32>
    %91 = arith.addf %88, %90 : vector<16x1xf32>
    %c0_47 = arith.constant 0 : index
    %c2_48 = arith.constant 2 : index
    %92 = vector.load %arg9[%c0_47, %c2_48] : memref<16x4xf32, #tpu.memory_space<vmem>>, vector<16x1xf32>
    tpu.vector_store %arg9[%c0_47, %c2_48], %91 {strides = array<i32>} : memref<16x4xf32, #tpu.memory_space<vmem>>, vector<16x1xf32>,
    %c0_49 = arith.constant 0 : index
    %c16 = arith.constant 16 : index
    %93 = vector.load %arg7[%c0_49, %c16] : memref<16x32xf32, #tpu.memory_space<vmem>>, vector<16x8xf32>
    %94 = vector.broadcast %83 : vector<16x1xf32> to vector<16x8xf32>
    %95 = arith.mulf %94, %93 : vector<16x8xf32>
    %96 = arith.truncf %86 : vector<16x16xf32> to vector<16x16xbf16>
    %cst_50 = arith.constant dense<0.000000e+00> : vector<16x8xf32>
    %97 = tpu.matmul %96, %74, %cst_50 {dimension_numbers = #tpu.dot_dimension_numbers<[1], [0], [0], [1], [0, 0, 1, 1], [], []>} : vector<16x16xbf16>, vector<16x8xbf16>, vector<16x8xf32> -> vector<16x8xf32>
    %98 = arith.addf %95, %97 : vector<16x8xf32>
    %c0_51 = arith.constant 0 : index
    %c16_52 = arith.constant 16 : index
    %99 = vector.load %arg7[%c0_51, %c16_52] : memref<16x32xf32, #tpu.memory_space<vmem>>, vector<16x8xf32>
    tpu.vector_store %arg7[%c0_51, %c16_52], %98 {strides = array<i32>} : memref<16x32xf32, #tpu.memory_space<vmem>>, vector<16x8xf32>,
    %c0_53 = arith.constant 0 : index
    %c2_54 = arith.constant 2 : index
    %100 = vector.load %arg8[%c0_53, %c2_54] : memref<16x4xf32, #tpu.memory_space<vmem>>, vector<16x1xf32>
    tpu.vector_store %arg8[%c0_53, %c2_54], %81 {strides = array<i32>} : memref<16x4xf32, #tpu.memory_space<vmem>>, vector<16x1xf32>,
    %101 = vector.extract_strided_slice %11 {offsets = [0, 24], sizes = [16, 8], strides = [1, 1]} : vector<16x32xbf16> to vector<16x8xbf16>
    %102 = vector.extract_strided_slice %13 {offsets = [0, 24], sizes = [16, 8], strides = [1, 1]} : vector<16x64xbf16> to vector<16x8xbf16>
    %103 = vector.extract_strided_slice %13 {offsets = [0, 56], sizes = [16, 8], strides = [1, 1]} : vector<16x64xbf16> to vector<16x8xbf16>
    %cst_55 = arith.constant dense<0.000000e+00> : vector<16x16xf32>
    %104 = tpu.matmul %101, %102, %cst_55 {dimension_numbers = #tpu.dot_dimension_numbers<[1], [1], [0], [0], [0, 0, 1, 0], [], []>} : vector<16x8xbf16>, vector<16x8xbf16>, vector<16x16xf32> -> vector<16x16xf32>
    %105 = vector.broadcast %9 : vector<1x16xf32> to vector<16x16xf32>
    %106 = arith.addf %104, %105 : vector<16x16xf32>
    %c0_56 = arith.constant 0 : index
    %c3 = arith.constant 3 : index
    %107 = vector.load %arg8[%c0_56, %c3] : memref<16x4xf32, #tpu.memory_space<vmem>>, vector<16x1xf32>
    %cst_57 = arith.constant dense<0xFF800000> : vector<16xf32>
    %108 = vector.multi_reduction <maximumf>, %106, %cst_57 [1] : vector<16x16xf32> to vector<16xf32>
    %109 = vector.shape_cast %108 : vector<16xf32> to vector<16x1xf32>
    %110 = arith.maximumf %107, %109 : vector<16x1xf32>
    %111 = arith.subf %107, %110 : vector<16x1xf32>
    %112 = math.exp %111 : vector<16x1xf32>
    %113 = vector.broadcast %110 : vector<16x1xf32> to vector<16x16xf32>
    %114 = arith.subf %106, %113 : vector<16x16xf32>
    %115 = math.exp %114 : vector<16x16xf32>
    %c0_58 = arith.constant 0 : index
    %c3_59 = arith.constant 3 : index
    %116 = vector.load %arg9[%c0_58, %c3_59] : memref<16x4xf32, #tpu.memory_space<vmem>>, vector<16x1xf32>
    %117 = arith.mulf %112, %116 : vector<16x1xf32>
    %cst_60 = arith.constant dense<0.000000e+00> : vector<16xf32>
    %118 = vector.multi_reduction <add>, %115, %cst_60 [1] : vector<16x16xf32> to vector<16xf32>
    %119 = vector.shape_cast %118 : vector<16xf32> to vector<16x1xf32>
    %120 = arith.addf %117, %119 : vector<16x1xf32>
    %c0_61 = arith.constant 0 : index
    %c3_62 = arith.constant 3 : index
    %121 = vector.load %arg9[%c0_61, %c3_62] : memref<16x4xf32, #tpu.memory_space<vmem>>, vector<16x1xf32>
    tpu.vector_store %arg9[%c0_61, %c3_62], %120 {strides = array<i32>} : memref<16x4xf32, #tpu.memory_space<vmem>>, vector<16x1xf32>,
    %c0_63 = arith.constant 0 : index
    %c24 = arith.constant 24 : index
    %122 = vector.load %arg7[%c0_63, %c24] : memref<16x32xf32, #tpu.memory_space<vmem>>, vector<16x8xf32>
    %123 = vector.broadcast %112 : vector<16x1xf32> to vector<16x8xf32>
    %124 = arith.mulf %123, %122 : vector<16x8xf32>
    %125 = arith.truncf %115 : vector<16x16xf32> to vector<16x16xbf16>
    %cst_64 = arith.constant dense<0.000000e+00> : vector<16x8xf32>
    %126 = tpu.matmul %125, %103, %cst_64 {dimension_numbers = #tpu.dot_dimension_numbers<[1], [0], [0], [1], [0, 0, 1, 1], [], []>} : vector<16x16xbf16>, vector<16x8xbf16>, vector<16x8xf32> -> vector<16x8xf32>
    %127 = arith.addf %124, %126 : vector<16x8xf32>
    %c0_65 = arith.constant 0 : index
    %c24_66 = arith.constant 24 : index
    %128 = vector.load %arg7[%c0_65, %c24_66] : memref<16x32xf32, #tpu.memory_space<vmem>>, vector<16x8xf32>
    tpu.vector_store %arg7[%c0_65, %c24_66], %127 {strides = array<i32>} : memref<16x32xf32, #tpu.memory_space<vmem>>, vector<16x8xf32>,
    %c0_67 = arith.constant 0 : index
    %c3_68 = arith.constant 3 : index
    %129 = vector.load %arg8[%c0_67, %c3_68] : memref<16x4xf32, #tpu.memory_space<vmem>>, vector<16x1xf32>
    tpu.vector_store %arg8[%c0_67, %c3_68], %110 {strides = array<i32>} : memref<16x4xf32, #tpu.memory_space<vmem>>, vector<16x1xf32>,
    %c0_i32_69 = arith.constant 0 : i32
    %130 = arith.cmpi eq, %arg2, %c0_i32_69 : i32
    %131 = arith.extui %130 : i1 to i32
    %c0_i32_70 = arith.constant 0 : i32
    %132 = arith.cmpi ne, %131, %c0_i32_70 : i32
    scf.if %132 {
      %c0_71 = arith.constant 0 : index
      %c0_72 = arith.constant 0 : index
      %133 = vector.load %arg9[%c0_71, %c0_72] : memref<16x4xf32, #tpu.memory_space<vmem>>, vector<16x4xf32>
      %134 = tpu.reciprocal %133 {approx = true} : vector<16x4xf32> -> vector<16x4xf32>
      %c0_73 = arith.constant 0 : index
      %c0_74 = arith.constant 0 : index
      %135 = vector.load %arg7[%c0_73, %c0_74] : memref<16x32xf32, #tpu.memory_space<vmem>>, vector<16x8xf32>
      %136 = vector.extract_strided_slice %134 {offsets = [0, 0], sizes = [16, 1], strides = [1, 1]} : vector<16x4xf32> to vector<16x1xf32>
      %137 = vector.broadcast %136 : vector<16x1xf32> to vector<16x8xf32>
      %138 = arith.mulf %135, %137 : vector<16x8xf32>
      %c0_75 = arith.constant 0 : index
      %c0_76 = arith.constant 0 : index
      %139 = vector.load %arg7[%c0_75, %c0_76] : memref<16x32xf32, #tpu.memory_space<vmem>>, vector<16x8xf32>
      tpu.vector_store %arg7[%c0_75, %c0_76], %138 {strides = array<i32>} : memref<16x32xf32, #tpu.memory_space<vmem>>, vector<16x8xf32>,
      %c0_77 = arith.constant 0 : index
      %c8_78 = arith.constant 8 : index
      %140 = vector.load %arg7[%c0_77, %c8_78] : memref<16x32xf32, #tpu.memory_space<vmem>>, vector<16x8xf32>
      %141 = vector.extract_strided_slice %134 {offsets = [0, 1], sizes = [16, 1], strides = [1, 1]} : vector<16x4xf32> to vector<16x1xf32>
      %142 = vector.broadcast %141 : vector<16x1xf32> to vector<16x8xf32>
      %143 = arith.mulf %140, %142 : vector<16x8xf32>
      %c0_79 = arith.constant 0 : index
      %c8_80 = arith.constant 8 : index
      %144 = vector.load %arg7[%c0_79, %c8_80] : memref<16x32xf32, #tpu.memory_space<vmem>>, vector<16x8xf32>
      tpu.vector_store %arg7[%c0_79, %c8_80], %143 {strides = array<i32>} : memref<16x32xf32, #tpu.memory_space<vmem>>, vector<16x8xf32>,
      %c0_81 = arith.constant 0 : index
      %c16_82 = arith.constant 16 : index
      %145 = vector.load %arg7[%c0_81, %c16_82] : memref<16x32xf32, #tpu.memory_space<vmem>>, vector<16x8xf32>
      %146 = vector.extract_strided_slice %134 {offsets = [0, 2], sizes = [16, 1], strides = [1, 1]} : vector<16x4xf32> to vector<16x1xf32>
      %147 = vector.broadcast %146 : vector<16x1xf32> to vector<16x8xf32>
      %148 = arith.mulf %145, %147 : vector<16x8xf32>
      %c0_83 = arith.constant 0 : index
      %c16_84 = arith.constant 16 : index
      %149 = vector.load %arg7[%c0_83, %c16_84] : memref<16x32xf32, #tpu.memory_space<vmem>>, vector<16x8xf32>
      tpu.vector_store %arg7[%c0_83, %c16_84], %148 {strides = array<i32>} : memref<16x32xf32, #tpu.memory_space<vmem>>, vector<16x8xf32>,
      %c0_85 = arith.constant 0 : index
      %c24_86 = arith.constant 24 : index
      %150 = vector.load %arg7[%c0_85, %c24_86] : memref<16x32xf32, #tpu.memory_space<vmem>>, vector<16x8xf32>
      %151 = vector.extract_strided_slice %134 {offsets = [0, 3], sizes = [16, 1], strides = [1, 1]} : vector<16x4xf32> to vector<16x1xf32>
      %152 = vector.broadcast %151 : vector<16x1xf32> to vector<16x8xf32>
      %153 = arith.mulf %150, %152 : vector<16x8xf32>
      %c0_87 = arith.constant 0 : index
      %c24_88 = arith.constant 24 : index
      %154 = vector.load %arg7[%c0_87, %c24_88] : memref<16x32xf32, #tpu.memory_space<vmem>>, vector<16x8xf32>
      tpu.vector_store %arg7[%c0_87, %c24_88], %153 {strides = array<i32>} : memref<16x32xf32, #tpu.memory_space<vmem>>, vector<16x8xf32>,
      %c0_89 = arith.constant 0 : index
      %c0_90 = arith.constant 0 : index
      %155 = vector.load %arg7[%c0_89, %c0_90] : memref<16x32xf32, #tpu.memory_space<vmem>>, vector<16x32xf32>
      %156 = arith.truncf %155 : vector<16x32xf32> to vector<16x32xbf16>
      %c0_91 = arith.constant 0 : index
      %c0_92 = arith.constant 0 : index
      %c0_93 = arith.constant 0 : index
      %157 = vector.load %arg6[%c0_91, %c0_92, %c0_93] : memref<1x16x32xbf16, #tpu.memory_space<vmem>>, vector<1x16x32xbf16>
      %158 = vector.shape_cast %157 : vector<1x16x32xbf16> to vector<16x32xbf16>
      %159 = vector.shape_cast %156 : vector<16x32xbf16> to vector<1x16x32xbf16>
      tpu.vector_store %arg6[%c0_91, %c0_92, %c0_93], %159 {strides = array<i32>} : memref<1x16x32xbf16, #tpu.memory_space<vmem>>, vector<1x16x32xbf16>,
    } else {
    }
    return
  }
  func.func @transform_0(%arg0: i32, %arg1: i32, %arg2: i32) -> (i32, i32, i32) {
    %c0_i32 = arith.constant 0 : i32
    %c0_i32_0 = arith.constant 0 : i32
    return %arg0, %arg1, %c0_i32 : i32, i32, i32
  }
  func.func @transform_1(%arg0: i32, %arg1: i32, %arg2: i32) -> (i32, i32, i32) {
    %c0_i32 = arith.constant 0 : i32
    %c0_i32_0 = arith.constant 0 : i32
    return %arg0, %arg2, %c0_i32 : i32, i32, i32
  }
  func.func @transform_2(%arg0: i32, %arg1: i32, %arg2: i32) -> (i32, i32, i32) {
    %c0_i32 = arith.constant 0 : i32
    %c0_i32_0 = arith.constant 0 : i32
    return %arg0, %c0_i32, %arg2 : i32, i32, i32
  }
  func.func @transform_3(%arg0: i32, %arg1: i32, %arg2: i32) -> (i32, i32, i32) {
    %c0_i32 = arith.constant 0 : i32
    %c0_i32_0 = arith.constant 0 : i32
    return %arg0, %arg1, %c0_i32 : i32, i32, i32
  }
}

module attributes {stable_mosaic.version = 11 : i64} {
  func.func @_matmul_kernel(%arg0: i32, %arg1: i32, %arg2: i32, %arg3: memref<32x32xbf16, #tpu.memory_space<vmem>>, %arg4: memref<32x32xbf16, #tpu.memory_space<vmem>>, %arg5: memref<1x32xf32, #tpu.memory_space<vmem>>, %arg6: memref<32x32xf32, #tpu.memory_space<vmem>>, %arg7: memref<32x32xf32, #tpu.memory_space<vmem>>, %arg8: memref<32x32xf32, #tpu.memory_space<vmem>>) attributes {dimension_semantics = [#tpu.dimension_semantics<parallel>, #tpu.dimension_semantics<parallel>, #tpu.dimension_semantics<arbitrary>], iteration_bounds = array<i64: 1, 1, 1>, scalar_prefetch = 0 : i64, scratch_operands = 1 : i64, tpu.core_type = #tpu.core_type<tc>, window_params = [{transform_indices = @transform_0, window_bounds = array<i64: 32, 32>}, {transform_indices = @transform_1, window_bounds = array<i64: 32, 32>}, {transform_indices = @transform_2, window_bounds = array<i64: 1, 32>}, {transform_indices = @transform_3, window_bounds = array<i64: 32, 32>}, {transform_indices = @transform_4, window_bounds = array<i64: 32, 32>}]} {
    %c0_i32 = arith.constant 0 : i32
    %0 = arith.cmpi eq, %arg2, %c0_i32 : i32
    %1 = arith.extui %0 : i1 to i32
    %c0_i32_0 = arith.constant 0 : i32
    %2 = arith.cmpi ne, %1, %c0_i32_0 : i32
    scf.if %2 {
      %cst_10 = arith.constant 0.000000e+00 : f32
      %12 = vector.broadcast %cst_10 : f32 to vector<32x32xf32>
      %c0_11 = arith.constant 0 : index
      %c0_12 = arith.constant 0 : index
      %13 = vector.load %arg8[%c0_11, %c0_12] : memref<32x32xf32, #tpu.memory_space<vmem>>, vector<32x32xf32>
      tpu.vector_store %arg8[%c0_11, %c0_12], %12 {strides = array<i32>} : memref<32x32xf32, #tpu.memory_space<vmem>>, vector<32x32xf32>,
    } else {
    }
    %c0 = arith.constant 0 : index
    %c0_1 = arith.constant 0 : index
    %3 = vector.load %arg8[%c0, %c0_1] : memref<32x32xf32, #tpu.memory_space<vmem>>, vector<32x32xf32>
    %c0_2 = arith.constant 0 : index
    %c0_3 = arith.constant 0 : index
    %4 = vector.load %arg3[%c0_2, %c0_3] : memref<32x32xbf16, #tpu.memory_space<vmem>>, vector<32x32xbf16>
    %c0_4 = arith.constant 0 : index
    %c0_5 = arith.constant 0 : index
    %5 = vector.load %arg4[%c0_4, %c0_5] : memref<32x32xbf16, #tpu.memory_space<vmem>>, vector<32x32xbf16>
    %cst = arith.constant dense<0.000000e+00> : vector<32x32xf32>
    %6 = tpu.matmul %4, %5, %cst {dimension_numbers = #tpu.dot_dimension_numbers<[1], [0], [0], [1], [0, 0, 1, 1], [], []>} : vector<32x32xbf16>, vector<32x32xbf16>, vector<32x32xf32> -> vector<32x32xf32>
    %7 = arith.addf %3, %6 : vector<32x32xf32>
    %c0_6 = arith.constant 0 : index
    %c0_7 = arith.constant 0 : index
    %8 = vector.load %arg8[%c0_6, %c0_7] : memref<32x32xf32, #tpu.memory_space<vmem>>, vector<32x32xf32>
    tpu.vector_store %arg8[%c0_6, %c0_7], %7 {strides = array<i32>} : memref<32x32xf32, #tpu.memory_space<vmem>>, vector<32x32xf32>,
    %c0_i32_8 = arith.constant 0 : i32
    %9 = arith.cmpi eq, %arg2, %c0_i32_8 : i32
    %10 = arith.extui %9 : i1 to i32
    %c0_i32_9 = arith.constant 0 : i32
    %11 = arith.cmpi ne, %10, %c0_i32_9 : i32
    scf.if %11 {
      %c0_10 = arith.constant 0 : index
      %c0_11 = arith.constant 0 : index
      %12 = vector.load %arg8[%c0_10, %c0_11] : memref<32x32xf32, #tpu.memory_space<vmem>>, vector<32x32xf32>
      %c0_12 = arith.constant 0 : index
      %c0_13 = arith.constant 0 : index
      %13 = vector.load %arg5[%c0_12, %c0_13] : memref<1x32xf32, #tpu.memory_space<vmem>>, vector<1x32xf32>
      %14 = vector.broadcast %13 : vector<1x32xf32> to vector<32x32xf32>
      %15 = arith.addf %12, %14 : vector<32x32xf32>
      %c0_14 = arith.constant 0 : index
      %c0_15 = arith.constant 0 : index
      %16 = vector.load %arg6[%c0_14, %c0_15] : memref<32x32xf32, #tpu.memory_space<vmem>>, vector<32x32xf32>
      %17 = arith.addf %15, %16 : vector<32x32xf32>
      %c0_16 = arith.constant 0 : index
      %c0_17 = arith.constant 0 : index
      %18 = vector.load %arg7[%c0_16, %c0_17] : memref<32x32xf32, #tpu.memory_space<vmem>>, vector<32x32xf32>
      tpu.vector_store %arg7[%c0_16, %c0_17], %17 {strides = array<i32>} : memref<32x32xf32, #tpu.memory_space<vmem>>, vector<32x32xf32>,
    } else {
    }
    return
  }
  func.func @transform_0(%arg0: i32, %arg1: i32, %arg2: i32) -> (i32, i32) {
    %c0_i32 = arith.constant 0 : i32
    return %arg0, %arg2 : i32, i32
  }
  func.func @transform_1(%arg0: i32, %arg1: i32, %arg2: i32) -> (i32, i32) {
    %c0_i32 = arith.constant 0 : i32
    return %arg2, %arg1 : i32, i32
  }
  func.func @transform_2(%arg0: i32, %arg1: i32, %arg2: i32) -> (i32, i32) {
    %c0_i32 = arith.constant 0 : i32
    %c0_i32_0 = arith.constant 0 : i32
    return %c0_i32, %arg1 : i32, i32
  }
  func.func @transform_3(%arg0: i32, %arg1: i32, %arg2: i32) -> (i32, i32) {
    %c0_i32 = arith.constant 0 : i32
    return %arg0, %arg1 : i32, i32
  }
  func.func @transform_4(%arg0: i32, %arg1: i32, %arg2: i32) -> (i32, i32) {
    %c0_i32 = arith.constant 0 : i32
    return %arg0, %arg1 : i32, i32
  }
}

module attributes {stable_mosaic.version = 11 : i64} {
  func.func @_matmul_kernel(%arg0: i32, %arg1: i32, %arg2: i32, %arg3: memref<32x32xbf16, #tpu.memory_space<vmem>>, %arg4: memref<32x128xbf16, #tpu.memory_space<vmem>>, %arg5: memref<1x128xf32, #tpu.memory_space<vmem>>, %arg6: memref<32x128xbf16, #tpu.memory_space<vmem>>, %arg7: memref<32x128xf32, #tpu.memory_space<vmem>>) attributes {dimension_semantics = [#tpu.dimension_semantics<parallel>, #tpu.dimension_semantics<parallel>, #tpu.dimension_semantics<arbitrary>], iteration_bounds = array<i64: 1, 1, 1>, scalar_prefetch = 0 : i64, scratch_operands = 1 : i64, tpu.core_type = #tpu.core_type<tc>, window_params = [{transform_indices = @transform_0, window_bounds = array<i64: 32, 32>}, {transform_indices = @transform_1, window_bounds = array<i64: 32, 128>}, {transform_indices = @transform_2, window_bounds = array<i64: 1, 128>}, {transform_indices = @transform_3, window_bounds = array<i64: 32, 128>}]} {
    %c0_i32 = arith.constant 0 : i32
    %0 = arith.cmpi eq, %arg2, %c0_i32 : i32
    %1 = arith.extui %0 : i1 to i32
    %c0_i32_0 = arith.constant 0 : i32
    %2 = arith.cmpi ne, %1, %c0_i32_0 : i32
    scf.if %2 {
      %cst_10 = arith.constant 0.000000e+00 : f32
      %12 = vector.broadcast %cst_10 : f32 to vector<32x128xf32>
      %c0_11 = arith.constant 0 : index
      %c0_12 = arith.constant 0 : index
      %13 = vector.load %arg7[%c0_11, %c0_12] : memref<32x128xf32, #tpu.memory_space<vmem>>, vector<32x128xf32>
      tpu.vector_store %arg7[%c0_11, %c0_12], %12 {strides = array<i32>} : memref<32x128xf32, #tpu.memory_space<vmem>>, vector<32x128xf32>,
    } else {
    }
    %c0 = arith.constant 0 : index
    %c0_1 = arith.constant 0 : index
    %3 = vector.load %arg7[%c0, %c0_1] : memref<32x128xf32, #tpu.memory_space<vmem>>, vector<32x128xf32>
    %c0_2 = arith.constant 0 : index
    %c0_3 = arith.constant 0 : index
    %4 = vector.load %arg3[%c0_2, %c0_3] : memref<32x32xbf16, #tpu.memory_space<vmem>>, vector<32x32xbf16>
    %c0_4 = arith.constant 0 : index
    %c0_5 = arith.constant 0 : index
    %5 = vector.load %arg4[%c0_4, %c0_5] : memref<32x128xbf16, #tpu.memory_space<vmem>>, vector<32x128xbf16>
    %cst = arith.constant dense<0.000000e+00> : vector<32x128xf32>
    %6 = tpu.matmul %4, %5, %cst {dimension_numbers = #tpu.dot_dimension_numbers<[1], [0], [0], [1], [0, 0, 1, 1], [], []>} : vector<32x32xbf16>, vector<32x128xbf16>, vector<32x128xf32> -> vector<32x128xf32>
    %7 = arith.addf %3, %6 : vector<32x128xf32>
    %c0_6 = arith.constant 0 : index
    %c0_7 = arith.constant 0 : index
    %8 = vector.load %arg7[%c0_6, %c0_7] : memref<32x128xf32, #tpu.memory_space<vmem>>, vector<32x128xf32>
    tpu.vector_store %arg7[%c0_6, %c0_7], %7 {strides = array<i32>} : memref<32x128xf32, #tpu.memory_space<vmem>>, vector<32x128xf32>,
    %c0_i32_8 = arith.constant 0 : i32
    %9 = arith.cmpi eq, %arg2, %c0_i32_8 : i32
    %10 = arith.extui %9 : i1 to i32
    %c0_i32_9 = arith.constant 0 : i32
    %11 = arith.cmpi ne, %10, %c0_i32_9 : i32
    scf.if %11 {
      %c0_10 = arith.constant 0 : index
      %c0_11 = arith.constant 0 : index
      %12 = vector.load %arg7[%c0_10, %c0_11] : memref<32x128xf32, #tpu.memory_space<vmem>>, vector<32x128xf32>
      %c0_12 = arith.constant 0 : index
      %c0_13 = arith.constant 0 : index
      %13 = vector.load %arg5[%c0_12, %c0_13] : memref<1x128xf32, #tpu.memory_space<vmem>>, vector<1x128xf32>
      %14 = vector.broadcast %13 : vector<1x128xf32> to vector<32x128xf32>
      %15 = arith.addf %12, %14 : vector<32x128xf32>
      %cst_14 = arith.constant 0.000000e+00 : f32
      %16 = vector.broadcast %cst_14 : f32 to vector<32x128xf32>
      %17 = arith.maximumf %15, %16 : vector<32x128xf32>
      %18 = arith.truncf %17 : vector<32x128xf32> to vector<32x128xbf16>
      %c0_15 = arith.constant 0 : index
      %c0_16 = arith.constant 0 : index
      %19 = vector.load %arg6[%c0_15, %c0_16] : memref<32x128xbf16, #tpu.memory_space<vmem>>, vector<32x128xbf16>
      tpu.vector_store %arg6[%c0_15, %c0_16], %18 {strides = array<i32>} : memref<32x128xbf16, #tpu.memory_space<vmem>>, vector<32x128xbf16>,
    } else {
    }
    return
  }
  func.func @transform_0(%arg0: i32, %arg1: i32, %arg2: i32) -> (i32, i32) {
    %c0_i32 = arith.constant 0 : i32
    return %arg0, %arg2 : i32, i32
  }
  func.func @transform_1(%arg0: i32, %arg1: i32, %arg2: i32) -> (i32, i32) {
    %c0_i32 = arith.constant 0 : i32
    return %arg2, %arg1 : i32, i32
  }
  func.func @transform_2(%arg0: i32, %arg1: i32, %arg2: i32) -> (i32, i32) {
    %c0_i32 = arith.constant 0 : i32
    %c0_i32_0 = arith.constant 0 : i32
    return %c0_i32, %arg1 : i32, i32
  }
  func.func @transform_3(%arg0: i32, %arg1: i32, %arg2: i32) -> (i32, i32) {
    %c0_i32 = arith.constant 0 : i32
    return %arg0, %arg1 : i32, i32
  }
}

module attributes {stable_mosaic.version = 11 : i64} {
  func.func @_matmul_kernel(%arg0: i32, %arg1: i32, %arg2: i32, %arg3: memref<32x128xbf16, #tpu.memory_space<vmem>>, %arg4: memref<128x32xbf16, #tpu.memory_space<vmem>>, %arg5: memref<1x32xf32, #tpu.memory_space<vmem>>, %arg6: memref<32x32xf32, #tpu.memory_space<vmem>>, %arg7: memref<32x32xf32, #tpu.memory_space<vmem>>, %arg8: memref<32x32xf32, #tpu.memory_space<vmem>>) attributes {dimension_semantics = [#tpu.dimension_semantics<parallel>, #tpu.dimension_semantics<parallel>, #tpu.dimension_semantics<arbitrary>], iteration_bounds = array<i64: 1, 1, 1>, scalar_prefetch = 0 : i64, scratch_operands = 1 : i64, tpu.core_type = #tpu.core_type<tc>, window_params = [{transform_indices = @transform_0, window_bounds = array<i64: 32, 128>}, {transform_indices = @transform_1, window_bounds = array<i64: 128, 32>}, {transform_indices = @transform_2, window_bounds = array<i64: 1, 32>}, {transform_indices = @transform_3, window_bounds = array<i64: 32, 32>}, {transform_indices = @transform_4, window_bounds = array<i64: 32, 32>}]} {
    %c0_i32 = arith.constant 0 : i32
    %0 = arith.cmpi eq, %arg2, %c0_i32 : i32
    %1 = arith.extui %0 : i1 to i32
    %c0_i32_0 = arith.constant 0 : i32
    %2 = arith.cmpi ne, %1, %c0_i32_0 : i32
    scf.if %2 {
      %cst_10 = arith.constant 0.000000e+00 : f32
      %12 = vector.broadcast %cst_10 : f32 to vector<32x32xf32>
      %c0_11 = arith.constant 0 : index
      %c0_12 = arith.constant 0 : index
      %13 = vector.load %arg8[%c0_11, %c0_12] : memref<32x32xf32, #tpu.memory_space<vmem>>, vector<32x32xf32>
      tpu.vector_store %arg8[%c0_11, %c0_12], %12 {strides = array<i32>} : memref<32x32xf32, #tpu.memory_space<vmem>>, vector<32x32xf32>,
    } else {
    }
    %c0 = arith.constant 0 : index
    %c0_1 = arith.constant 0 : index
    %3 = vector.load %arg8[%c0, %c0_1] : memref<32x32xf32, #tpu.memory_space<vmem>>, vector<32x32xf32>
    %c0_2 = arith.constant 0 : index
    %c0_3 = arith.constant 0 : index
    %4 = vector.load %arg3[%c0_2, %c0_3] : memref<32x128xbf16, #tpu.memory_space<vmem>>, vector<32x128xbf16>
    %c0_4 = arith.constant 0 : index
    %c0_5 = arith.constant 0 : index
    %5 = vector.load %arg4[%c0_4, %c0_5] : memref<128x32xbf16, #tpu.memory_space<vmem>>, vector<128x32xbf16>
    %cst = arith.constant dense<0.000000e+00> : vector<32x32xf32>
    %6 = tpu.matmul %4, %5, %cst {dimension_numbers = #tpu.dot_dimension_numbers<[1], [0], [0], [1], [0, 0, 1, 1], [], []>} : vector<32x128xbf16>, vector<128x32xbf16>, vector<32x32xf32> -> vector<32x32xf32>
    %7 = arith.addf %3, %6 : vector<32x32xf32>
    %c0_6 = arith.constant 0 : index
    %c0_7 = arith.constant 0 : index
    %8 = vector.load %arg8[%c0_6, %c0_7] : memref<32x32xf32, #tpu.memory_space<vmem>>, vector<32x32xf32>
    tpu.vector_store %arg8[%c0_6, %c0_7], %7 {strides = array<i32>} : memref<32x32xf32, #tpu.memory_space<vmem>>, vector<32x32xf32>,
    %c0_i32_8 = arith.constant 0 : i32
    %9 = arith.cmpi eq, %arg2, %c0_i32_8 : i32
    %10 = arith.extui %9 : i1 to i32
    %c0_i32_9 = arith.constant 0 : i32
    %11 = arith.cmpi ne, %10, %c0_i32_9 : i32
    scf.if %11 {
      %c0_10 = arith.constant 0 : index
      %c0_11 = arith.constant 0 : index
      %12 = vector.load %arg8[%c0_10, %c0_11] : memref<32x32xf32, #tpu.memory_space<vmem>>, vector<32x32xf32>
      %c0_12 = arith.constant 0 : index
      %c0_13 = arith.constant 0 : index
      %13 = vector.load %arg5[%c0_12, %c0_13] : memref<1x32xf32, #tpu.memory_space<vmem>>, vector<1x32xf32>
      %14 = vector.broadcast %13 : vector<1x32xf32> to vector<32x32xf32>
      %15 = arith.addf %12, %14 : vector<32x32xf32>
      %c0_14 = arith.constant 0 : index
      %c0_15 = arith.constant 0 : index
      %16 = vector.load %arg6[%c0_14, %c0_15] : memref<32x32xf32, #tpu.memory_space<vmem>>, vector<32x32xf32>
      %17 = arith.addf %15, %16 : vector<32x32xf32>
      %c0_16 = arith.constant 0 : index
      %c0_17 = arith.constant 0 : index
      %18 = vector.load %arg7[%c0_16, %c0_17] : memref<32x32xf32, #tpu.memory_space<vmem>>, vector<32x32xf32>
      tpu.vector_store %arg7[%c0_16, %c0_17], %17 {strides = array<i32>} : memref<32x32xf32, #tpu.memory_space<vmem>>, vector<32x32xf32>,
    } else {
    }
    return
  }
  func.func @transform_0(%arg0: i32, %arg1: i32, %arg2: i32) -> (i32, i32) {
    %c0_i32 = arith.constant 0 : i32
    return %arg0, %arg2 : i32, i32
  }
  func.func @transform_1(%arg0: i32, %arg1: i32, %arg2: i32) -> (i32, i32) {
    %c0_i32 = arith.constant 0 : i32
    return %arg2, %arg1 : i32, i32
  }
  func.func @transform_2(%arg0: i32, %arg1: i32, %arg2: i32) -> (i32, i32) {
    %c0_i32 = arith.constant 0 : i32
    %c0_i32_0 = arith.constant 0 : i32
    return %c0_i32, %arg1 : i32, i32
  }
  func.func @transform_3(%arg0: i32, %arg1: i32, %arg2: i32) -> (i32, i32) {
    %c0_i32 = arith.constant 0 : i32
    return %arg0, %arg1 : i32, i32
  }
  func.func @transform_4(%arg0: i32, %arg1: i32, %arg2: i32) -> (i32, i32) {
    %c0_i32 = arith.constant 0 : i32
    return %arg0, %arg1 : i32, i32
  }
}

module attributes {stable_mosaic.version = 11 : i64} {
  func.func @_flash_attn_kernel(%arg0: i32, %arg1: i32, %arg2: i32, %arg3: memref<1x16x32xbf16, #tpu.memory_space<vmem>>, %arg4: memref<1x16x64xbf16, #tpu.memory_space<vmem>>, %arg5: memref<1x16x16xf32, #tpu.memory_space<vmem>>, %arg6: memref<1x16x32xbf16, #tpu.memory_space<vmem>>, %arg7: memref<16x32xf32, #tpu.memory_space<vmem>>, %arg8: memref<16x4xf32, #tpu.memory_space<vmem>>, %arg9: memref<16x4xf32, #tpu.memory_space<vmem>>) attributes {dimension_semantics = [#tpu.dimension_semantics<parallel>, #tpu.dimension_semantics<parallel>, #tpu.dimension_semantics<arbitrary>], iteration_bounds = array<i64: 2, 1, 1>, scalar_prefetch = 0 : i64, scratch_operands = 3 : i64, tpu.core_type = #tpu.core_type<tc>, window_params = [{transform_indices = @transform_0, window_bounds = array<i64: 1, 16, 32>}, {transform_indices = @transform_1, window_bounds = array<i64: 1, 16, 64>}, {transform_indices = @transform_2, window_bounds = array<i64: 1, 16, 16>}, {transform_indices = @transform_3, window_bounds = array<i64: 1, 16, 32>}]} {
    %c0_i32 = arith.constant 0 : i32
    %0 = arith.cmpi eq, %arg2, %c0_i32 : i32
    %1 = arith.extui %0 : i1 to i32
    %c0_i32_0 = arith.constant 0 : i32
    %2 = arith.cmpi ne, %1, %c0_i32_0 : i32
    scf.if %2 {
      %cst_71 = arith.constant 0xFF800000 : f32
      %129 = vector.broadcast %cst_71 : f32 to vector<16x4xf32>
      %c0_72 = arith.constant 0 : index
      %c0_73 = arith.constant 0 : index
      %130 = vector.load %arg8[%c0_72, %c0_73] : memref<16x4xf32, #tpu.memory_space<vmem>>, vector<16x4xf32>
      tpu.vector_store %arg8[%c0_72, %c0_73], %129 {strides = array<i32>} : memref<16x4xf32, #tpu.memory_space<vmem>>, vector<16x4xf32>,
      %cst_74 = arith.constant 0.000000e+00 : f32
      %131 = vector.broadcast %cst_74 : f32 to vector<16x4xf32>
      %c0_75 = arith.constant 0 : index
      %c0_76 = arith.constant 0 : index
      %132 = vector.load %arg9[%c0_75, %c0_76] : memref<16x4xf32, #tpu.memory_space<vmem>>, vector<16x4xf32>
      tpu.vector_store %arg9[%c0_75, %c0_76], %131 {strides = array<i32>} : memref<16x4xf32, #tpu.memory_space<vmem>>, vector<16x4xf32>,
      %cst_77 = arith.constant 0.000000e+00 : f32
      %133 = vector.broadcast %cst_77 : f32 to vector<16x32xf32>
      %c0_78 = arith.constant 0 : index
      %c0_79 = arith.constant 0 : index
      %134 = vector.load %arg7[%c0_78, %c0_79] : memref<16x32xf32, #tpu.memory_space<vmem>>, vector<16x32xf32>
      tpu.vector_store %arg7[%c0_78, %c0_79], %133 {strides = array<i32>} : memref<16x32xf32, #tpu.memory_space<vmem>>, vector<16x32xf32>,
    } else {
    }
    %c0 = arith.constant 0 : index
    %c0_1 = arith.constant 0 : index
    %c0_2 = arith.constant 0 : index
    %3 = vector.load %arg5[%c0, %c0_1, %c0_2] : memref<1x16x16xf32, #tpu.memory_space<vmem>>, vector<1x16x16xf32>
    %4 = vector.shape_cast %3 : vector<1x16x16xf32> to vector<16x16xf32>
    %cst = arith.constant 0.000000e+00 : f32
    %5 = vector.broadcast %cst : f32 to vector<16x16xf32>
    %6 = arith.cmpf ogt, %4, %5 : vector<16x16xf32>
    %cst_3 = arith.constant 0.000000e+00 : f32
    %cst_4 = arith.constant -1.000000e+09 : f32
    %7 = vector.broadcast %cst_3 : f32 to vector<16x16xf32>
    %8 = vector.broadcast %cst_4 : f32 to vector<16x16xf32>
    %9 = arith.select %6, %7, %8 : vector<16x16xi1>, vector<16x16xf32>
    %c0_5 = arith.constant 0 : index
    %c0_6 = arith.constant 0 : index
    %c0_7 = arith.constant 0 : index
    %10 = vector.load %arg3[%c0_5, %c0_6, %c0_7] : memref<1x16x32xbf16, #tpu.memory_space<vmem>>, vector<1x16x32xbf16>
    %11 = vector.shape_cast %10 : vector<1x16x32xbf16> to vector<16x32xbf16>
    %c0_8 = arith.constant 0 : index
    %c0_9 = arith.constant 0 : index
    %c0_10 = arith.constant 0 : index
    %12 = vector.load %arg4[%c0_8, %c0_9, %c0_10] : memref<1x16x64xbf16, #tpu.memory_space<vmem>>, vector<1x16x64xbf16>
    %13 = vector.shape_cast %12 : vector<1x16x64xbf16> to vector<16x64xbf16>
    %14 = vector.extract_strided_slice %11 {offsets = [0, 0], sizes = [16, 8], strides = [1, 1]} : vector<16x32xbf16> to vector<16x8xbf16>
    %15 = vector.extract_strided_slice %13 {offsets = [0, 0], sizes = [16, 8], strides = [1, 1]} : vector<16x64xbf16> to vector<16x8xbf16>
    %16 = vector.extract_strided_slice %13 {offsets = [0, 32], sizes = [16, 8], strides = [1, 1]} : vector<16x64xbf16> to vector<16x8xbf16>
    %cst_11 = arith.constant dense<0.000000e+00> : vector<16x16xf32>
    %17 = tpu.matmul %14, %15, %cst_11 {dimension_numbers = #tpu.dot_dimension_numbers<[1], [1], [0], [0], [0, 0, 1, 0], [], []>} : vector<16x8xbf16>, vector<16x8xbf16>, vector<16x16xf32> -> vector<16x16xf32>
    %18 = arith.addf %17, %9 : vector<16x16xf32>
    %c0_12 = arith.constant 0 : index
    %c0_13 = arith.constant 0 : index
    %19 = vector.load %arg8[%c0_12, %c0_13] : memref<16x4xf32, #tpu.memory_space<vmem>>, vector<16x1xf32>
    %cst_14 = arith.constant dense<0xFF800000> : vector<16xf32>
    %20 = vector.multi_reduction <maximumf>, %18, %cst_14 [1] : vector<16x16xf32> to vector<16xf32>
    %21 = vector.shape_cast %20 : vector<16xf32> to vector<16x1xf32>
    %22 = arith.maximumf %19, %21 : vector<16x1xf32>
    %23 = arith.subf %19, %22 : vector<16x1xf32>
    %24 = math.exp %23 : vector<16x1xf32>
    %25 = vector.broadcast %22 : vector<16x1xf32> to vector<16x16xf32>
    %26 = arith.subf %18, %25 : vector<16x16xf32>
    %27 = math.exp %26 : vector<16x16xf32>
    %c0_15 = arith.constant 0 : index
    %c0_16 = arith.constant 0 : index
    %28 = vector.load %arg9[%c0_15, %c0_16] : memref<16x4xf32, #tpu.memory_space<vmem>>, vector<16x1xf32>
    %29 = arith.mulf %24, %28 : vector<16x1xf32>
    %cst_17 = arith.constant dense<0.000000e+00> : vector<16xf32>
    %30 = vector.multi_reduction <add>, %27, %cst_17 [1] : vector<16x16xf32> to vector<16xf32>
    %31 = vector.shape_cast %30 : vector<16xf32> to vector<16x1xf32>
    %32 = arith.addf %29, %31 : vector<16x1xf32>
    %c0_18 = arith.constant 0 : index
    %c0_19 = arith.constant 0 : index
    %33 = vector.load %arg9[%c0_18, %c0_19] : memref<16x4xf32, #tpu.memory_space<vmem>>, vector<16x1xf32>
    tpu.vector_store %arg9[%c0_18, %c0_19], %32 {strides = array<i32>} : memref<16x4xf32, #tpu.memory_space<vmem>>, vector<16x1xf32>,
    %c0_20 = arith.constant 0 : index
    %c0_21 = arith.constant 0 : index
    %34 = vector.load %arg7[%c0_20, %c0_21] : memref<16x32xf32, #tpu.memory_space<vmem>>, vector<16x8xf32>
    %35 = vector.broadcast %24 : vector<16x1xf32> to vector<16x8xf32>
    %36 = arith.mulf %35, %34 : vector<16x8xf32>
    %37 = arith.truncf %27 : vector<16x16xf32> to vector<16x16xbf16>
    %cst_22 = arith.constant dense<0.000000e+00> : vector<16x8xf32>
    %38 = tpu.matmul %37, %16, %cst_22 {dimension_numbers = #tpu.dot_dimension_numbers<[1], [0], [0], [1], [0, 0, 1, 1], [], []>} : vector<16x16xbf16>, vector<16x8xbf16>, vector<16x8xf32> -> vector<16x8xf32>
    %39 = arith.addf %36, %38 : vector<16x8xf32>
    %c0_23 = arith.constant 0 : index
    %c0_24 = arith.constant 0 : index
    %40 = vector.load %arg7[%c0_23, %c0_24] : memref<16x32xf32, #tpu.memory_space<vmem>>, vector<16x8xf32>
    tpu.vector_store %arg7[%c0_23, %c0_24], %39 {strides = array<i32>} : memref<16x32xf32, #tpu.memory_space<vmem>>, vector<16x8xf32>,
    %c0_25 = arith.constant 0 : index
    %c0_26 = arith.constant 0 : index
    %41 = vector.load %arg8[%c0_25, %c0_26] : memref<16x4xf32, #tpu.memory_space<vmem>>, vector<16x1xf32>
    tpu.vector_store %arg8[%c0_25, %c0_26], %22 {strides = array<i32>} : memref<16x4xf32, #tpu.memory_space<vmem>>, vector<16x1xf32>,
    %42 = vector.extract_strided_slice %11 {offsets = [0, 8], sizes = [16, 8], strides = [1, 1]} : vector<16x32xbf16> to vector<16x8xbf16>
    %43 = vector.extract_strided_slice %13 {offsets = [0, 8], sizes = [16, 8], strides = [1, 1]} : vector<16x64xbf16> to vector<16x8xbf16>
    %44 = vector.extract_strided_slice %13 {offsets = [0, 40], sizes = [16, 8], strides = [1, 1]} : vector<16x64xbf16> to vector<16x8xbf16>
    %cst_27 = arith.constant dense<0.000000e+00> : vector<16x16xf32>
    %45 = tpu.matmul %42, %43, %cst_27 {dimension_numbers = #tpu.dot_dimension_numbers<[1], [1], [0], [0], [0, 0, 1, 0], [], []>} : vector<16x8xbf16>, vector<16x8xbf16>, vector<16x16xf32> -> vector<16x16xf32>
    %46 = arith.addf %45, %9 : vector<16x16xf32>
    %c0_28 = arith.constant 0 : index
    %c1 = arith.constant 1 : index
    %47 = vector.load %arg8[%c0_28, %c1] : memref<16x4xf32, #tpu.memory_space<vmem>>, vector<16x1xf32>
    %cst_29 = arith.constant dense<0xFF800000> : vector<16xf32>
    %48 = vector.multi_reduction <maximumf>, %46, %cst_29 [1] : vector<16x16xf32> to vector<16xf32>
    %49 = vector.shape_cast %48 : vector<16xf32> to vector<16x1xf32>
    %50 = arith.maximumf %47, %49 : vector<16x1xf32>
    %51 = arith.subf %47, %50 : vector<16x1xf32>
    %52 = math.exp %51 : vector<16x1xf32>
    %53 = vector.broadcast %50 : vector<16x1xf32> to vector<16x16xf32>
    %54 = arith.subf %46, %53 : vector<16x16xf32>
    %55 = math.exp %54 : vector<16x16xf32>
    %c0_30 = arith.constant 0 : index
    %c1_31 = arith.constant 1 : index
    %56 = vector.load %arg9[%c0_30, %c1_31] : memref<16x4xf32, #tpu.memory_space<vmem>>, vector<16x1xf32>
    %57 = arith.mulf %52, %56 : vector<16x1xf32>
    %cst_32 = arith.constant dense<0.000000e+00> : vector<16xf32>
    %58 = vector.multi_reduction <add>, %55, %cst_32 [1] : vector<16x16xf32> to vector<16xf32>
    %59 = vector.shape_cast %58 : vector<16xf32> to vector<16x1xf32>
    %60 = arith.addf %57, %59 : vector<16x1xf32>
    %c0_33 = arith.constant 0 : index
    %c1_34 = arith.constant 1 : index
    %61 = vector.load %arg9[%c0_33, %c1_34] : memref<16x4xf32, #tpu.memory_space<vmem>>, vector<16x1xf32>
    tpu.vector_store %arg9[%c0_33, %c1_34], %60 {strides = array<i32>} : memref<16x4xf32, #tpu.memory_space<vmem>>, vector<16x1xf32>,
    %c0_35 = arith.constant 0 : index
    %c8 = arith.constant 8 : index
    %62 = vector.load %arg7[%c0_35, %c8] : memref<16x32xf32, #tpu.memory_space<vmem>>, vector<16x8xf32>
    %63 = vector.broadcast %52 : vector<16x1xf32> to vector<16x8xf32>
    %64 = arith.mulf %63, %62 : vector<16x8xf32>
    %65 = arith.truncf %55 : vector<16x16xf32> to vector<16x16xbf16>
    %cst_36 = arith.constant dense<0.000000e+00> : vector<16x8xf32>
    %66 = tpu.matmul %65, %44, %cst_36 {dimension_numbers = #tpu.dot_dimension_numbers<[1], [0], [0], [1], [0, 0, 1, 1], [], []>} : vector<16x16xbf16>, vector<16x8xbf16>, vector<16x8xf32> -> vector<16x8xf32>
    %67 = arith.addf %64, %66 : vector<16x8xf32>
    %c0_37 = arith.constant 0 : index
    %c8_38 = arith.constant 8 : index
    %68 = vector.load %arg7[%c0_37, %c8_38] : memref<16x32xf32, #tpu.memory_space<vmem>>, vector<16x8xf32>
    tpu.vector_store %arg7[%c0_37, %c8_38], %67 {strides = array<i32>} : memref<16x32xf32, #tpu.memory_space<vmem>>, vector<16x8xf32>,
    %c0_39 = arith.constant 0 : index
    %c1_40 = arith.constant 1 : index
    %69 = vector.load %arg8[%c0_39, %c1_40] : memref<16x4xf32, #tpu.memory_space<vmem>>, vector<16x1xf32>
    tpu.vector_store %arg8[%c0_39, %c1_40], %50 {strides = array<i32>} : memref<16x4xf32, #tpu.memory_space<vmem>>, vector<16x1xf32>,
    %70 = vector.extract_strided_slice %11 {offsets = [0, 16], sizes = [16, 8], strides = [1, 1]} : vector<16x32xbf16> to vector<16x8xbf16>
    %71 = vector.extract_strided_slice %13 {offsets = [0, 16], sizes = [16, 8], strides = [1, 1]} : vector<16x64xbf16> to vector<16x8xbf16>
    %72 = vector.extract_strided_slice %13 {offsets = [0, 48], sizes = [16, 8], strides = [1, 1]} : vector<16x64xbf16> to vector<16x8xbf16>
    %cst_41 = arith.constant dense<0.000000e+00> : vector<16x16xf32>
    %73 = tpu.matmul %70, %71, %cst_41 {dimension_numbers = #tpu.dot_dimension_numbers<[1], [1], [0], [0], [0, 0, 1, 0], [], []>} : vector<16x8xbf16>, vector<16x8xbf16>, vector<16x16xf32> -> vector<16x16xf32>
    %74 = arith.addf %73, %9 : vector<16x16xf32>
    %c0_42 = arith.constant 0 : index
    %c2 = arith.constant 2 : index
    %75 = vector.load %arg8[%c0_42, %c2] : memref<16x4xf32, #tpu.memory_space<vmem>>, vector<16x1xf32>
    %cst_43 = arith.constant dense<0xFF800000> : vector<16xf32>
    %76 = vector.multi_reduction <maximumf>, %74, %cst_43 [1] : vector<16x16xf32> to vector<16xf32>
    %77 = vector.shape_cast %76 : vector<16xf32> to vector<16x1xf32>
    %78 = arith.maximumf %75, %77 : vector<16x1xf32>
    %79 = arith.subf %75, %78 : vector<16x1xf32>
    %80 = math.exp %79 : vector<16x1xf32>
    %81 = vector.broadcast %78 : vector<16x1xf32> to vector<16x16xf32>
    %82 = arith.subf %74, %81 : vector<16x16xf32>
    %83 = math.exp %82 : vector<16x16xf32>
    %c0_44 = arith.constant 0 : index
    %c2_45 = arith.constant 2 : index
    %84 = vector.load %arg9[%c0_44, %c2_45] : memref<16x4xf32, #tpu.memory_space<vmem>>, vector<16x1xf32>
    %85 = arith.mulf %80, %84 : vector<16x1xf32>
    %cst_46 = arith.constant dense<0.000000e+00> : vector<16xf32>
    %86 = vector.multi_reduction <add>, %83, %cst_46 [1] : vector<16x16xf32> to vector<16xf32>
    %87 = vector.shape_cast %86 : vector<16xf32> to vector<16x1xf32>
    %88 = arith.addf %85, %87 : vector<16x1xf32>
    %c0_47 = arith.constant 0 : index
    %c2_48 = arith.constant 2 : index
    %89 = vector.load %arg9[%c0_47, %c2_48] : memref<16x4xf32, #tpu.memory_space<vmem>>, vector<16x1xf32>
    tpu.vector_store %arg9[%c0_47, %c2_48], %88 {strides = array<i32>} : memref<16x4xf32, #tpu.memory_space<vmem>>, vector<16x1xf32>,
    %c0_49 = arith.constant 0 : index
    %c16 = arith.constant 16 : index
    %90 = vector.load %arg7[%c0_49, %c16] : memref<16x32xf32, #tpu.memory_space<vmem>>, vector<16x8xf32>
    %91 = vector.broadcast %80 : vector<16x1xf32> to vector<16x8xf32>
    %92 = arith.mulf %91, %90 : vector<16x8xf32>
    %93 = arith.truncf %83 : vector<16x16xf32> to vector<16x16xbf16>
    %cst_50 = arith.constant dense<0.000000e+00> : vector<16x8xf32>
    %94 = tpu.matmul %93, %72, %cst_50 {dimension_numbers = #tpu.dot_dimension_numbers<[1], [0], [0], [1], [0, 0, 1, 1], [], []>} : vector<16x16xbf16>, vector<16x8xbf16>, vector<16x8xf32> -> vector<16x8xf32>
    %95 = arith.addf %92, %94 : vector<16x8xf32>
    %c0_51 = arith.constant 0 : index
    %c16_52 = arith.constant 16 : index
    %96 = vector.load %arg7[%c0_51, %c16_52] : memref<16x32xf32, #tpu.memory_space<vmem>>, vector<16x8xf32>
    tpu.vector_store %arg7[%c0_51, %c16_52], %95 {strides = array<i32>} : memref<16x32xf32, #tpu.memory_space<vmem>>, vector<16x8xf32>,
    %c0_53 = arith.constant 0 : index
    %c2_54 = arith.constant 2 : index
    %97 = vector.load %arg8[%c0_53, %c2_54] : memref<16x4xf32, #tpu.memory_space<vmem>>, vector<16x1xf32>
    tpu.vector_store %arg8[%c0_53, %c2_54], %78 {strides = array<i32>} : memref<16x4xf32, #tpu.memory_space<vmem>>, vector<16x1xf32>,
    %98 = vector.extract_strided_slice %11 {offsets = [0, 24], sizes = [16, 8], strides = [1, 1]} : vector<16x32xbf16> to vector<16x8xbf16>
    %99 = vector.extract_strided_slice %13 {offsets = [0, 24], sizes = [16, 8], strides = [1, 1]} : vector<16x64xbf16> to vector<16x8xbf16>
    %100 = vector.extract_strided_slice %13 {offsets = [0, 56], sizes = [16, 8], strides = [1, 1]} : vector<16x64xbf16> to vector<16x8xbf16>
    %cst_55 = arith.constant dense<0.000000e+00> : vector<16x16xf32>
    %101 = tpu.matmul %98, %99, %cst_55 {dimension_numbers = #tpu.dot_dimension_numbers<[1], [1], [0], [0], [0, 0, 1, 0], [], []>} : vector<16x8xbf16>, vector<16x8xbf16>, vector<16x16xf32> -> vector<16x16xf32>
    %102 = arith.addf %101, %9 : vector<16x16xf32>
    %c0_56 = arith.constant 0 : index
    %c3 = arith.constant 3 : index
    %103 = vector.load %arg8[%c0_56, %c3] : memref<16x4xf32, #tpu.memory_space<vmem>>, vector<16x1xf32>
    %cst_57 = arith.constant dense<0xFF800000> : vector<16xf32>
    %104 = vector.multi_reduction <maximumf>, %102, %cst_57 [1] : vector<16x16xf32> to vector<16xf32>
    %105 = vector.shape_cast %104 : vector<16xf32> to vector<16x1xf32>
    %106 = arith.maximumf %103, %105 : vector<16x1xf32>
    %107 = arith.subf %103, %106 : vector<16x1xf32>
    %108 = math.exp %107 : vector<16x1xf32>
    %109 = vector.broadcast %106 : vector<16x1xf32> to vector<16x16xf32>
    %110 = arith.subf %102, %109 : vector<16x16xf32>
    %111 = math.exp %110 : vector<16x16xf32>
    %c0_58 = arith.constant 0 : index
    %c3_59 = arith.constant 3 : index
    %112 = vector.load %arg9[%c0_58, %c3_59] : memref<16x4xf32, #tpu.memory_space<vmem>>, vector<16x1xf32>
    %113 = arith.mulf %108, %112 : vector<16x1xf32>
    %cst_60 = arith.constant dense<0.000000e+00> : vector<16xf32>
    %114 = vector.multi_reduction <add>, %111, %cst_60 [1] : vector<16x16xf32> to vector<16xf32>
    %115 = vector.shape_cast %114 : vector<16xf32> to vector<16x1xf32>
    %116 = arith.addf %113, %115 : vector<16x1xf32>
    %c0_61 = arith.constant 0 : index
    %c3_62 = arith.constant 3 : index
    %117 = vector.load %arg9[%c0_61, %c3_62] : memref<16x4xf32, #tpu.memory_space<vmem>>, vector<16x1xf32>
    tpu.vector_store %arg9[%c0_61, %c3_62], %116 {strides = array<i32>} : memref<16x4xf32, #tpu.memory_space<vmem>>, vector<16x1xf32>,
    %c0_63 = arith.constant 0 : index
    %c24 = arith.constant 24 : index
    %118 = vector.load %arg7[%c0_63, %c24] : memref<16x32xf32, #tpu.memory_space<vmem>>, vector<16x8xf32>
    %119 = vector.broadcast %108 : vector<16x1xf32> to vector<16x8xf32>
    %120 = arith.mulf %119, %118 : vector<16x8xf32>
    %121 = arith.truncf %111 : vector<16x16xf32> to vector<16x16xbf16>
    %cst_64 = arith.constant dense<0.000000e+00> : vector<16x8xf32>
    %122 = tpu.matmul %121, %100, %cst_64 {dimension_numbers = #tpu.dot_dimension_numbers<[1], [0], [0], [1], [0, 0, 1, 1], [], []>} : vector<16x16xbf16>, vector<16x8xbf16>, vector<16x8xf32> -> vector<16x8xf32>
    %123 = arith.addf %120, %122 : vector<16x8xf32>
    %c0_65 = arith.constant 0 : index
    %c24_66 = arith.constant 24 : index
    %124 = vector.load %arg7[%c0_65, %c24_66] : memref<16x32xf32, #tpu.memory_space<vmem>>, vector<16x8xf32>
    tpu.vector_store %arg7[%c0_65, %c24_66], %123 {strides = array<i32>} : memref<16x32xf32, #tpu.memory_space<vmem>>, vector<16x8xf32>,
    %c0_67 = arith.constant 0 : index
    %c3_68 = arith.constant 3 : index
    %125 = vector.load %arg8[%c0_67, %c3_68] : memref<16x4xf32, #tpu.memory_space<vmem>>, vector<16x1xf32>
    tpu.vector_store %arg8[%c0_67, %c3_68], %106 {strides = array<i32>} : memref<16x4xf32, #tpu.memory_space<vmem>>, vector<16x1xf32>,
    %c0_i32_69 = arith.constant 0 : i32
    %126 = arith.cmpi eq, %arg2, %c0_i32_69 : i32
    %127 = arith.extui %126 : i1 to i32
    %c0_i32_70 = arith.constant 0 : i32
    %128 = arith.cmpi ne, %127, %c0_i32_70 : i32
    scf.if %128 {
      %c0_71 = arith.constant 0 : index
      %c0_72 = arith.constant 0 : index
      %129 = vector.load %arg9[%c0_71, %c0_72] : memref<16x4xf32, #tpu.memory_space<vmem>>, vector<16x4xf32>
      %130 = tpu.reciprocal %129 {approx = true} : vector<16x4xf32> -> vector<16x4xf32>
      %c0_73 = arith.constant 0 : index
      %c0_74 = arith.constant 0 : index
      %131 = vector.load %arg7[%c0_73, %c0_74] : memref<16x32xf32, #tpu.memory_space<vmem>>, vector<16x8xf32>
      %132 = vector.extract_strided_slice %130 {offsets = [0, 0], sizes = [16, 1], strides = [1, 1]} : vector<16x4xf32> to vector<16x1xf32>
      %133 = vector.broadcast %132 : vector<16x1xf32> to vector<16x8xf32>
      %134 = arith.mulf %131, %133 : vector<16x8xf32>
      %c0_75 = arith.constant 0 : index
      %c0_76 = arith.constant 0 : index
      %135 = vector.load %arg7[%c0_75, %c0_76] : memref<16x32xf32, #tpu.memory_space<vmem>>, vector<16x8xf32>
      tpu.vector_store %arg7[%c0_75, %c0_76], %134 {strides = array<i32>} : memref<16x32xf32, #tpu.memory_space<vmem>>, vector<16x8xf32>,
      %c0_77 = arith.constant 0 : index
      %c8_78 = arith.constant 8 : index
      %136 = vector.load %arg7[%c0_77, %c8_78] : memref<16x32xf32, #tpu.memory_space<vmem>>, vector<16x8xf32>
      %137 = vector.extract_strided_slice %130 {offsets = [0, 1], sizes = [16, 1], strides = [1, 1]} : vector<16x4xf32> to vector<16x1xf32>
      %138 = vector.broadcast %137 : vector<16x1xf32> to vector<16x8xf32>
      %139 = arith.mulf %136, %138 : vector<16x8xf32>
      %c0_79 = arith.constant 0 : index
      %c8_80 = arith.constant 8 : index
      %140 = vector.load %arg7[%c0_79, %c8_80] : memref<16x32xf32, #tpu.memory_space<vmem>>, vector<16x8xf32>
      tpu.vector_store %arg7[%c0_79, %c8_80], %139 {strides = array<i32>} : memref<16x32xf32, #tpu.memory_space<vmem>>, vector<16x8xf32>,
      %c0_81 = arith.constant 0 : index
      %c16_82 = arith.constant 16 : index
      %141 = vector.load %arg7[%c0_81, %c16_82] : memref<16x32xf32, #tpu.memory_space<vmem>>, vector<16x8xf32>
      %142 = vector.extract_strided_slice %130 {offsets = [0, 2], sizes = [16, 1], strides = [1, 1]} : vector<16x4xf32> to vector<16x1xf32>
      %143 = vector.broadcast %142 : vector<16x1xf32> to vector<16x8xf32>
      %144 = arith.mulf %141, %143 : vector<16x8xf32>
      %c0_83 = arith.constant 0 : index
      %c16_84 = arith.constant 16 : index
      %145 = vector.load %arg7[%c0_83, %c16_84] : memref<16x32xf32, #tpu.memory_space<vmem>>, vector<16x8xf32>
      tpu.vector_store %arg7[%c0_83, %c16_84], %144 {strides = array<i32>} : memref<16x32xf32, #tpu.memory_space<vmem>>, vector<16x8xf32>,
      %c0_85 = arith.constant 0 : index
      %c24_86 = arith.constant 24 : index
      %146 = vector.load %arg7[%c0_85, %c24_86] : memref<16x32xf32, #tpu.memory_space<vmem>>, vector<16x8xf32>
      %147 = vector.extract_strided_slice %130 {offsets = [0, 3], sizes = [16, 1], strides = [1, 1]} : vector<16x4xf32> to vector<16x1xf32>
      %148 = vector.broadcast %147 : vector<16x1xf32> to vector<16x8xf32>
      %149 = arith.mulf %146, %148 : vector<16x8xf32>
      %c0_87 = arith.constant 0 : index
      %c24_88 = arith.constant 24 : index
      %150 = vector.load %arg7[%c0_87, %c24_88] : memref<16x32xf32, #tpu.memory_space<vmem>>, vector<16x8xf32>
      tpu.vector_store %arg7[%c0_87, %c24_88], %149 {strides = array<i32>} : memref<16x32xf32, #tpu.memory_space<vmem>>, vector<16x8xf32>,
      %c0_89 = arith.constant 0 : index
      %c0_90 = arith.constant 0 : index
      %151 = vector.load %arg7[%c0_89, %c0_90] : memref<16x32xf32, #tpu.memory_space<vmem>>, vector<16x32xf32>
      %152 = arith.truncf %151 : vector<16x32xf32> to vector<16x32xbf16>
      %c0_91 = arith.constant 0 : index
      %c0_92 = arith.constant 0 : index
      %c0_93 = arith.constant 0 : index
      %153 = vector.load %arg6[%c0_91, %c0_92, %c0_93] : memref<1x16x32xbf16, #tpu.memory_space<vmem>>, vector<1x16x32xbf16>
      %154 = vector.shape_cast %153 : vector<1x16x32xbf16> to vector<16x32xbf16>
      %155 = vector.shape_cast %152 : vector<16x32xbf16> to vector<1x16x32xbf16>
      tpu.vector_store %arg6[%c0_91, %c0_92, %c0_93], %155 {strides = array<i32>} : memref<1x16x32xbf16, #tpu.memory_space<vmem>>, vector<1x16x32xbf16>,
    } else {
    }
    return
  }
  func.func @transform_0(%arg0: i32, %arg1: i32, %arg2: i32) -> (i32, i32, i32) {
    %c0_i32 = arith.constant 0 : i32
    %c0_i32_0 = arith.constant 0 : i32
    return %arg0, %arg1, %c0_i32 : i32, i32, i32
  }
  func.func @transform_1(%arg0: i32, %arg1: i32, %arg2: i32) -> (i32, i32, i32) {
    %c0_i32 = arith.constant 0 : i32
    %c0_i32_0 = arith.constant 0 : i32
    return %arg0, %arg2, %c0_i32 : i32, i32, i32
  }
  func.func @transform_2(%arg0: i32, %arg1: i32, %arg2: i32) -> (i32, i32, i32) {
    %c0_i32 = arith.constant 0 : i32
    return %arg0, %arg1, %arg2 : i32, i32, i32
  }
  func.func @transform_3(%arg0: i32, %arg1: i32, %arg2: i32) -> (i32, i32, i32) {
    %c0_i32 = arith.constant 0 : i32
    %c0_i32_0 = arith.constant 0 : i32
    return %arg0, %arg1, %c0_i32 : i32, i32, i32
  }
}

module attributes {stable_mosaic.version = 11 : i64} {
  func.func @_matmul_kernel(%arg0: i32, %arg1: i32, %arg2: i32, %arg3: memref<32x32xbf16, #tpu.memory_space<vmem>>, %arg4: memref<32x128xbf16, #tpu.memory_space<vmem>>, %arg5: memref<1x128xf32, #tpu.memory_space<vmem>>, %arg6: memref<32x128xf32, #tpu.memory_space<vmem>>, %arg7: memref<32x128xf32, #tpu.memory_space<vmem>>) attributes {dimension_semantics = [#tpu.dimension_semantics<parallel>, #tpu.dimension_semantics<parallel>, #tpu.dimension_semantics<arbitrary>], iteration_bounds = array<i64: 1, 1, 1>, scalar_prefetch = 0 : i64, scratch_operands = 1 : i64, tpu.core_type = #tpu.core_type<tc>, window_params = [{transform_indices = @transform_0, window_bounds = array<i64: 32, 32>}, {transform_indices = @transform_1, window_bounds = array<i64: 32, 128>}, {transform_indices = @transform_2, window_bounds = array<i64: 1, 128>}, {transform_indices = @transform_3, window_bounds = array<i64: 32, 128>}]} {
    %c0_i32 = arith.constant 0 : i32
    %0 = arith.cmpi eq, %arg2, %c0_i32 : i32
    %1 = arith.extui %0 : i1 to i32
    %c0_i32_0 = arith.constant 0 : i32
    %2 = arith.cmpi ne, %1, %c0_i32_0 : i32
    scf.if %2 {
      %cst_10 = arith.constant 0.000000e+00 : f32
      %12 = vector.broadcast %cst_10 : f32 to vector<32x128xf32>
      %c0_11 = arith.constant 0 : index
      %c0_12 = arith.constant 0 : index
      %13 = vector.load %arg7[%c0_11, %c0_12] : memref<32x128xf32, #tpu.memory_space<vmem>>, vector<32x128xf32>
      tpu.vector_store %arg7[%c0_11, %c0_12], %12 {strides = array<i32>} : memref<32x128xf32, #tpu.memory_space<vmem>>, vector<32x128xf32>,
    } else {
    }
    %c0 = arith.constant 0 : index
    %c0_1 = arith.constant 0 : index
    %3 = vector.load %arg7[%c0, %c0_1] : memref<32x128xf32, #tpu.memory_space<vmem>>, vector<32x128xf32>
    %c0_2 = arith.constant 0 : index
    %c0_3 = arith.constant 0 : index
    %4 = vector.load %arg3[%c0_2, %c0_3] : memref<32x32xbf16, #tpu.memory_space<vmem>>, vector<32x32xbf16>
    %c0_4 = arith.constant 0 : index
    %c0_5 = arith.constant 0 : index
    %5 = vector.load %arg4[%c0_4, %c0_5] : memref<32x128xbf16, #tpu.memory_space<vmem>>, vector<32x128xbf16>
    %cst = arith.constant dense<0.000000e+00> : vector<32x128xf32>
    %6 = tpu.matmul %4, %5, %cst {dimension_numbers = #tpu.dot_dimension_numbers<[1], [0], [0], [1], [0, 0, 1, 1], [], []>} : vector<32x32xbf16>, vector<32x128xbf16>, vector<32x128xf32> -> vector<32x128xf32>
    %7 = arith.addf %3, %6 : vector<32x128xf32>
    %c0_6 = arith.constant 0 : index
    %c0_7 = arith.constant 0 : index
    %8 = vector.load %arg7[%c0_6, %c0_7] : memref<32x128xf32, #tpu.memory_space<vmem>>, vector<32x128xf32>
    tpu.vector_store %arg7[%c0_6, %c0_7], %7 {strides = array<i32>} : memref<32x128xf32, #tpu.memory_space<vmem>>, vector<32x128xf32>,
    %c0_i32_8 = arith.constant 0 : i32
    %9 = arith.cmpi eq, %arg2, %c0_i32_8 : i32
    %10 = arith.extui %9 : i1 to i32
    %c0_i32_9 = arith.constant 0 : i32
    %11 = arith.cmpi ne, %10, %c0_i32_9 : i32
    scf.if %11 {
      %c0_10 = arith.constant 0 : index
      %c0_11 = arith.constant 0 : index
      %12 = vector.load %arg7[%c0_10, %c0_11] : memref<32x128xf32, #tpu.memory_space<vmem>>, vector<32x128xf32>
      %c0_12 = arith.constant 0 : index
      %c0_13 = arith.constant 0 : index
      %13 = vector.load %arg5[%c0_12, %c0_13] : memref<1x128xf32, #tpu.memory_space<vmem>>, vector<1x128xf32>
      %14 = vector.broadcast %13 : vector<1x128xf32> to vector<32x128xf32>
      %15 = arith.addf %12, %14 : vector<32x128xf32>
      %c0_14 = arith.constant 0 : index
      %c0_15 = arith.constant 0 : index
      %16 = vector.load %arg6[%c0_14, %c0_15] : memref<32x128xf32, #tpu.memory_space<vmem>>, vector<32x128xf32>
      tpu.vector_store %arg6[%c0_14, %c0_15], %15 {strides = array<i32>} : memref<32x128xf32, #tpu.memory_space<vmem>>, vector<32x128xf32>,
    } else {
    }
    return
  }
  func.func @transform_0(%arg0: i32, %arg1: i32, %arg2: i32) -> (i32, i32) {
    %c0_i32 = arith.constant 0 : i32
    return %arg0, %arg2 : i32, i32
  }
  func.func @transform_1(%arg0: i32, %arg1: i32, %arg2: i32) -> (i32, i32) {
    %c0_i32 = arith.constant 0 : i32
    return %arg2, %arg1 : i32, i32
  }
  func.func @transform_2(%arg0: i32, %arg1: i32, %arg2: i32) -> (i32, i32) {
    %c0_i32 = arith.constant 0 : i32
    %c0_i32_0 = arith.constant 0 : i32
    return %c0_i32, %arg1 : i32, i32
  }
  func.func @transform_3(%arg0: i32, %arg1: i32, %arg2: i32) -> (i32, i32) {
    %c0_i32 = arith.constant 0 : i32
    return %arg0, %arg1 : i32, i32
  }
}

module attributes {stable_mosaic.version = 11 : i64} {
  func.func @_lse_kernel(%arg0: i32, %arg1: i32, %arg2: memref<32x128xf32, #tpu.memory_space<vmem>>, %arg3: memref<32x1xf32, #tpu.memory_space<vmem>>, %arg4: memref<32x1xf32, #tpu.memory_space<vmem>>, %arg5: memref<32x1xf32, #tpu.memory_space<vmem>>) attributes {dimension_semantics = [#tpu.dimension_semantics<parallel>, #tpu.dimension_semantics<arbitrary>], iteration_bounds = array<i64: 1, 1>, scalar_prefetch = 0 : i64, scratch_operands = 2 : i64, tpu.core_type = #tpu.core_type<tc>, window_params = [{transform_indices = @transform_0, window_bounds = array<i64: 32, 128>}, {transform_indices = @transform_1, window_bounds = array<i64: 32, 1>}]} {
    %c0_i32 = arith.constant 0 : i32
    %0 = arith.cmpi eq, %arg1, %c0_i32 : i32
    %1 = arith.extui %0 : i1 to i32
    %c0_i32_0 = arith.constant 0 : i32
    %2 = arith.cmpi ne, %1, %c0_i32_0 : i32
    scf.if %2 {
      %cst_15 = arith.constant 0xFF800000 : f32
      %24 = vector.broadcast %cst_15 : f32 to vector<32x1xf32>
      %c0_16 = arith.constant 0 : index
      %c0_17 = arith.constant 0 : index
      %25 = vector.load %arg4[%c0_16, %c0_17] : memref<32x1xf32, #tpu.memory_space<vmem>>, vector<32x1xf32>
      tpu.vector_store %arg4[%c0_16, %c0_17], %24 {strides = array<i32>} : memref<32x1xf32, #tpu.memory_space<vmem>>, vector<32x1xf32>,
      %cst_18 = arith.constant 0.000000e+00 : f32
      %26 = vector.broadcast %cst_18 : f32 to vector<32x1xf32>
      %c0_19 = arith.constant 0 : index
      %c0_20 = arith.constant 0 : index
      %27 = vector.load %arg5[%c0_19, %c0_20] : memref<32x1xf32, #tpu.memory_space<vmem>>, vector<32x1xf32>
      tpu.vector_store %arg5[%c0_19, %c0_20], %26 {strides = array<i32>} : memref<32x1xf32, #tpu.memory_space<vmem>>, vector<32x1xf32>,
    } else {
    }
    %c0 = arith.constant 0 : index
    %c0_1 = arith.constant 0 : index
    %3 = vector.load %arg2[%c0, %c0_1] : memref<32x128xf32, #tpu.memory_space<vmem>>, vector<32x128xf32>
    %c0_2 = arith.constant 0 : index
    %c0_3 = arith.constant 0 : index
    %4 = vector.load %arg4[%c0_2, %c0_3] : memref<32x1xf32, #tpu.memory_space<vmem>>, vector<32x1xf32>
    %cst = arith.constant dense<0xFF800000> : vector<32xf32>
    %5 = vector.multi_reduction <maximumf>, %3, %cst [1] : vector<32x128xf32> to vector<32xf32>
    %6 = vector.shape_cast %5 : vector<32xf32> to vector<32x1xf32>
    %7 = arith.maximumf %4, %6 : vector<32x1xf32>
    %c0_4 = arith.constant 0 : index
    %c0_5 = arith.constant 0 : index
    %8 = vector.load %arg5[%c0_4, %c0_5] : memref<32x1xf32, #tpu.memory_space<vmem>>, vector<32x1xf32>
    %c0_6 = arith.constant 0 : index
    %c0_7 = arith.constant 0 : index
    %9 = vector.load %arg4[%c0_6, %c0_7] : memref<32x1xf32, #tpu.memory_space<vmem>>, vector<32x1xf32>
    %10 = arith.subf %9, %7 : vector<32x1xf32>
    %11 = math.exp %10 : vector<32x1xf32>
    %12 = arith.mulf %8, %11 : vector<32x1xf32>
    %13 = vector.broadcast %7 : vector<32x1xf32> to vector<32x128xf32>
    %14 = arith.subf %3, %13 : vector<32x128xf32>
    %15 = math.exp %14 : vector<32x128xf32>
    %cst_8 = arith.constant dense<0.000000e+00> : vector<32xf32>
    %16 = vector.multi_reduction <add>, %15, %cst_8 [1] : vector<32x128xf32> to vector<32xf32>
    %17 = vector.shape_cast %16 : vector<32xf32> to vector<32x1xf32>
    %18 = arith.addf %12, %17 : vector<32x1xf32>
    %c0_9 = arith.constant 0 : index
    %c0_10 = arith.constant 0 : index
    %19 = vector.load %arg5[%c0_9, %c0_10] : memref<32x1xf32, #tpu.memory_space<vmem>>, vector<32x1xf32>
    tpu.vector_store %arg5[%c0_9, %c0_10], %18 {strides = array<i32>} : memref<32x1xf32, #tpu.memory_space<vmem>>, vector<32x1xf32>,
    %c0_11 = arith.constant 0 : index
    %c0_12 = arith.constant 0 : index
    %20 = vector.load %arg4[%c0_11, %c0_12] : memref<32x1xf32, #tpu.memory_space<vmem>>, vector<32x1xf32>
    tpu.vector_store %arg4[%c0_11, %c0_12], %7 {strides = array<i32>} : memref<32x1xf32, #tpu.memory_space<vmem>>, vector<32x1xf32>,
    %c0_i32_13 = arith.constant 0 : i32
    %21 = arith.cmpi eq, %arg1, %c0_i32_13 : i32
    %22 = arith.extui %21 : i1 to i32
    %c0_i32_14 = arith.constant 0 : i32
    %23 = arith.cmpi ne, %22, %c0_i32_14 : i32
    scf.if %23 {
      %c0_15 = arith.constant 0 : index
      %c0_16 = arith.constant 0 : index
      %24 = vector.load %arg4[%c0_15, %c0_16] : memref<32x1xf32, #tpu.memory_space<vmem>>, vector<32x1xf32>
      %c0_17 = arith.constant 0 : index
      %c0_18 = arith.constant 0 : index
      %25 = vector.load %arg5[%c0_17, %c0_18] : memref<32x1xf32, #tpu.memory_space<vmem>>, vector<32x1xf32>
      %26 = math.log %25 : vector<32x1xf32>
      %27 = arith.addf %24, %26 : vector<32x1xf32>
      %c0_19 = arith.constant 0 : index
      %c0_20 = arith.constant 0 : index
      %28 = vector.load %arg3[%c0_19, %c0_20] : memref<32x1xf32, #tpu.memory_space<vmem>>, vector<32x1xf32>
      tpu.vector_store %arg3[%c0_19, %c0_20], %27 {strides = array<i32>} : memref<32x1xf32, #tpu.memory_space<vmem>>, vector<32x1xf32>,
    } else {
    }
    return
  }
  func.func @transform_0(%arg0: i32, %arg1: i32) -> (i32, i32) {
    %c0_i32 = arith.constant 0 : i32
    return %arg0, %arg1 : i32, i32
  }
  func.func @transform_1(%arg0: i32, %arg1: i32) -> (i32, i32) {
    %c0_i32 = arith.constant 0 : i32
    %c0_i32_0 = arith.constant 0 : i32
    return %arg0, %c0_i32 : i32, i32
  }
}

</mosaic_0001>

<bundles_post_ra>
// kernel: forward.46
= control target key start
LH: loop header
LB: loop body
LE: loop exit
PB: predicated region body
PF: predicated region fallthrough
CT: control target
= control target key end

     0   :  { %vm18_vm0 = vcmask 261120   ;;  %vm110_vm1 = vcmask 257024   ;;  %s199_s0 = inlined_call_operand.vmem [shape: f32[32,32], index: 0, kind: input, shape index: {}]   ;;  %s200_s1 = inlined_call_operand.vmem [shape: f32[1,32], index: 1, kind: input, shape index: {}]   ;;  %s201_s2 = inlined_call_operand.vmem [shape: f32[1,32], index: 2, kind: input, shape index: {}]   ;;  %s202_s3 = inlined_call_operand.vmem [shape: bf16[32,32], index: 3, kind: output, shape index: {}]  }
   0x1   :  { %v14_v0 = vld [vmem:[%s199_s0] sm:$0xff]  ;;  %v16_v1 = vld [vmem:[%s199_s0 + $0x10] sm:$0xff]  ;;  %v15_v2 = vld [vmem:[%s199_s0 + $0x8] sm:$0xff] }
   0x2   :  { %v19_v3 = vsel %vm18_vm0, %v14_v0, 0.0  ;;  %v25_v4 = vsel %vm18_vm0, %v16_v1, 0.0  ;;  %v17_v5 = vld [vmem:[%s199_s0 + $0x18] sm:$0xff]  ;;  %v22_v6 = vsel %vm18_vm0, %v15_v2, 0.0  ;;  %v119_v41 = vld [vmem:[%s200_s1] ss:$0 sm:$0xff] }
   0x3   :  { %20 = vadd.xlane.f32.xlu0 %v19_v3  ;;  %26 = vadd.xlane.f32.xlu1 %v25_v4  ;;  %v28_v7 = vsel %vm18_vm0, %v17_v5, 0.0  ;;  %v120_v43 = vld [vmem:[%s201_s2] ss:$0 sm:$0xff] }
   0x7   :  { %23 = vadd.xlane.f32.xlu0 %v22_v6  ;;  %29 = vadd.xlane.f32.xlu1 %v28_v7 }
  0x90   :  { %v21_v8 = vpop.xlane.xlu0 %20  ;;  %v27_v9 = vpop.xlane.xlu1 %26 }
  0x91   :  { %v32_v10 = vmul.f32 0.03125, %v21_v8  ;;  %v34_v11 = vmul.f32 0.03125, %v27_v9 }
  0x93   :  { %v36_v12 = vsub.f32 %v14_v0, %v32_v10  ;;  %v38_v13 = vsub.f32 %v16_v1, %v34_v11 }
  0x94   :  { %v24_v14 = vpop.xlane.xlu0 %23  ;;  %v30_v15 = vpop.xlane.xlu1 %29 }
  0x95   :  { %v33_v16 = vmul.f32 0.03125, %v24_v14  ;;  %v35_v17 = vmul.f32 0.03125, %v30_v15  ;;  %v40_v18 = vmul.f32 %v36_v12, %v36_v12  ;;  %v42_v19 = vmul.f32 %v38_v13, %v38_v13 }
  0x97   :  { %v37_v20 = vsub.f32 %v15_v2, %v33_v16  ;;  %v39_v21 = vsub.f32 %v17_v5, %v35_v17  ;;  %v44_v22 = vsel %vm18_vm0, %v40_v18, 0.0  ;;  %v50_v23 = vsel %vm18_vm0, %v42_v19, 0.0 }
  0x98   :  { %45 = vadd.xlane.f32.xlu0 %v44_v22 }
  0x99   :  { %v41_v24 = vmul.f32 %v37_v20, %v37_v20  ;;  %v43_v25 = vmul.f32 %v39_v21, %v39_v21 }
  0x9b   :  { %v47_v26 = vsel %vm18_vm0, %v41_v24, 0.0  ;;  %v53_v27 = vsel %vm18_vm0, %v43_v25, 0.0 }
  0x9c   :  { %51 = vadd.xlane.f32.xlu0 %v50_v23  ;;  %48 = vadd.xlane.f32.xlu1 %v47_v26 }
  0xa0   :  { %54 = vadd.xlane.f32.xlu1 %v53_v27 }
 0x125   :  { %v46_v28 = vpop.xlane.xlu0 %45 }
 0x126   :  { %v56_v29 = vmul.f32 0.03125, %v46_v28 }
 0x128   :  { %v60_v30 = vadd.f32 1e-05, %v56_v29 }
 0x129   :  { %v49_v31 = vpop.xlane.xlu1 %48  ;;  %v52_v32 = vpop.xlane.xlu0 %51 }
 0x12a   :  { %129 = vrsqrt.f32 %v60_v30  ;;  %v57_v33 = vmul.f32 0.03125, %v49_v31  ;;  %v58_v34 = vmul.f32 0.03125, %v52_v32 }
 0x12c   :  { %v61_v35 = vadd.f32 1e-05, %v57_v33  ;;  %v62_v36 = vadd.f32 1e-05, %v58_v34 }
 0x12d   :  { %v55_v37 = vpop.xlane.xlu1 %54 }
 0x12e   :  { %131 = vrsqrt.f32 %v61_v35  ;;  %v59_v38 = vmul.f32 0.03125, %v55_v37 }
 0x12f   :  { %133 = vrsqrt.f32 %v62_v36 }
 0x130   :  { %v63_v39 = vadd.f32 1e-05, %v59_v38 }
 0x132   :  { %135 = vrsqrt.f32 %v63_v39 }
 0x134   :  { %v130_v40 = vpop.eup %129 }
 0x135   :  { %v68_v42 = vmul.f32 %v130_v40, %v36_v12 }
 0x137   :  { %v79_v44 = vmul.f32 %v119_v41, %v68_v42 }
 0x138   :  { %v132_v45 = vpop.eup %131 }
 0x139   :  { %v134_v46 = vpop.eup %133  ;;  %v90_v47 = vadd.f32 %v120_v43, %v79_v44  ;;  %v69_v48 = vmul.f32 %v132_v45, %v37_v20 }
 0x13a   :  { %v70_v49 = vmul.f32 %v134_v46, %v38_v13 }
 0x13b   :  { %v125_v50 = vpack.c.bf16 %v90_v47, %v90_v47  ;;  %v80_v51 = vmul.f32 %v119_v41, %v69_v48 }
 0x13c   :  { %v136_v52 = vpop.eup %135  ;;  %v81_v53 = vmul.f32 %v119_v41, %v70_v49 }
 0x13d   :  { %111 = vst.msk [vmem:[%s202_s3] sm:$0xf] %vm110_vm1, %v125_v50  ;;  %v91_v54 = vadd.f32 %v120_v43, %v80_v51  ;;  %v71_v55 = vmul.f32 %v136_v52, %v39_v21 }
 0x13e   :  { %v92_v56 = vadd.f32 %v120_v43, %v81_v53 }
 0x13f   :  { %v126_v57 = vpack.c.bf16 %v91_v54, %v91_v54  ;;  %v82_v58 = vmul.f32 %v119_v41, %v71_v55 }
 0x140   :  { %v127_v59 = vpack.c.bf16 %v92_v56, %v92_v56 }
 0x141   :  { %112 = vst.msk [vmem:[%s202_s3 + $0x4] sm:$0xf] %vm110_vm1, %v126_v57  ;;  %v93_v60 = vadd.f32 %v120_v43, %v82_v58 }
 0x142   :  { %113 = vst.msk [vmem:[%s202_s3 + $0x8] sm:$0xf] %vm110_vm1, %v127_v59 }
 0x143   :  { %v128_v61 = vpack.c.bf16 %v93_v60, %v93_v60 }
 0x145   :  { %114 = vst.msk [vmem:[%s202_s3 + $0xc] sm:$0xf] %vm110_vm1, %v128_v61 }

// kernel: forward.48
= control target key start
LH: loop header
LB: loop body
LE: loop exit
PB: predicated region body
PF: predicated region fallthrough
CT: control target
= control target key end

     0   :  { %vm19_vm0 = vcmask 523264   ;;  %v198_v1 = vmov 0.0   ;;  %vm58_vm1 = vcmask 261120   ;;  %vm157_vm2 = vcmask 519168   ;;  %s254_s1 = inlined_call_operand.vmem [shape: bf16[32,64], index: 1, kind: input, shape index: {}]   ;;  %s255_s0 = inlined_call_operand.vmem [shape: bf16[32,32], index: 0, kind: input, shape index: {}]   ;;  %s256_s2 = inlined_call_operand.vmem [shape: f32[1,64], index: 2, kind: input, shape index: {}]   ;;  %s257_s3 = inlined_call_operand.vmem [shape: bf16[32,64], index: 3, kind: output, shape index: {}]  }
   0x1   :  { %v194_v0 = vld [vmem:[%s254_s1] sm:$0xff]   ;;  %22 = vst.msk [vmem:[#allocation2 + $0x10] sm:$0xff] %vm19_vm0, %v198_v1  ;;  %20 = vst.msk [vmem:[#allocation2] sm:$0xff] %vm19_vm0, %v198_v1  ;;  %v195_v2 = vld [vmem:[%s254_s1 + $0x8] sm:$0xff]  }
   0x2   :  { %21 = vst.msk [vmem:[#allocation2 + $0x8] sm:$0xff] %vm19_vm0, %v198_v1  ;;  %23 = vst.msk [vmem:[#allocation2 + $0x18] sm:$0xff] %vm19_vm0, %v198_v1  ;;  %185 = vmatprep.subr.bf16.mxu0 %v194_v0  ;;  %v196_v3 = vld [vmem:[%s255_s0] sm:$0xff]   ;;  %v197_v4 = vld [vmem:[%s255_s0 + $0x8] sm:$0xff]  }
   0x3   :  { %186 = vmatpush3.bf16.msra.mxu0 %v194_v0  ;;  %189 = vmatprep.mubr.msk.bf16.mxu0 %vm58_vm1, %v196_v3  ;;  %v172_v17 = vld [vmem:[%s256_s2] ss:$0 sm:$0xff] }
   0x4   :  { %187 = vmatprep.subr.bf16.mxu0 %v195_v2 }
   0x7   :  { %188 = vmatpush3.bf16.msra.mxu0 %v195_v2 }
   0x8   :  { %v26_v5 = vld [vmem:[#allocation2 + $0x10] sm:$0xff]  ;;  %v24_v6 = vld [vmem:[#allocation2] sm:$0xff] }
   0x9   :  { %v27_v8 = vld [vmem:[#allocation2 + $0x18] sm:$0xff]  ;;  %v25_v11 = vld [vmem:[#allocation2 + $0x8] sm:$0xff] }
   0xa   :  { %190 = vmatmul.mubr.msk.bf16.vlgmr.msra.gmra.mrb[0].mxu0 %vm58_vm1, %v197_v4 }
  0xdd   :  { %v191_v7 = vpop.f32.mrb[0].mxu0 }
  0xde   :  { %v116_v9 = vadd.f32 %v191_v7, %v26_v5  ;;  %v99_v10 = vpop.f32.mrb[1].mxu0 }
  0xdf   :  { %v114_v12 = vadd.f32 %v99_v10, %v24_v6  ;;  %v192_v13 = vpop.f32.mrb[2].mxu0 }
  0xe0   :  { %121 = vst.msk [vmem:[#allocation2 + $0x10] sm:$0xff] %vm19_vm0, %v116_v9  ;;  %v117_v14 = vadd.f32 %v192_v13, %v27_v8  ;;  %v102_v15 = vpop.f32.mrb[3].mxu0 }
  0xe1   :  { %119 = vst.msk [vmem:[#allocation2] sm:$0xff] %vm19_vm0, %v114_v12  ;;  %v115_v16 = vadd.f32 %v102_v15, %v25_v11 }
  0xe2   :  { %122 = vst.msk [vmem:[#allocation2 + $0x18] sm:$0xff] %vm19_vm0, %v117_v14 }
  0xe3   :  { %120 = vst.msk [vmem:[#allocation2 + $0x8] sm:$0xff] %vm19_vm0, %v115_v16 }
  0xe7   :  { %v128_v18 = vld [vmem:[#allocation2 + $0x10] sm:$0xff] }
  0xe8   :  { %v139_v19 = vadd.f32 %v172_v17, %v128_v18  ;;  %v126_v20 = vld [vmem:[#allocation2] sm:$0xff] }
  0xe9   :  { %v137_v21 = vadd.f32 %v172_v17, %v126_v20  ;;  %v129_v22 = vld [vmem:[#allocation2 + $0x18] sm:$0xff] }
  0xea   :  { %v179_v23 = vpack.c.bf16 %v139_v19, %v139_v19  ;;  %v140_v24 = vadd.f32 %v172_v17, %v129_v22  ;;  %v127_v25 = vld [vmem:[#allocation2 + $0x8] sm:$0xff] }
  0xeb   :  { %v177_v26 = vpack.c.bf16 %v137_v21, %v137_v21  ;;  %v138_v27 = vadd.f32 %v172_v17, %v127_v25 }
  0xec   :  { %160 = vst.msk [vmem:[%s257_s3 + $0x8] sm:$0xf] %vm157_vm2, %v179_v23  ;;  %v180_v28 = vpack.c.bf16 %v140_v24, %v140_v24 }
  0xed   :  { %158 = vst.msk [vmem:[%s257_s3] sm:$0xf] %vm157_vm2, %v177_v26  ;;  %v178_v29 = vpack.c.bf16 %v138_v27, %v138_v27 }
  0xee   :  { %161 = vst.msk [vmem:[%s257_s3 + $0xc] sm:$0xf] %vm157_vm2, %v180_v28 }
  0xef   :  { %159 = vst.msk [vmem:[%s257_s3 + $0x4] sm:$0xf] %vm157_vm2, %v178_v29 }

// kernel: forward.47
= control target key start
LH: loop header
LB: loop body
LE: loop exit
PB: predicated region body
PF: predicated region fallthrough
CT: control target
= control target key end

     0   :  { %vm19_vm0 = vcmask 261120   ;;  %v197_v1 = vmov 0.0   ;;  %vm156_vm1 = vcmask 257024   ;;  %s255_s1 = inlined_call_operand.vmem [shape: bf16[32,32], index: 1, kind: input, shape index: {}]   ;;  %s256_s0 = inlined_call_operand.vmem [shape: bf16[32,32], index: 0, kind: input, shape index: {}]   ;;  %s257_s2 = inlined_call_operand.vmem [shape: f32[1,32], index: 2, kind: input, shape index: {}]   ;;  %s258_s3 = inlined_call_operand.vmem [shape: bf16[32,32], index: 3, kind: output, shape index: {}]  }
   0x1   :  { %v193_v0 = vld [vmem:[%s255_s1] sm:$0xff]   ;;  %22 = vst.msk [vmem:[#allocation2 + $0x10] sm:$0xff] %vm19_vm0, %v197_v1  ;;  %20 = vst.msk [vmem:[#allocation2] sm:$0xff] %vm19_vm0, %v197_v1  ;;  %v194_v2 = vld [vmem:[%s255_s1 + $0x8] sm:$0xff]  }
   0x2   :  { %21 = vst.msk [vmem:[#allocation2 + $0x8] sm:$0xff] %vm19_vm0, %v197_v1  ;;  %23 = vst.msk [vmem:[#allocation2 + $0x18] sm:$0xff] %vm19_vm0, %v197_v1  ;;  %184 = vmatprep.subr.bf16.mxu0 %v193_v0  ;;  %v195_v3 = vld [vmem:[%s256_s0] sm:$0xff]   ;;  %v196_v4 = vld [vmem:[%s256_s0 + $0x8] sm:$0xff]  }
   0x3   :  { %185 = vmatpush3.bf16.msra.mxu0 %v193_v0  ;;  %188 = vmatprep.mubr.msk.bf16.mxu0 %vm19_vm0, %v195_v3  ;;  %v171_v17 = vld [vmem:[%s257_s2] ss:$0 sm:$0xff] }
   0x4   :  { %186 = vmatprep.subr.bf16.mxu0 %v194_v2 }
   0x7   :  { %187 = vmatpush3.bf16.msra.mxu0 %v194_v2 }
   0x8   :  { %v26_v5 = vld [vmem:[#allocation2 + $0x10] sm:$0xff]  ;;  %v24_v6 = vld [vmem:[#allocation2] sm:$0xff] }
   0x9   :  { %v27_v8 = vld [vmem:[#allocation2 + $0x18] sm:$0xff]  ;;  %v25_v11 = vld [vmem:[#allocation2 + $0x8] sm:$0xff] }
   0xa   :  { %189 = vmatmul.mubr.msk.bf16.vlgmr.msra.gmra.mrb[0].mxu0 %vm19_vm0, %v196_v4 }
  0xdd   :  { %v190_v7 = vpop.f32.mrb[0].mxu0 }
  0xde   :  { %v116_v9 = vadd.f32 %v190_v7, %v26_v5  ;;  %v99_v10 = vpop.f32.mrb[1].mxu0 }
  0xdf   :  { %v114_v12 = vadd.f32 %v99_v10, %v24_v6  ;;  %v191_v13 = vpop.f32.mrb[2].mxu0 }
  0xe0   :  { %120 = vst.msk [vmem:[#allocation2 + $0x10] sm:$0xff] %vm19_vm0, %v116_v9  ;;  %v117_v14 = vadd.f32 %v191_v13, %v27_v8  ;;  %v102_v15 = vpop.f32.mrb[3].mxu0 }
  0xe1   :  { %118 = vst.msk [vmem:[#allocation2] sm:$0xff] %vm19_vm0, %v114_v12  ;;  %v115_v16 = vadd.f32 %v102_v15, %v25_v11 }
  0xe2   :  { %121 = vst.msk [vmem:[#allocation2 + $0x18] sm:$0xff] %vm19_vm0, %v117_v14 }
  0xe3   :  { %119 = vst.msk [vmem:[#allocation2 + $0x8] sm:$0xff] %vm19_vm0, %v115_v16 }
  0xe7   :  { %v127_v18 = vld [vmem:[#allocation2 + $0x10] sm:$0xff] }
  0xe8   :  { %v138_v19 = vadd.f32 %v171_v17, %v127_v18  ;;  %v125_v20 = vld [vmem:[#allocation2] sm:$0xff] }
  0xe9   :  { %v136_v21 = vadd.f32 %v171_v17, %v125_v20  ;;  %v128_v22 = vld [vmem:[#allocation2 + $0x18] sm:$0xff] }
  0xea   :  { %v178_v23 = vpack.c.bf16 %v138_v19, %v138_v19  ;;  %v139_v24 = vadd.f32 %v171_v17, %v128_v22  ;;  %v126_v25 = vld [vmem:[#allocation2 + $0x8] sm:$0xff] }
  0xeb   :  { %v176_v26 = vpack.c.bf16 %v136_v21, %v136_v21  ;;  %v137_v27 = vadd.f32 %v171_v17, %v126_v25 }
  0xec   :  { %159 = vst.msk [vmem:[%s258_s3 + $0x8] sm:$0xf] %vm156_vm1, %v178_v23  ;;  %v179_v28 = vpack.c.bf16 %v139_v24, %v139_v24 }
  0xed   :  { %157 = vst.msk [vmem:[%s258_s3] sm:$0xf] %vm156_vm1, %v176_v26  ;;  %v177_v29 = vpack.c.bf16 %v137_v27, %v137_v27 }
  0xee   :  { %160 = vst.msk [vmem:[%s258_s3 + $0xc] sm:$0xf] %vm156_vm1, %v179_v28 }
  0xef   :  { %158 = vst.msk [vmem:[%s258_s3 + $0x4] sm:$0xf] %vm156_vm1, %v177_v29 }

// kernel: forward.49
= control target key start
LH: loop header
LB: loop body
LE: loop exit
PB: predicated region body
PF: predicated region fallthrough
CT: control target
= control target key end

     0   :  { %s1457_s12 = smov 0   ;;  %s1459_s13 = smov 0   ;;  %s1771_s0 = inlined_call_operand.vmem [shape: bf16[2,16,32], index: 0, kind: input, shape index: {}]   ;;  %s1772_s1 = inlined_call_operand.vmem [shape: bf16[2,16,64], index: 1, kind: input, shape index: {}]   ;;  %s1773_s2 = inlined_call_operand.vmem [shape: f32[2,1,16], index: 2, kind: input, shape index: {}]   ;;  %s1774_s3 = inlined_call_operand.vmem [shape: bf16[2,16,32], index: 3, kind: output, shape index: {}]  }
   0x1   :  { %s1461_s14 = smov 0  }
   0x2 LB: > { %s32_s15 = sadd.s32 1, %s1413_s13  ;;  %p1205_p0 = scmp.ge.s32.totalorder %s1417_s14, 1  ;;  %s1417_s14 = sphi %s1461_s14, %s13_s14   ;;  %s1413_s13 = sphi %s1459_s13, %s1776_s13   ;;  %s1409_s12 = sphi %s1457_s12, %s1775_s12  }
   0x3   : > { %p34_p1 = scmp.ge.s32.totalorder %s32_s15, 2  ;;  %p195_p2 = scmp.lt.s32.totalorder %s1417_s14, 3 }
   0x5   : > { %s1778_s15 = smov (%p34_p1, %s32_s15), 0  ;;  %p196_p3 = pnand %p1205_p0, %p195_p2 }
   0x6   : > { %p243_p4 = scmp.lt.s32.totalorder (!%p196_p3), %s1409_s12, 1  ;;  %v1419_v0 = vmov (!%p196_p3), 0.0   ;;  %vm1420_vm0 = vmmov (!%p196_p3), 0   ;;  %vm314_vm1 = vcmask (!%p196_p3), 64512   ;;  %vm283_vm2 = vcmask (!%p196_p3), 31744   ;;  %s1424_s26 = smov (!%p196_p3), 96  }
   0x7   : > { %199 = sbr.rel (%p196_p3) target bundleno = 1467 (0x5bb), region = 32  ;;  %1247 = vmatprep.subr.bf16.mxu0 (!%p196_p3), %v1419_v0  ;;  %1249 = vmatprep.mubr.msk.bf16.mxu0 (!%p196_p3), %vm1420_vm0, %v1419_v0  ;;  %v1421_v4 = vmov (!%p196_p3), -inf   ;;  %286 = vst.msk [vmem:[#allocation4] sm:$0xff] (!%p196_p3), %vm283_vm2, %v1419_v0  ;;  %287 = vst.msk [vmem:[#allocation4 + $0x8] sm:$0xff] (!%p196_p3), %vm283_vm2, %v1419_v0  ;;  %v299_v5 = vlaneseq (!%p196_p3)  ;;  %v1422_v9 = vmov (!%p196_p3), -1e+09  }
   0x8   : > { %1253 = vmatprep.subr.bf16.mxu1 (!%p196_p3), %v1419_v0  ;;  %1255 = vmatprep.mubr.msk.bf16.mxu1 (!%p196_p3), %vm1420_vm0, %v1419_v0  ;;  %284 = vst.msk [vmem:[#allocation3] sm:$0xff] (!%p196_p3), %vm283_vm2, %v1421_v4  ;;  %285 = vst.msk [vmem:[#allocation3 + $0x8] sm:$0xff] (!%p196_p3), %vm283_vm2, %v1421_v4  ;;  %vm364_vm4 = vcmask (!%p196_p3), 130048   ;;  %v1423_v20 = vmov (!%p196_p3), 0   ;;  %vm407_vm5 = vcmask (!%p196_p3), 7168   ;;  %s1425_s27 = smov (!%p196_p3), 120  }
   0x9   : > { %v300_v7 = vshrl.u32 (!%p196_p3), %v299_v5, 7  ;;  %1337 = vset.pattern.permute.xlu1 (!%p196_p3), %v1423_v20  ;;  %s1426_s28 = smov (!%p196_p3), 112   ;;  %s1427_s29 = smov (!%p196_p3), 104   ;;  %vm573_vm6 = vcmask (!%p196_p3), 15368   ;;  %vm748_vm7 = vcmask (!%p196_p3), 23568   ;;  %vm923_vm8 = vcmask (!%p196_p3), 31768  }
   0xa   : > { %s1430_s30 = smov (!%p196_p3), 88   ;;  %s1432_s4 = smov (!%p196_p3), 80   ;;  %vm288_vm9 = vcmask (!%p196_p3), 261120   ;;  %vm648_vm10 = vcmask (!%p196_p3), 130112   ;;  %vm823_vm11 = vcmask (!%p196_p3), 195712   ;;  %vm998_vm12 = vcmask (!%p196_p3), 261312  }
   0xb   : > { %v301_v8 = vsub.s32 (!%p196_p3), 0, %v300_v7  ;;  %s1433_s5 = smov (!%p196_p3), 72   ;;  %289 = vst.msk [vmem:[#allocation2] sm:$0xff] (!%p196_p3), %vm288_vm9, %v1419_v0  ;;  %290 = vst.msk [vmem:[#allocation2 + $0x8] sm:$0xff] (!%p196_p3), %vm288_vm9, %v1419_v0  ;;  %s1434_s6 = smov (!%p196_p3), 8   ;;  %vm1078_vm13 = vcmask (!%p196_p3), 257024  }
   0xc   : > { %s1435_s7 = smov (!%p196_p3), 16   ;;  %s1436_s8 = smov (!%p196_p3), 24  }
   0xe   : > { %s1780_s12 = smov (!%p243_p4, %s1409_s12), 1 }
   0xf   : > { %s1481_s16 = sshll.u32 %s1780_s12, 3  ;;  %s267_s25 = scalar_lea.vmem %s1773_s2, %s1780_s12  ;;  %v1512_v21 = vld [vmem:[#allocation3] sm:$0xff]  ;;  %v1517_v24 = vld [vmem:[#allocation3 + $0x8] sm:$0xff] }
  0x10   : > { %s260_s19 = scalar_lea.vmem %s1772_s1, %s1481_s16  ;;  %s250_s22 = scalar_lea.vmem %s1771_s0, %s1481_s16  ;;  %v291_v6 = vld [vmem:[%s267_s25] sm:$0x1] }
  0x11   : > { %v1487_v1 = vld [vmem:[%s260_s19] sm:$0xff]   ;;  %vm292_vm3 = vcmp.gt.f32.partialorder %v291_v6, 0.0  ;;  %s276_s11 = scalar_lea.vmem %s1774_s3, %s1481_s16 }
  0x12   : > { %v319_v2 = vsel %vm314_vm1, %v1487_v1, 0  ;;  %v1358_v3 = vld [vmem:[%s250_s22] sm:$0xff]   ;;  %v293_v10 = vsel %vm292_vm3, 0.0, %v1422_v9 }
  0x13   : > { %1248 = vmatpush3.bf16.xpose.msra.mxu0 %v319_v2  ;;  %v1504_v11 = vrot.slane %v293_v10, %v301_v8 }
  0x14   : > { %1265 = vmatprep.subr.bf16.mxu0 %v1419_v0 }
  0x1a   : > { %1250 = vmatmul.mubr.msk.bf16.vlgmr.msra.gmra.mrb[0].mxu0 %vm314_vm1, %v1358_v3 }
  0x1b   : > { %1267 = vmatprep.mubr.msk.bf16.mxu0 %vm1420_vm0, %v1419_v0 }
  0xed   : > { %v355_v12 = vpop.f32.mrb[0].mxu0 }
  0xee   : > { %v356_v13 = vadd.f32 %v355_v12, %v1504_v11  ;;  %v1251_v14 = vpop.f32.mrb[1].mxu0 }
  0xef   : > { %v358_v15 = vpop.f32.mrb[2].mxu0  ;;  %v1428_v14 = vmov 1  }
  0xf0   : > { %v359_v16 = vadd.f32 %v358_v15, %v1504_v11  ;;  %v1252_v17 = vpop.f32.mrb[3].mxu0  ;;  %v365_v18 = vsel %vm364_vm4, %v356_v13, -inf  ;;  %1339 = vset.pattern.permute.xlu0 %v1428_v14 }
  0xf1   : > { %366 = vmax.xlane.f32.xlu0 %v365_v18 }
  0xf2   : > { %v368_v19 = vsel %vm364_vm4, %v359_v16, -inf }
  0xf5   : > { %369 = vmax.xlane.f32.xlu0 %v368_v19 }
 0x10b   : > { %425 = vrot.lane.b32.xlu0 %v1487_v1, %s1424_s26 }
 0x17e   : > { %v367_v22 = vpop.xlane.xlu0 %366 }
 0x17f   : > { %v1515_v23 = vmax.f32 %v1512_v21, %v367_v22 }
 0x181   : > { %v373_v25 = vsub.f32 %v1512_v21, %v1515_v23  ;;  %476 = vst.msk [vmem:[#allocation3] sm:$0xff] %vm407_vm5, %v1515_v23  ;;  %381 = vperm.xlu1 %1337, %v1515_v23  }
 0x182   : > { %v370_v26 = vpop.xlane.xlu0 %369 }
 0x183   : > { %v1525_v27 = vmax.f32 %v1517_v24, %v370_v26 }
 0x185   : > { %v374_v28 = vsub.f32 %v1517_v24, %v1525_v27  ;;  %477 = vst.msk [vmem:[#allocation3 + $0x8] sm:$0xff] %vm407_vm5, %v1525_v27  ;;  %386 = vperm.xlu1 %1337, %v1525_v27  }
 0x186   : > { %v426_v29 = vpop.permute.xlu0 %425 }
 0x187   : > { %1254 = vmatpush3.bf16.msra.mxu1 %v426_v29 }
 0x188   : > { %1259 = vmatprep.subr.bf16.mxu1 %v1419_v0 }
 0x189   : > { %480 = vrot.lane.b32.xlu1 %v1487_v1, %s1425_s27 }
 0x18a   : > { %1338 = vset.pattern.permute.xlu1 %v1428_v14 }
 0x18c   : > { %v1598_v18 = vld [vmem:[#allocation3 + $0x8] sm:$0xff] }
 0x18d   : > { %478 = vrot.lane.b32.xlu1 %v1358_v3, %s1425_s27 }
 0x191   : > { %655 = vrot.lane.b32.xlu1 %v1487_v1, %s1426_s28 }
 0x195   : > { %653 = vrot.lane.b32.xlu1 %v1358_v3, %s1426_s28 }
 0x199   : > { %830 = vrot.lane.b32.xlu1 %v1487_v1, %s1427_s29 }
 0x19d   : > { %828 = vrot.lane.b32.xlu1 %v1358_v3, %s1427_s29 }
 0x200   : > { %v382_v30 = vpop.permute.xlu1 %381 }
 0x201   : > { %v389_v31 = vsub.f32 %v356_v13, %v382_v30  ;;  %v1429_v30 = vmov 2  }
 0x203   : > { %v391_v32 = vmul.f32 1.442695, %v389_v31 }
 0x204   : > { %v387_v33 = vpop.permute.xlu1 %386 }
 0x205   : > { %v390_v34 = vsub.f32 %v359_v16, %v387_v33  ;;  %1359 = vpow2.f32 %v391_v32  ;;  %v1593_v16 = vld [vmem:[#allocation3] sm:$0xff] }
 0x207   : > { %v393_v35 = vmul.f32 1.442695, %v390_v34 }
 0x208   : > { %v481_v36 = vpop.permute.xlu1 %480 }
 0x209   : > { %1361 = vpow2.f32 %v393_v35  ;;  %v486_v40 = vsel %vm314_vm1, %v481_v36, 0 }
 0x20c   : > { %v479_v37 = vpop.permute.xlu1 %478 }
 0x20f   : > { %v1536_v38 = vpop.eup %1359 }
 0x210   : > { %v656_v42 = vpop.permute.xlu1 %655 }
 0x211   : > { %v661_v44 = vsel %vm314_vm1, %v656_v42, 0 }
 0x213   : > { %v1538_v39 = vpop.eup %1361 }
 0x214   : > { %v424_v41 = vpack.c.bf16 %v1538_v39, %v1536_v38  ;;  %v654_v43 = vpop.permute.xlu1 %653 }
 0x216   : > { %1256 = vmatmul.mubr.msk.bf16.vlgmr.msra.gmra.mrb[0].mxu1 %vm364_vm4, %v424_v41 }
 0x217   : > { %1260 = vmatpush3.bf16.xpose.msra.mxu1 %v486_v40  ;;  %1261 = vmatprep.mubr.msk.bf16.mxu1 %vm1420_vm0, %v1419_v0 }
 0x218   : > { %1271 = vmatprep.subr.bf16.mxu1 %v1419_v0  ;;  %v831_v45 = vpop.permute.xlu1 %830 }
 0x219   : > { %v836_v46 = vsel %vm314_vm1, %v831_v45, 0 }
 0x21c   : > { %v829_v47 = vpop.permute.xlu1 %828 }
 0x21e   : > { %1262 = vmatmul.mubr.msk.bf16.vlgmr.msra.gmra.mrb[4].mxu1 %vm314_vm1, %v479_v37 }
 0x21f   : > { %1272 = vmatpush3.bf16.xpose.msra.mxu1 %v661_v44  ;;  %1273 = vmatprep.mubr.msk.bf16.mxu1 %vm1420_vm0, %v1419_v0 }
 0x220   : > { %1283 = vmatprep.subr.bf16.mxu1 %v1419_v0 }
 0x226   : > { %1274 = vmatmul.mubr.msk.bf16.vlgmr.msra.gmra.mrb[8].mxu1 %vm314_vm1, %v654_v43 }
 0x227   : > { %1284 = vmatpush3.bf16.xpose.msra.mxu1 %v836_v46  ;;  %1285 = vmatprep.mubr.msk.bf16.mxu1 %vm1420_vm0, %v1419_v0  ;;  %v1431_v46 = vmov 3  }
 0x22e   : > { %1286 = vmatmul.mubr.msk.bf16.vlgmr.msra.gmra.mrb[12].mxu1 %vm314_vm1, %v829_v47 }
 0x2e9   : > { %v1557_v48 = vpop.f32.mrb[0].mxu1 }
 0x2ea   : > { %v1257_v49 = vpop.f32.mrb[1].mxu1 }
 0x2eb   : > { %v1559_v50 = vpop.f32.mrb[2].mxu1 }
 0x2ec   : > { %v1258_v51 = vpop.f32.mrb[3].mxu1 }
 0x2f1   : > { %v522_v52 = vpop.f32.mrb[4].mxu1 }
 0x2f2   : > { %v1562_v53 = vadd.f32 %v522_v52, %v1504_v11  ;;  %v1263_v54 = vpop.f32.mrb[5].mxu1  ;;  %v399_v52 = vsel %vm364_vm4, %v1536_v38, 0.0  ;;  %v402_v38 = vsel %vm364_vm4, %v1538_v39, 0.0 }
 0x2f3   : > { %v525_v55 = vpop.f32.mrb[6].mxu1  ;;  %v375_v54 = vmul.f32 1.442695, %v373_v25 }
 0x2f4   : > { %v1565_v56 = vadd.f32 %v525_v55, %v1504_v11  ;;  %v1264_v57 = vpop.f32.mrb[7].mxu1  ;;  %v531_v58 = vsel %vm364_vm4, %v1562_v53, -inf }
 0x2f5   : > { %532 = vmax.xlane.f32.xlu0 %v531_v58  ;;  %1363 = vpow2.f32 %v375_v54  ;;  %v395_v54 = vld [vmem:[#allocation4] sm:$0xff] }
 0x2f6   : > { %v534_v59 = vsel %vm364_vm4, %v1565_v56, -inf }
 0x2f7   : > { %535 = vmax.xlane.f32.xlu1 %v534_v59 }
 0x2f9   : > { %v697_v60 = vpop.f32.mrb[8].mxu1 }
 0x2fa   : > { %v1572_v61 = vadd.f32 %v697_v60, %v1504_v11  ;;  %v1275_v62 = vpop.f32.mrb[9].mxu1 }
 0x2fb   : > { %v700_v63 = vpop.f32.mrb[10].mxu1 }
 0x2fc   : > { %v1575_v2 = vadd.f32 %v700_v63, %v1504_v11  ;;  %v1276_v3 = vpop.f32.mrb[11].mxu1  ;;  %v706_v4 = vsel %vm364_vm4, %v1572_v61, -inf }
 0x2fd   : > { %707 = vmax.xlane.f32.xlu0 %v706_v4 }
 0x2fe   : > { %v709_v5 = vsel %vm364_vm4, %v1575_v2, -inf }
 0x2ff   : > { %v1667_v55 = vpop.eup %1363 }
 0x301   : > { %710 = vmax.xlane.f32.xlu0 %v709_v5  ;;  %v872_v6 = vpop.f32.mrb[12].mxu1 }
 0x302   : > { %v1582_v7 = vadd.f32 %v872_v6, %v1504_v11  ;;  %v1287_v8 = vpop.f32.mrb[13].mxu1 }
 0x303   : > { %v875_v9 = vpop.f32.mrb[14].mxu1 }
 0x304   : > { %v1585_v10 = vadd.f32 %v875_v9, %v1504_v11  ;;  %v1288_v12 = vpop.f32.mrb[15].mxu1  ;;  %v881_v13 = vsel %vm364_vm4, %v1582_v7, -inf }
 0x305   : > { %882 = vmax.xlane.f32.xlu1 %v881_v13 }
 0x306   : > { %v884_v15 = vsel %vm364_vm4, %v1585_v10, -inf }
 0x307   : > { %885 = vmax.xlane.f32.xlu0 %v884_v15 }
 0x382   : > { %v533_v17 = vpop.xlane.xlu0 %532 }
 0x383   : > { %v1596_v11 = vmax.f32 %v1593_v16, %v533_v17 }
 0x384   : > { %v536_v19 = vpop.xlane.xlu1 %535 }
 0x385   : > { %v539_v22 = vsub.f32 %v1593_v16, %v1596_v11  ;;  %651 = vst.msk [vmem:[#allocation3] sm:$0xff] %vm573_vm6, %v1596_v11  ;;  %v1605_v26 = vmax.f32 %v1598_v18, %v536_v19  ;;  %547 = vperm.xlu1 %1338, %v1596_v11  }
 0x387   : > { %v540_v29 = vsub.f32 %v1598_v18, %v1605_v26  ;;  %652 = vst.msk [vmem:[#allocation3 + $0x8] sm:$0xff] %vm573_vm6, %v1605_v26  ;;  %552 = vperm.xlu0 %1339, %v1605_v26   ;;  %v541_v6 = vmul.f32 1.442695, %v539_v22  ;;  %v396_v26 = vld [vmem:[#allocation4 + $0x8] sm:$0xff] }
 0x389   : > { %1340 = vset.pattern.permute.xlu1 %v1429_v30 }
 0x38a   : > { %v708_v31 = vpop.xlane.xlu0 %707 }
 0x38b   : > { %1342 = vset.pattern.permute.xlu0 %v1423_v20 }
 0x38c   : > { %v1615_v32 = vld [vmem:[#allocation3] sm:$0xff] }
 0x38d   : > { %v1618_v33 = vmax.f32 %v1615_v32, %v708_v31 }
 0x38e   : > { %v1620_v34 = vld [vmem:[#allocation3 + $0x8] sm:$0xff]  ;;  %v711_v35 = vpop.xlane.xlu0 %710 }
 0x38f   : > { %v714_v36 = vsub.f32 %v1615_v32, %v1618_v33  ;;  %826 = vst.msk [vmem:[#allocation3] sm:$0xff] %vm748_vm7, %v1618_v33  ;;  %v1627_v37 = vmax.f32 %v1620_v34, %v711_v35  ;;  %722 = vperm.xlu1 %1340, %v1618_v33  }
 0x391   : > { %v715_v40 = vsub.f32 %v1620_v34, %v1627_v37  ;;  %827 = vst.msk [vmem:[#allocation3 + $0x8] sm:$0xff] %vm748_vm7, %v1627_v37 }
 0x392   : > { %v883_v41 = vpop.xlane.xlu1 %882 }
 0x393   : > { %727 = vperm.xlu1 %1340, %v1627_v37  }
 0x394   : > { %v886_v43 = vpop.xlane.xlu0 %885 }
 0x396   : > { %v1635_v42 = vld [vmem:[#allocation3] sm:$0xff] }
 0x397   : > { %v1638_v44 = vmax.f32 %v1635_v42, %v883_v41  ;;  %591 = vrot.lane.b32.xlu1 %v1487_v1, %s1430_s30 }
 0x398   : > { %v1641_v45 = vld [vmem:[#allocation3 + $0x8] sm:$0xff]  ;;  %1341 = vset.pattern.permute.xlu1 %v1431_v46 }
 0x399   : > { %v889_v47 = vsub.f32 %v1635_v42, %v1638_v44  ;;  %1001 = vst.msk [vmem:[#allocation3] sm:$0xff] %vm923_vm8, %v1638_v44  ;;  %v1649_v49 = vmax.f32 %v1641_v45, %v886_v43 }
 0x39b   : > { %v890_v51 = vsub.f32 %v1641_v45, %v1649_v49  ;;  %1002 = vst.msk [vmem:[#allocation3 + $0x8] sm:$0xff] %vm923_vm8, %v1649_v49  ;;  %897 = vperm.xlu1 %1341, %v1638_v44  }
 0x39d   : > { %v893_v42 = vmul.f32 1.442695, %v890_v51 }
 0x39f   : > { %902 = vperm.xlu1 %1341, %v1649_v49  }
 0x3a3   : > { %766 = vrot.lane.b32.xlu1 %v1487_v1, %s1432_s4 }
 0x3a4   : > { %1343 = vset.pattern.permute.xlu1 %v1423_v20 }
 0x3a6   : > { %400 = vadd.xlane.f32.xlu0 %v399_v52 }
 0x3a7   : > { %941 = vrot.lane.b32.xlu1 %v1487_v1, %s1433_s5  ;;  %v377_v1 = vmul.f32 1.442695, %v374_v28 }
 0x3a9   : > { %1365 = vpow2.f32 %v377_v1 }
 0x3b3   : > { %v1676_v21 = vpop.eup %1365 }
 0x3bc   : > { %414 = vperm.xlu0 %1342, %v1667_v55  }
 0x3c0   : > { %1345 = vset.pattern.permute.xlu0 %v1428_v14 }
 0x3cb   : > { %403 = vadd.xlane.f32.xlu1 %v402_v38  ;;  %v397_v38 = vmul.f32 %v1667_v55, %v395_v54 }
 0x3dc   : > { %419 = vperm.xlu1 %1343, %v1676_v21  }
 0x3e0   : > { %1344 = vset.pattern.permute.xlu1 %v1428_v14 }
 0x404   : > { %v548_v23 = vpop.permute.xlu1 %547 }
 0x405   : > { %v555_v25 = vsub.f32 %v1562_v53, %v548_v23 }
 0x406   : > { %v553_v57 = vpop.permute.xlu0 %552 }
 0x407   : > { %v557_v58 = vmul.f32 1.442695, %v555_v25  ;;  %v556_v59 = vsub.f32 %v1565_v56, %v553_v57  ;;  %v410_v25 = vld [vmem:[#allocation2] sm:$0xff]  ;;  %v716_v57 = vmul.f32 1.442695, %v714_v36 }
 0x409   : > { %1367 = vpow2.f32 %v557_v58  ;;  %v559_v39 = vmul.f32 1.442695, %v556_v59 }
 0x40b   : > { %1369 = vpow2.f32 %v559_v39 }
 0x40e   : > { %v723_v60 = vpop.permute.xlu1 %722 }
 0x40f   : > { %v730_v24 = vsub.f32 %v1572_v61, %v723_v60 }
 0x411   : > { %v732_v27 = vmul.f32 1.442695, %v730_v24 }
 0x412   : > { %v728_v28 = vpop.permute.xlu1 %727 }
 0x413   : > { %v1368_v62 = vpop.eup %1367  ;;  %1371 = vpow2.f32 %v732_v27  ;;  %v731_v63 = vsub.f32 %v1575_v2, %v728_v28 }
 0x414   : > { %v565_v3 = vsel %vm364_vm4, %v1368_v62, 0.0 }
 0x415   : > { %v1370_v4 = vpop.eup %1369  ;;  %v734_v53 = vmul.f32 1.442695, %v731_v63  ;;  %566 = vadd.xlane.f32.xlu1 %v565_v3 }
 0x416   : > { %v592_v5 = vpop.permute.xlu1 %591  ;;  %v568_v56 = vsel %vm364_vm4, %v1370_v4, 0.0  ;;  %v590_v61 = vpack.c.bf16 %v1370_v4, %v1368_v62 }
 0x417   : > { %1373 = vpow2.f32 %v734_v53  ;;  %1266 = vmatpush3.bf16.msra.mxu0 %v592_v5  ;;  %569 = vadd.xlane.f32.xlu0 %v568_v56  ;;  %v891_v56 = vmul.f32 1.442695, %v889_v47 }
 0x418   : > { %1277 = vmatprep.subr.bf16.mxu0 %v1419_v0  ;;  %1375 = vpow2.f32 %v541_v6 }
 0x41a   : > { %v898_v8 = vpop.permute.xlu1 %897  ;;  %1268 = vmatmul.mubr.msk.bf16.vlgmr.msra.gmra.mrb[4].mxu0 %vm364_vm4, %v590_v61 }
 0x41b   : > { %v905_v2 = vsub.f32 %v1582_v7, %v898_v8  ;;  %1279 = vmatprep.mubr.msk.bf16.mxu0 %vm1420_vm0, %v1419_v0 }
 0x41d   : > { %v1372_v9 = vpop.eup %1371  ;;  %v907_v12 = vmul.f32 1.442695, %v905_v2 }
 0x41e   : > { %v903_v13 = vpop.permute.xlu1 %902  ;;  %v740_v15 = vsel %vm364_vm4, %v1372_v9, 0.0 }
 0x41f   : > { %1377 = vpow2.f32 %v907_v12  ;;  %v906_v16 = vsub.f32 %v1585_v10, %v903_v13  ;;  %741 = vadd.xlane.f32.xlu0 %v740_v15 }
 0x421   : > { %v1374_v17 = vpop.eup %1373  ;;  %v909_v11 = vmul.f32 1.442695, %v906_v16  ;;  %v718_v16 = vmul.f32 1.442695, %v715_v40 }
 0x422   : > { %v767_v19 = vpop.permute.xlu1 %766  ;;  %v765_v22 = vpack.c.bf16 %v1374_v17, %v1372_v9  ;;  %v1376_v7 = vpop.eup %1375  ;;  %v743_v18 = vsel %vm364_vm4, %v1374_v17, 0.0 }
 0x423   : > { %1379 = vpow2.f32 %v909_v11  ;;  %1278 = vmatpush3.bf16.msra.mxu0 %v767_v19 }
 0x424   : > { %1289 = vmatprep.subr.bf16.mxu0 %v1419_v0 }
 0x426   : > { %580 = vperm.xlu1 %1344, %v1376_v7   ;;  %1280 = vmatmul.mubr.msk.bf16.vlgmr.msra.gmra.mrb[8].mxu0 %vm364_vm4, %v765_v22  ;;  %v942_v31 = vpop.permute.xlu1 %941 }
 0x427   : > { %1290 = vmatpush3.bf16.msra.mxu0 %v942_v31  ;;  %1291 = vmatprep.mubr.msk.bf16.mxu0 %vm1420_vm0, %v1419_v0  ;;  %v543_v0 = vmul.f32 1.442695, %v540_v29  ;;  %v398_v29 = vmul.f32 %v1676_v21, %v396_v26 }
 0x429   : > { %v1378_v35 = vpop.eup %1377  ;;  %1381 = vpow2.f32 %v543_v0 }
 0x42a   : > { %v915_v10 = vsel %vm364_vm4, %v1378_v35, 0.0  ;;  %1347 = vset.pattern.permute.xlu1 %v1429_v30  ;;  %1383 = vpow2.f32 %v716_v57 }
 0x42b   : > { %916 = vadd.xlane.f32.xlu0 %v915_v10  ;;  %1385 = vpow2.f32 %v891_v56 }
 0x42c   : > { %1387 = vpow2.f32 %v718_v16 }
 0x42d   : > { %v1380_v41 = vpop.eup %1379  ;;  %1389 = vpow2.f32 %v893_v42 }
 0x42e   : > { %v918_v43 = vsel %vm364_vm4, %v1380_v41, 0.0  ;;  %v940_v52 = vpack.c.bf16 %v1380_v41, %v1378_v35 }
 0x42f   : > { %919 = vadd.xlane.f32.xlu0 %v918_v43 }
 0x430   : > { %1292 = vmatmul.mubr.msk.bf16.vlgmr.msra.gmra.mrb[12].mxu0 %vm364_vm4, %v940_v52 }
 0x433   : > { %v401_v1 = vpop.xlane.xlu0 %400  ;;  %v1382_v55 = vpop.eup %1381 }
 0x434   : > { %v405_v23 = vadd.f32 %v401_v1, %v397_v38  ;;  %v1384_v60 = vpop.eup %1383 }
 0x435   : > { %v1386_v2 = vpop.eup %1385 }
 0x436   : > { %408 = vst.msk [vmem:[#allocation4] sm:$0xff] %vm407_vm5, %v405_v23  ;;  %v1388_v17 = vpop.eup %1387 }
 0x43b   : > { %v415_v58 = vpop.permute.xlu0 %414 }
 0x43c   : > { %v422_v59 = vmul.f32 %v415_v58, %v410_v25 }
 0x43d   : > { %v561_v28 = vld [vmem:[#allocation4] sm:$0xff] }
 0x43e   : > { %v472_v39 = vadd.f32 %v1557_v48, %v422_v59  ;;  %v411_v48 = vld [vmem:[#allocation2 + $0x8] sm:$0xff]  ;;  %v563_v63 = vmul.f32 %v1376_v7, %v561_v28  ;;  %v1390_v7 = vpop.eup %1389 }
 0x440   : > { %474 = vst.msk [vmem:[#allocation2] sm:$0xff] %vm314_vm1, %v472_v39 }
 0x445   : > { %585 = vperm.xlu0 %1345, %v1382_v55  }
 0x449   : > { %1346 = vset.pattern.permute.xlu0 %v1429_v30 }
 0x44a   : > { %744 = vadd.xlane.f32.xlu1 %v743_v18  ;;  %755 = vperm.xlu0 %1346, %v1384_v60  }
 0x44e   : > { %1349 = vset.pattern.permute.xlu0 %v1431_v46 }
 0x458   : > { %v404_v32 = vpop.xlane.xlu1 %403 }
 0x459   : > { %v406_v33 = vadd.f32 %v404_v32, %v398_v29 }
 0x45b   : > { %409 = vst.msk [vmem:[#allocation4 + $0x8] sm:$0xff] %vm407_vm5, %v406_v33 }
 0x45c   : > { %v420_v36 = vpop.permute.xlu1 %419 }
 0x45d   : > { %v423_v24 = vmul.f32 %v420_v36, %v411_v48 }
 0x45f   : > { %v473_v27 = vadd.f32 %v1559_v50, %v423_v24 }
 0x461   : > { %475 = vst.msk [vmem:[#allocation2 + $0x8] sm:$0xff] %vm314_vm1, %v473_v27 }
 0x462   : > { %v562_v62 = vld [vmem:[#allocation4 + $0x8] sm:$0xff] }
 0x463   : > { %v564_v53 = vmul.f32 %v1382_v55, %v562_v62 }
 0x468   : > { %v577_v18 = vld [vmem:[#allocation2 + $0x8] sm:$0xff] }
 0x4a2   : > { %v567_v3 = vpop.xlane.xlu1 %566 }
 0x4a3   : > { %v571_v4 = vadd.f32 %v567_v3, %v563_v63 }
 0x4a4   : > { %v570_v5 = vpop.xlane.xlu0 %569 }
 0x4a5   : > { %574 = vst.msk [vmem:[#allocation4] sm:$0xff] %vm573_vm6, %v571_v4  ;;  %v572_v21 = vadd.f32 %v570_v5, %v564_v53 }
 0x4a6   : > { %v581_v44 = vpop.permute.xlu1 %580 }
 0x4a7   : > { %575 = vst.msk [vmem:[#allocation4 + $0x8] sm:$0xff] %vm573_vm6, %v572_v21 }
 0x4ac   : > { %v736_v6 = vld [vmem:[#allocation4] sm:$0xff]  ;;  %v742_v61 = vpop.xlane.xlu0 %741 }
 0x4ad   : > { %v738_v50 = vmul.f32 %v1384_v60, %v736_v6 }
 0x4ae   : > { %v737_v47 = vld [vmem:[#allocation4 + $0x8] sm:$0xff] }
 0x4af   : > { %v746_v8 = vadd.f32 %v742_v61, %v738_v50  ;;  %v739_v11 = vmul.f32 %v1388_v17, %v737_v47 }
 0x4b1   : > { %749 = vst.msk [vmem:[#allocation4] sm:$0xff] %vm748_vm7, %v746_v8 }
 0x4b8   : > { %v911_v9 = vld [vmem:[#allocation4] sm:$0xff]  ;;  %v917_v13 = vpop.xlane.xlu0 %916 }
 0x4b9   : > { %v913_v12 = vmul.f32 %v1386_v2, %v911_v9 }
 0x4bb   : > { %v921_v15 = vadd.f32 %v917_v13, %v913_v12 }
 0x4bc   : > { %v920_v10 = vpop.xlane.xlu0 %919 }
 0x4bd   : > { %924 = vst.msk [vmem:[#allocation4] sm:$0xff] %vm923_vm8, %v921_v15 }
 0x4c4   : > { %v1006_v51 = vld [vmem:[#allocation4] sm:$0xff]  ;;  %v586_v39 = vpop.permute.xlu0 %585 }
 0x4c5   : > { %1391 = vrcp.f32 %v1006_v51  ;;  %v589_v26 = vmul.f32 %v586_v39, %v577_v18 }
 0x4cf   : > { %v1392_v23 = vpop.eup %1391 }
 0x4d7   : > { %v745_v19 = vpop.xlane.xlu1 %744 }
 0x4d8   : > { %v747_v22 = vadd.f32 %v745_v19, %v739_v11 }
 0x4da   : > { %750 = vst.msk [vmem:[#allocation4 + $0x8] sm:$0xff] %vm748_vm7, %v747_v22 }
 0x4e1   : > { %v912_v31 = vld [vmem:[#allocation4 + $0x8] sm:$0xff] }
 0x4e2   : > { %v914_v35 = vmul.f32 %v1390_v7, %v912_v31 }
 0x4e4   : > { %v922_v34 = vadd.f32 %v920_v10, %v914_v35 }
 0x4e6   : > { %925 = vst.msk [vmem:[#allocation4 + $0x8] sm:$0xff] %vm923_vm8, %v922_v34 }
 0x4ed   : > { %v631_v37 = vpop.f32.mrb[4].mxu0  ;;  %v1007_v54 = vld [vmem:[#allocation4 + $0x8] sm:$0xff] }
 0x4ee   : > { %640 = vrot.lane.b32.xlu1 %v631_v37, %s1434_s6  ;;  %v1269_v40 = vpop.f32.mrb[5].mxu0  ;;  %1393 = vrcp.f32 %v1007_v54 }
 0x4ef   : > { %v634_v45 = vpop.f32.mrb[6].mxu0 }
 0x4f0   : > { %v1270_v49 = vpop.f32.mrb[7].mxu0 }
 0x4f2   : > { %642 = vrot.lane.b32.xlu1 %v634_v45, %s1434_s6 }
 0x4f6   : > { %760 = vperm.xlu1 %1347, %v1388_v17  }
 0x4f8   : > { %v1394_v58 = vpop.eup %1393 }
 0x4f9   : > { %v806_v41 = vpop.f32.mrb[8].mxu0 }
 0x4fa   : > { %815 = vrot.lane.b32.xlu1 %v806_v41, %s1435_s7  ;;  %v1281_v43 = vpop.f32.mrb[9].mxu0 }
 0x4fb   : > { %v809_v52 = vpop.f32.mrb[10].mxu0  ;;  %1348 = vset.pattern.permute.xlu1 %v1431_v46 }
 0x4fc   : > { %817 = vrot.lane.b32.xlu0 %v809_v52, %s1435_s7  ;;  %v1282_v38 = vpop.f32.mrb[11].mxu0 }
 0x4fe   : > { %930 = vperm.xlu1 %1348, %v1386_v2  }
 0x500   : > { %935 = vperm.xlu0 %1349, %v1390_v7  }
 0x502   : > { %1351 = vset.pattern.permute.xlu1 %v1423_v20 }
 0x503   : > { %v981_v1 = vpop.f32.mrb[12].mxu0 }
 0x504   : > { %1350 = vset.pattern.permute.xlu0 %v1423_v20  ;;  %990 = vrot.lane.b32.xlu1 %v981_v1, %s1436_s8  ;;  %v1293_v0 = vpop.f32.mrb[13].mxu0  ;;  %v576_v20 = vld [vmem:[#allocation2] sm:$0xff] }
 0x505   : > { %1014 = vperm.xlu0 %1350, %v1392_v23   ;;  %v984_v25 = vpop.f32.mrb[14].mxu0  ;;  %v588_v59 = vmul.f32 %v581_v44, %v576_v20 }
 0x506   : > { %v1294_v57 = vpop.f32.mrb[15].mxu0 }
 0x508   : > { %992 = vrot.lane.b32.xlu1 %v984_v25, %s1436_s8 }
 0x509   : > { %1353 = vset.pattern.permute.xlu0 %v1428_v14 }
 0x50a   : > { %1033 = vperm.xlu0 %1353, %v1394_v58  }
 0x50c   : > { %1019 = vperm.xlu1 %1351, %v1394_v58  }
 0x50e   : > { %1355 = vset.pattern.permute.xlu0 %v1431_v46 }
 0x50f   : > { %1057 = vperm.xlu0 %1355, %v1392_v23  }
 0x510   : > { %1352 = vset.pattern.permute.xlu1 %v1428_v14 }
 0x511   : > { %1029 = vperm.xlu1 %1352, %v1392_v23  }
 0x515   : > { %1354 = vset.pattern.permute.xlu1 %v1429_v30  ;;  %v756_v30 = vpop.permute.xlu0 %755 }
 0x516   : > { %1043 = vperm.xlu1 %1354, %v1392_v23  }
 0x51a   : > { %1047 = vperm.xlu1 %1354, %v1394_v58  }
 0x51e   : > { %1356 = vset.pattern.permute.xlu1 %v1431_v46 }
 0x51f   : > { %1061 = vperm.xlu1 %1356, %v1394_v58  }
 0x560   : > { %v641_v55 = vpop.permute.xlu1 %640 }
 0x561   : > { %v646_v60 = vadd.f32 %v641_v55, %v588_v59 }
 0x563   : > { %649 = vst.msk [vmem:[#allocation2] sm:$0xff] %vm648_vm10, %v646_v60 }
 0x564   : > { %v643_v29 = vpop.permute.xlu1 %642 }
 0x565   : > { %v647_v14 = vadd.f32 %v643_v29, %v589_v26 }
 0x567   : > { %650 = vst.msk [vmem:[#allocation2 + $0x8] sm:$0xff] %vm648_vm10, %v647_v14 }
 0x56a   : > { %v751_v48 = vld [vmem:[#allocation2] sm:$0xff] }
 0x56b   : > { %v763_v27 = vmul.f32 %v756_v30, %v751_v48 }
 0x56e   : > { %v752_v32 = vld [vmem:[#allocation2 + $0x8] sm:$0xff]  ;;  %v818_v36 = vpop.permute.xlu0 %817 }
 0x575   : > { %v761_v33 = vpop.permute.xlu1 %760 }
 0x576   : > { %v764_v46 = vmul.f32 %v761_v33, %v752_v32 }
 0x578   : > { %v822_v24 = vadd.f32 %v818_v36, %v764_v46 }
 0x579   : > { %v816_v28 = vpop.permute.xlu1 %815 }
 0x57a   : > { %825 = vst.msk [vmem:[#allocation2 + $0x8] sm:$0xff] %vm823_vm11, %v822_v24  ;;  %v821_v62 = vadd.f32 %v816_v28, %v763_v27 }
 0x57c   : > { %824 = vst.msk [vmem:[#allocation2] sm:$0xff] %vm823_vm11, %v821_v62 }
 0x57d   : > { %v931_v63 = vpop.permute.xlu1 %930 }
 0x57f   : > { %v936_v5 = vpop.permute.xlu0 %935 }
 0x581   : > { %v927_v3 = vld [vmem:[#allocation2 + $0x8] sm:$0xff]  ;;  %v991_v4 = vpop.permute.xlu1 %990 }
 0x582   : > { %v939_v56 = vmul.f32 %v936_v5, %v927_v3 }
 0x583   : > { %v926_v53 = vld [vmem:[#allocation2] sm:$0xff] }
 0x584   : > { %v938_v21 = vmul.f32 %v931_v63, %v926_v53  ;;  %v1015_v8 = vpop.permute.xlu0 %1014 }
 0x585   : > { %v993_v6 = vpop.permute.xlu1 %992 }
 0x586   : > { %v996_v50 = vadd.f32 %v991_v4, %v938_v21  ;;  %v997_v61 = vadd.f32 %v993_v6, %v939_v56 }
 0x588   : > { %999 = vst.msk [vmem:[#allocation2] sm:$0xff] %vm998_vm12, %v996_v50  ;;  %1000 = vst.msk [vmem:[#allocation2 + $0x8] sm:$0xff] %vm998_vm12, %v997_v61 }
 0x589   : > { %v1034_v42 = vpop.permute.xlu0 %1033 }
 0x58b   : > { %v1020_v12 = vpop.permute.xlu1 %1019 }
 0x58e   : > { %v1058_v34 = vpop.permute.xlu0 %1057 }
 0x58f   : > { %v1010_v2 = vld [vmem:[#allocation2] sm:$0xff]  ;;  %v1011_v9 = vld [vmem:[#allocation2 + $0x8] sm:$0xff] }
 0x590   : > { %v1022_v13 = vmul.f32 %v1015_v8, %v1010_v2  ;;  %v1023_v15 = vmul.f32 %v1020_v12, %v1011_v9  ;;  %v1030_v16 = vpop.permute.xlu1 %1029 }
 0x592   : > { %1024 = vst.msk [vmem:[#allocation2] sm:$0xff] %vm314_vm1, %v1022_v13  ;;  %1025 = vst.msk [vmem:[#allocation2 + $0x8] sm:$0xff] %vm314_vm1, %v1023_v15 }
 0x595   : > { %v1044_v19 = vpop.permute.xlu1 %1043 }
 0x599   : > { %v1026_v44 = vld [vmem:[#allocation2] sm:$0xff]  ;;  %v1027_v47 = vld [vmem:[#allocation2 + $0x8] sm:$0xff]  ;;  %v1048_v31 = vpop.permute.xlu1 %1047 }
 0x59a   : > { %v1036_v17 = vmul.f32 %v1030_v16, %v1026_v44  ;;  %v1037_v11 = vmul.f32 %v1034_v42, %v1027_v47 }
 0x59c   : > { %1038 = vst.msk [vmem:[#allocation2] sm:$0xff] %vm648_vm10, %v1036_v17  ;;  %1039 = vst.msk [vmem:[#allocation2 + $0x8] sm:$0xff] %vm648_vm10, %v1037_v11 }
 0x59e   : > { %v1062_v45 = vpop.permute.xlu1 %1061 }
 0x5a3   : > { %v1040_v22 = vld [vmem:[#allocation2] sm:$0xff]  ;;  %v1041_v7 = vld [vmem:[#allocation2 + $0x8] sm:$0xff] }
 0x5a4   : > { %v1050_v35 = vmul.f32 %v1044_v19, %v1040_v22  ;;  %v1051_v10 = vmul.f32 %v1048_v31, %v1041_v7 }
 0x5a6   : > { %1052 = vst.msk [vmem:[#allocation2] sm:$0xff] %vm823_vm11, %v1050_v35  ;;  %1053 = vst.msk [vmem:[#allocation2 + $0x8] sm:$0xff] %vm823_vm11, %v1051_v10 }
 0x5ad   : > { %v1054_v37 = vld [vmem:[#allocation2] sm:$0xff]  ;;  %v1055_v40 = vld [vmem:[#allocation2 + $0x8] sm:$0xff] }
 0x5ae   : > { %v1064_v49 = vmul.f32 %v1058_v34, %v1054_v37  ;;  %v1065_v51 = vmul.f32 %v1062_v45, %v1055_v40 }
 0x5b0   : > { %1066 = vst.msk [vmem:[#allocation2] sm:$0xff] %vm998_vm12, %v1064_v49  ;;  %1067 = vst.msk [vmem:[#allocation2 + $0x8] sm:$0xff] %vm998_vm12, %v1065_v51 }
 0x5b7   : > { %v1068_v41 = vld [vmem:[#allocation2] sm:$0xff]  ;;  %v1069_v43 = vld [vmem:[#allocation2 + $0x8] sm:$0xff] }
 0x5b8   : > { %v1229_v52 = vpack.c.bf16 %v1068_v41, %v1068_v41  ;;  %v1230_v54 = vpack.c.bf16 %v1069_v43, %v1069_v43 }
 0x5ba   : > { %1079 = vst.msk [vmem:[%s276_s11] sm:$0xf] %vm1078_vm13, %v1229_v52  ;;  %1080 = vst.msk [vmem:[%s276_s11 + $0x4] sm:$0xf] %vm1078_vm13, %v1230_v54 }
 0x5bb PF: > { %s13_s14 = sadd.s32 1, %s1417_s14   ;;  %s1775_s12 = smov %s1413_s13 }
 0x5bc   : > { %p10_p5 = scmp.ge.s32.totalorder %s13_s14, 4   ;;  %s1776_s13 = smov %s1778_s15 }
 0x5be   :  { %12 = sbr.rel (!%p10_p5) target bundleno = 2 (0x2), region = 76 }

// kernel: forward.50
= control target key start
LH: loop header
LB: loop body
LE: loop exit
PB: predicated region body
PF: predicated region fallthrough
CT: control target
= control target key end

     0   :  { %vm22_vm0 = vcmask 261120   ;;  %v183_v1 = vmov 0.0   ;;  %s262_s1 = inlined_call_operand.vmem [shape: bf16[32,32], index: 1, kind: input, shape index: {}]   ;;  %s263_s0 = inlined_call_operand.vmem [shape: bf16[32,32], index: 0, kind: input, shape index: {}]   ;;  %s264_s2 = inlined_call_operand.vmem [shape: f32[1,32], index: 2, kind: input, shape index: {}]   ;;  %s265_s3 = inlined_call_operand.vmem [shape: f32[32,32], index: 3, kind: input, shape index: {}]   ;;  %s266_s4 = inlined_call_operand.vmem [shape: f32[32,32], index: 4, kind: output, shape index: {}]  }
   0x1   :  { %v179_v0 = vld [vmem:[%s262_s1] sm:$0xff]   ;;  %25 = vst.msk [vmem:[#allocation2 + $0x10] sm:$0xff] %vm22_vm0, %v183_v1  ;;  %23 = vst.msk [vmem:[#allocation2] sm:$0xff] %vm22_vm0, %v183_v1  ;;  %v180_v2 = vld [vmem:[%s262_s1 + $0x8] sm:$0xff]  }
   0x2   :  { %24 = vst.msk [vmem:[#allocation2 + $0x8] sm:$0xff] %vm22_vm0, %v183_v1  ;;  %26 = vst.msk [vmem:[#allocation2 + $0x18] sm:$0xff] %vm22_vm0, %v183_v1  ;;  %170 = vmatprep.subr.bf16.mxu0 %v179_v0  ;;  %v181_v3 = vld [vmem:[%s263_s0] sm:$0xff]   ;;  %v182_v4 = vld [vmem:[%s263_s0 + $0x8] sm:$0xff]  }
   0x3   :  { %171 = vmatpush3.bf16.msra.mxu0 %v179_v0  ;;  %174 = vmatprep.mubr.msk.bf16.mxu0 %vm22_vm0, %v181_v3  ;;  %v165_v17 = vld [vmem:[%s264_s2] ss:$0 sm:$0xff]  ;;  %v145_v19 = vld [vmem:[%s265_s3 + $0x10] sm:$0xff]  ;;  %v146_v25 = vld [vmem:[%s265_s3 + $0x18] sm:$0xff] }
   0x4   :  { %172 = vmatprep.subr.bf16.mxu0 %v180_v2  ;;  %v143_v22 = vld [vmem:[%s265_s3] sm:$0xff]  ;;  %v144_v29 = vld [vmem:[%s265_s3 + $0x8] sm:$0xff] }
   0x7   :  { %173 = vmatpush3.bf16.msra.mxu0 %v180_v2 }
   0x8   :  { %v29_v5 = vld [vmem:[#allocation2 + $0x10] sm:$0xff]  ;;  %v27_v6 = vld [vmem:[#allocation2] sm:$0xff] }
   0x9   :  { %v30_v8 = vld [vmem:[#allocation2 + $0x18] sm:$0xff]  ;;  %v28_v11 = vld [vmem:[#allocation2 + $0x8] sm:$0xff] }
   0xa   :  { %175 = vmatmul.mubr.msk.bf16.vlgmr.msra.gmra.mrb[0].mxu0 %vm22_vm0, %v182_v4 }
  0xdd   :  { %v176_v7 = vpop.f32.mrb[0].mxu0 }
  0xde   :  { %v119_v9 = vadd.f32 %v176_v7, %v29_v5  ;;  %v102_v10 = vpop.f32.mrb[1].mxu0 }
  0xdf   :  { %v117_v12 = vadd.f32 %v102_v10, %v27_v6  ;;  %v177_v13 = vpop.f32.mrb[2].mxu0 }
  0xe0   :  { %123 = vst.msk [vmem:[#allocation2 + $0x10] sm:$0xff] %vm22_vm0, %v119_v9  ;;  %v120_v14 = vadd.f32 %v177_v13, %v30_v8  ;;  %v105_v15 = vpop.f32.mrb[3].mxu0 }
  0xe1   :  { %121 = vst.msk [vmem:[#allocation2] sm:$0xff] %vm22_vm0, %v117_v12  ;;  %v118_v16 = vadd.f32 %v105_v15, %v28_v11 }
  0xe2   :  { %124 = vst.msk [vmem:[#allocation2 + $0x18] sm:$0xff] %vm22_vm0, %v120_v14 }
  0xe3   :  { %122 = vst.msk [vmem:[#allocation2 + $0x8] sm:$0xff] %vm22_vm0, %v118_v16 }
  0xe7   :  { %v130_v18 = vld [vmem:[#allocation2 + $0x10] sm:$0xff] }
  0xe8   :  { %v141_v20 = vadd.f32 %v165_v17, %v130_v18  ;;  %v128_v21 = vld [vmem:[#allocation2] sm:$0xff] }
  0xe9   :  { %v139_v23 = vadd.f32 %v165_v17, %v128_v21  ;;  %v131_v24 = vld [vmem:[#allocation2 + $0x18] sm:$0xff] }
  0xea   :  { %v149_v26 = vadd.f32 %v145_v19, %v141_v20  ;;  %v142_v27 = vadd.f32 %v165_v17, %v131_v24  ;;  %v129_v28 = vld [vmem:[#allocation2 + $0x8] sm:$0xff] }
  0xeb   :  { %v147_v30 = vadd.f32 %v143_v22, %v139_v23  ;;  %v140_v31 = vadd.f32 %v165_v17, %v129_v28 }
  0xec   :  { %153 = vst.msk [vmem:[%s266_s4 + $0x10] sm:$0xff] %vm22_vm0, %v149_v26  ;;  %v150_v32 = vadd.f32 %v146_v25, %v142_v27 }
  0xed   :  { %151 = vst.msk [vmem:[%s266_s4] sm:$0xff] %vm22_vm0, %v147_v30  ;;  %v148_v33 = vadd.f32 %v144_v29, %v140_v31 }
  0xee   :  { %154 = vst.msk [vmem:[%s266_s4 + $0x18] sm:$0xff] %vm22_vm0, %v150_v32 }
  0xef   :  { %152 = vst.msk [vmem:[%s266_s4 + $0x8] sm:$0xff] %vm22_vm0, %v148_v33 }

// kernel: forward.52
= control target key start
LH: loop header
LB: loop body
LE: loop exit
PB: predicated region body
PF: predicated region fallthrough
CT: control target
= control target key end

     0   :  { %vm57_vm0 = vcmask 261120   ;;  %s250_s1 = inlined_call_operand.vmem [shape: bf16[32,128], index: 1, kind: input, shape index: {}]   ;;  %s251_s0 = inlined_call_operand.vmem [shape: bf16[32,32], index: 0, kind: input, shape index: {}]   ;;  %s252_s2 = inlined_call_operand.vmem [shape: f32[1,128], index: 2, kind: input, shape index: {}]   ;;  %s253_s3 = inlined_call_operand.vmem [shape: bf16[32,128], index: 3, kind: output, shape index: {}]  }
   0x1   :  { %v205_v0 = vld [vmem:[%s250_s1] sm:$0xff]   ;;  %v206_v1 = vld [vmem:[%s250_s1 + $0x8] sm:$0xff]  }
   0x2   :  { %197 = vmatprep.subr.bf16.mxu0 %v205_v0  ;;  %v207_v2 = vld [vmem:[%s251_s0] sm:$0xff]   ;;  %v208_v3 = vld [vmem:[%s251_s0 + $0x8] sm:$0xff]  }
   0x3   :  { %198 = vmatpush3.bf16.msra.mxu0 %v205_v0  ;;  %201 = vmatprep.mubr.msk.bf16.mxu0 %vm57_vm0, %v207_v2  ;;  %v173_v4 = vld [vmem:[%s252_s2] ss:$0 sm:$0xff] }
   0x4   :  { %199 = vmatprep.subr.bf16.mxu0 %v206_v1 }
   0x7   :  { %200 = vmatpush3.bf16.msra.mxu0 %v206_v1 }
   0xa   :  { %202 = vmatmul.mubr.msk.bf16.vlgmr.msra.gmra.mrb[0].mxu0 %vm57_vm0, %v208_v3 }
  0xdd   :  { %v203_v5 = vpop.f32.mrb[0].mxu0 }
  0xde   :  { %v137_v6 = vadd.f32 %v203_v5, %v173_v4  ;;  %v98_v7 = vpop.f32.mrb[1].mxu0 }
  0xdf   :  { %v135_v8 = vadd.f32 %v173_v4, %v98_v7  ;;  %v204_v9 = vpop.f32.mrb[2].mxu0 }
  0xe0   :  { %v138_v10 = vadd.f32 %v204_v9, %v173_v4  ;;  %v101_v11 = vpop.f32.mrb[3].mxu0  ;;  %v141_v13 = vmax.f32 %v137_v6, 0.0 }
  0xe1   :  { %v136_v12 = vadd.f32 %v173_v4, %v101_v11  ;;  %v139_v15 = vmax.f32 %v135_v8, 0.0 }
  0xe2   :  { %v142_v14 = vmax.f32 %v138_v10, 0.0 }
  0xe3   :  { %v140_v16 = vmax.f32 %v136_v12, 0.0 }
  0xe4   :  { %v190_v17 = vpack.c.bf16 %v142_v14, %v141_v13 }
  0xe5   :  { %v185_v18 = vpack.c.bf16 %v140_v16, %v139_v15 }
  0xe6   :  { %192 = vst [vmem:[%s253_s3 + $0x8] sm:$0xff] %v190_v17  }
  0xe7   :  { %186 = vst [vmem:[%s253_s3] sm:$0xff] %v185_v18  }

// kernel: forward.53
= control target key start
LH: loop header
LB: loop body
LE: loop exit
PB: predicated region body
PF: predicated region fallthrough
CT: control target
= control target key end

     0   :  { %vm22_vm0 = vcmask 261120   ;;  %v255_v1 = vmov 0.0   ;;  %s350_s1 = inlined_call_operand.vmem [shape: bf16[128,32], index: 1, kind: input, shape index: {}]   ;;  %s351_s0 = inlined_call_operand.vmem [shape: bf16[32,128], index: 0, kind: input, shape index: {}]   ;;  %s352_s2 = inlined_call_operand.vmem [shape: f32[1,32], index: 2, kind: input, shape index: {}]   ;;  %s353_s3 = inlined_call_operand.vmem [shape: f32[32,32], index: 3, kind: input, shape index: {}]   ;;  %s354_s4 = inlined_call_operand.vmem [shape: f32[32,32], index: 4, kind: output, shape index: {}]  }
   0x1   :  { %v245_v0 = vld [vmem:[%s350_s1] sm:$0xff]   ;;  %25 = vst.msk [vmem:[#allocation2 + $0x10] sm:$0xff] %vm22_vm0, %v255_v1  ;;  %23 = vst.msk [vmem:[#allocation2] sm:$0xff] %vm22_vm0, %v255_v1  ;;  %v246_v2 = vld [vmem:[%s350_s1 + $0x8] sm:$0xff]  }
   0x2   :  { %24 = vst.msk [vmem:[#allocation2 + $0x8] sm:$0xff] %vm22_vm0, %v255_v1  ;;  %26 = vst.msk [vmem:[#allocation2 + $0x18] sm:$0xff] %vm22_vm0, %v255_v1  ;;  %224 = vmatprep.subr.bf16.mxu0 %v245_v0  ;;  %v247_v3 = vld [vmem:[%s350_s1 + $0x10] sm:$0xff]   ;;  %v248_v4 = vld [vmem:[%s350_s1 + $0x18] sm:$0xff]  }
   0x3   :  { %225 = vmatpush3.bf16.msra.mxu0 %v245_v0  ;;  %v253_v5 = vld [vmem:[%s351_s0] sm:$0xff]   ;;  %v250_v7 = vld [vmem:[%s350_s1 + $0x28] sm:$0xff]   ;;  %v251_v8 = vld [vmem:[%s350_s1 + $0x30] sm:$0xff]  }
   0x4   :  { %226 = vmatprep.subr.bf16.mxu0 %v246_v2  ;;  %240 = vmatprep.mubr.bf16.mxu0 %v253_v5  ;;  %v249_v6 = vld [vmem:[%s350_s1 + $0x20] sm:$0xff]   ;;  %v252_v9 = vld [vmem:[%s350_s1 + $0x38] sm:$0xff]   ;;  %v254_v10 = vld [vmem:[%s351_s0 + $0x8] sm:$0xff]  }
   0x5   :  { %v213_v23 = vld [vmem:[%s352_s2] ss:$0 sm:$0xff]  ;;  %v189_v25 = vld [vmem:[%s353_s3 + $0x10] sm:$0xff]  ;;  %v190_v31 = vld [vmem:[%s353_s3 + $0x18] sm:$0xff] }
   0x6   :  { %v187_v28 = vld [vmem:[%s353_s3] sm:$0xff]  ;;  %v188_v35 = vld [vmem:[%s353_s3 + $0x8] sm:$0xff] }
   0x7   :  { %227 = vmatpush3.bf16.msra.mxu0 %v246_v2 }
   0x8   :  { %228 = vmatprep.subr.bf16.mxu0 %v247_v3  ;;  %v29_v11 = vld [vmem:[#allocation2 + $0x10] sm:$0xff]  ;;  %v27_v12 = vld [vmem:[#allocation2] sm:$0xff] }
   0x9   :  { %v30_v14 = vld [vmem:[#allocation2 + $0x18] sm:$0xff]  ;;  %v28_v17 = vld [vmem:[#allocation2 + $0x8] sm:$0xff] }
   0xb   :  { %229 = vmatpush3.bf16.msra.mxu0 %v247_v3 }
   0xc   :  { %230 = vmatprep.subr.bf16.mxu0 %v248_v4 }
   0xf   :  { %231 = vmatpush3.bf16.msra.mxu0 %v248_v4 }
  0x10   :  { %232 = vmatprep.subr.bf16.mxu0 %v249_v6 }
  0x13   :  { %233 = vmatpush3.bf16.msra.mxu0 %v249_v6 }
  0x14   :  { %234 = vmatprep.subr.bf16.mxu0 %v250_v7 }
  0x17   :  { %235 = vmatpush3.bf16.msra.mxu0 %v250_v7 }
  0x18   :  { %236 = vmatprep.subr.bf16.mxu0 %v251_v8 }
  0x1b   :  { %237 = vmatpush3.bf16.msra.mxu0 %v251_v8 }
  0x1c   :  { %238 = vmatprep.subr.bf16.mxu0 %v252_v9 }
  0x1f   :  { %239 = vmatpush3.bf16.msra.mxu0 %v252_v9 }
  0x22   :  { %241 = vmatmul.mubr.bf16.vlgmr.msra.gmra.mrb[0].mxu0 %v254_v10 }
  0xf5   :  { %v242_v13 = vpop.f32.mrb[0].mxu0 }
  0xf6   :  { %v162_v15 = vadd.f32 %v242_v13, %v29_v11  ;;  %v145_v16 = vpop.f32.mrb[1].mxu0 }
  0xf7   :  { %v160_v18 = vadd.f32 %v145_v16, %v27_v12  ;;  %v243_v19 = vpop.f32.mrb[2].mxu0 }
  0xf8   :  { %167 = vst.msk [vmem:[#allocation2 + $0x10] sm:$0xff] %vm22_vm0, %v162_v15  ;;  %v163_v20 = vadd.f32 %v243_v19, %v30_v14  ;;  %v148_v21 = vpop.f32.mrb[3].mxu0 }
  0xf9   :  { %165 = vst.msk [vmem:[#allocation2] sm:$0xff] %vm22_vm0, %v160_v18  ;;  %v161_v22 = vadd.f32 %v148_v21, %v28_v17 }
  0xfa   :  { %168 = vst.msk [vmem:[#allocation2 + $0x18] sm:$0xff] %vm22_vm0, %v163_v20 }
  0xfb   :  { %166 = vst.msk [vmem:[#allocation2 + $0x8] sm:$0xff] %vm22_vm0, %v161_v22 }
  0xff   :  { %v174_v24 = vld [vmem:[#allocation2 + $0x10] sm:$0xff] }
 0x100   :  { %v185_v26 = vadd.f32 %v213_v23, %v174_v24  ;;  %v172_v27 = vld [vmem:[#allocation2] sm:$0xff] }
 0x101   :  { %v183_v29 = vadd.f32 %v213_v23, %v172_v27  ;;  %v175_v30 = vld [vmem:[#allocation2 + $0x18] sm:$0xff] }
 0x102   :  { %v193_v32 = vadd.f32 %v189_v25, %v185_v26  ;;  %v186_v33 = vadd.f32 %v213_v23, %v175_v30  ;;  %v173_v34 = vld [vmem:[#allocation2 + $0x8] sm:$0xff] }
 0x103   :  { %v191_v36 = vadd.f32 %v187_v28, %v183_v29  ;;  %v184_v37 = vadd.f32 %v213_v23, %v173_v34 }
 0x104   :  { %197 = vst.msk [vmem:[%s354_s4 + $0x10] sm:$0xff] %vm22_vm0, %v193_v32  ;;  %v194_v38 = vadd.f32 %v190_v31, %v186_v33 }
 0x105   :  { %195 = vst.msk [vmem:[%s354_s4] sm:$0xff] %vm22_vm0, %v191_v36  ;;  %v192_v39 = vadd.f32 %v188_v35, %v184_v37 }
 0x106   :  { %198 = vst.msk [vmem:[%s354_s4 + $0x18] sm:$0xff] %vm22_vm0, %v194_v38 }
 0x107   :  { %196 = vst.msk [vmem:[%s354_s4 + $0x8] sm:$0xff] %vm22_vm0, %v192_v39 }

// kernel: forward.90
= control target key start
LH: loop header
LB: loop body
LE: loop exit
PB: predicated region body
PF: predicated region fallthrough
CT: control target
= control target key end

     0   :  { %vm57_vm0 = vcmask 261120   ;;  %s217_s1 = inlined_call_operand.vmem [shape: bf16[32,128], index: 1, kind: input, shape index: {}]   ;;  %s218_s0 = inlined_call_operand.vmem [shape: bf16[32,32], index: 0, kind: input, shape index: {}]   ;;  %s219_s2 = inlined_call_operand.vmem [shape: f32[1,128], index: 2, kind: input, shape index: {}]   ;;  %s220_s3 = inlined_call_operand.vmem [shape: f32[32,128], index: 3, kind: output, shape index: {}]  }
   0x1   :  { %v166_v0 = vld [vmem:[%s217_s1] sm:$0xff]   ;;  %v167_v1 = vld [vmem:[%s217_s1 + $0x8] sm:$0xff]  }
   0x2   :  { %158 = vmatprep.subr.bf16.mxu0 %v166_v0  ;;  %v168_v2 = vld [vmem:[%s218_s0] sm:$0xff]   ;;  %v169_v3 = vld [vmem:[%s218_s0 + $0x8] sm:$0xff]  }
   0x3   :  { %159 = vmatpush3.bf16.msra.mxu0 %v166_v0  ;;  %162 = vmatprep.mubr.msk.bf16.mxu0 %vm57_vm0, %v168_v2  ;;  %v153_v4 = vld [vmem:[%s219_s2] ss:$0 sm:$0xff] }
   0x4   :  { %160 = vmatprep.subr.bf16.mxu0 %v167_v1 }
   0x7   :  { %161 = vmatpush3.bf16.msra.mxu0 %v167_v1 }
   0xa   :  { %163 = vmatmul.mubr.msk.bf16.vlgmr.msra.gmra.mrb[0].mxu0 %vm57_vm0, %v169_v3 }
  0xdd   :  { %v164_v5 = vpop.f32.mrb[0].mxu0 }
  0xde   :  { %v137_v6 = vadd.f32 %v164_v5, %v153_v4  ;;  %v98_v7 = vpop.f32.mrb[1].mxu0 }
  0xdf   :  { %v135_v8 = vadd.f32 %v153_v4, %v98_v7  ;;  %v165_v9 = vpop.f32.mrb[2].mxu0 }
  0xe0   :  { %141 = vst [vmem:[%s220_s3 + $0x10] sm:$0xff] %v137_v6  ;;  %v138_v10 = vadd.f32 %v165_v9, %v153_v4  ;;  %v101_v11 = vpop.f32.mrb[3].mxu0 }
  0xe1   :  { %139 = vst [vmem:[%s220_s3] sm:$0xff] %v135_v8  ;;  %v136_v12 = vadd.f32 %v153_v4, %v101_v11 }
  0xe2   :  { %142 = vst [vmem:[%s220_s3 + $0x18] sm:$0xff] %v138_v10 }
  0xe3   :  { %140 = vst [vmem:[%s220_s3 + $0x8] sm:$0xff] %v136_v12 }

// kernel: forward.91
= control target key start
LH: loop header
LB: loop body
LE: loop exit
PB: predicated region body
PF: predicated region fallthrough
CT: control target
= control target key end

     0   :  { %vm12_vm0 = vcmask 7168   ;;  %v174_v2 = vmov -inf   ;;  %v175_v5 = vmov 0   ;;  %v176_v6 = vmov 0.0   ;;  %s231_s0 = inlined_call_operand.vmem [shape: f32[32,128], index: 0, kind: input, shape index: {}]   ;;  %s232_s1 = inlined_call_operand.vmem [shape: f32[32,1], index: 1, kind: output, shape index: {}]  }
   0x1   :  { %v21_v0 = vld [vmem:[%s231_s0] sm:$0xff]  ;;  %v23_v1 = vld [vmem:[%s231_s0 + $0x10] sm:$0xff]  ;;  %13 = vst.msk [vmem:[#allocation2] sm:$0xff] %vm12_vm0, %v174_v2  ;;  %14 = vst.msk [vmem:[#allocation2 + $0x8] sm:$0xff] %vm12_vm0, %v174_v2  ;;  %148 = vset.pattern.permute.xlu0 %v175_v5  ;;  %149 = vset.pattern.permute.xlu1 %v175_v5 }
   0x2   :  { %15 = vst.msk [vmem:[#allocation2 + $0x10] sm:$0xff] %vm12_vm0, %v174_v2  ;;  %16 = vst.msk [vmem:[#allocation2 + $0x18] sm:$0xff] %vm12_vm0, %v174_v2  ;;  %29 = vmax.xlane.f32.xlu0 %v21_v0  ;;  %33 = vmax.xlane.f32.xlu1 %v23_v1  ;;  %v22_v3 = vld [vmem:[%s231_s0 + $0x8] sm:$0xff]  ;;  %v24_v4 = vld [vmem:[%s231_s0 + $0x18] sm:$0xff] }
   0x3   :  { %17 = vst.msk [vmem:[#allocation3] sm:$0xff] %vm12_vm0, %v176_v6  ;;  %18 = vst.msk [vmem:[#allocation3 + $0x8] sm:$0xff] %vm12_vm0, %v176_v6 }
   0x4   :  { %19 = vst.msk [vmem:[#allocation3 + $0x10] sm:$0xff] %vm12_vm0, %v176_v6  ;;  %20 = vst.msk [vmem:[#allocation3 + $0x18] sm:$0xff] %vm12_vm0, %v176_v6 }
   0x6   :  { %31 = vmax.xlane.f32.xlu0 %v22_v3  ;;  %35 = vmax.xlane.f32.xlu1 %v24_v4 }
   0x8   :  { %v25_v7 = vld [vmem:[#allocation2] sm:$0xff]  ;;  %v26_v13 = vld [vmem:[#allocation2 + $0x8] sm:$0xff] }
   0x9   :  { %v27_v8 = vld [vmem:[#allocation2 + $0x10] sm:$0xff]  ;;  %v28_v14 = vld [vmem:[#allocation2 + $0x18] sm:$0xff] }
   0xa   :  { %v41_v44 = vld [vmem:[#allocation3] sm:$0xff]  ;;  %v42_v48 = vld [vmem:[#allocation3 + $0x8] sm:$0xff] }
   0xb   :  { %v43_v53 = vld [vmem:[#allocation3 + $0x10] sm:$0xff]  ;;  %v44_v58 = vld [vmem:[#allocation3 + $0x18] sm:$0xff] }
  0x8f   :  { %v30_v9 = vpop.xlane.xlu0 %29  ;;  %v34_v10 = vpop.xlane.xlu1 %33 }
  0x90   :  { %v37_v11 = vmax.f32 %v25_v7, %v30_v9  ;;  %v39_v12 = vmax.f32 %v27_v8, %v34_v10 }
  0x92   :  { %v45_v15 = vsub.f32 %v25_v7, %v37_v11  ;;  %110 = vst.msk [vmem:[#allocation2] sm:$0xff] %vm12_vm0, %v37_v11  ;;  %63 = vperm.xlu0 %148, %v37_v11   ;;  %v47_v16 = vsub.f32 %v27_v8, %v39_v12  ;;  %112 = vst.msk [vmem:[#allocation2 + $0x10] sm:$0xff] %vm12_vm0, %v39_v12 }
  0x93   :  { %v32_v17 = vpop.xlane.xlu0 %31  ;;  %v36_v18 = vpop.xlane.xlu1 %35 }
  0x94   :  { %v38_v19 = vmax.f32 %v26_v13, %v32_v17  ;;  %v40_v20 = vmax.f32 %v28_v14, %v36_v18  ;;  %v49_v39 = vmul.f32 1.442695, %v45_v15  ;;  %v53_v41 = vmul.f32 1.442695, %v47_v16 }
  0x96   :  { %v46_v21 = vsub.f32 %v26_v13, %v38_v19  ;;  %111 = vst.msk [vmem:[#allocation2 + $0x8] sm:$0xff] %vm12_vm0, %v38_v19  ;;  %68 = vperm.xlu1 %149, %v38_v19   ;;  %v48_v22 = vsub.f32 %v28_v14, %v40_v20  ;;  %113 = vst.msk [vmem:[#allocation2 + $0x18] sm:$0xff] %vm12_vm0, %v40_v20 }
  0x98   :  { %v51_v40 = vmul.f32 1.442695, %v46_v21  ;;  %v55_v42 = vmul.f32 1.442695, %v48_v22 }
  0x99   :  { %v117_v5 = vld [vmem:[#allocation2] sm:$0xff]  ;;  %v119_v13 = vld [vmem:[#allocation2 + $0x10] sm:$0xff] }
  0x9a   :  { %73 = vperm.xlu1 %149, %v39_v12  }
  0x9d   :  { %v118_v9 = vld [vmem:[#allocation2 + $0x8] sm:$0xff]  ;;  %v120_v17 = vld [vmem:[#allocation2 + $0x18] sm:$0xff] }
  0x9e   :  { %78 = vperm.xlu1 %149, %v40_v20  }
 0x111   :  { %v64_v23 = vpop.permute.xlu0 %63 }
 0x112   :  { %v81_v24 = vsub.f32 %v21_v0, %v64_v23 }
 0x114   :  { %v85_v25 = vmul.f32 1.442695, %v81_v24 }
 0x115   :  { %v69_v26 = vpop.permute.xlu1 %68 }
 0x116   :  { %150 = vpow2.f32 %v85_v25  ;;  %v82_v27 = vsub.f32 %v22_v3, %v69_v26 }
 0x118   :  { %v87_v28 = vmul.f32 1.442695, %v82_v27 }
 0x119   :  { %v74_v29 = vpop.permute.xlu1 %73 }
 0x11a   :  { %152 = vpow2.f32 %v87_v28  ;;  %v83_v30 = vsub.f32 %v23_v1, %v74_v29 }
 0x11c   :  { %v89_v31 = vmul.f32 1.442695, %v83_v30 }
 0x11d   :  { %v79_v32 = vpop.permute.xlu1 %78 }
 0x11e   :  { %154 = vpow2.f32 %v89_v31  ;;  %v84_v33 = vsub.f32 %v24_v4, %v79_v32 }
 0x120   :  { %v151_v34 = vpop.eup %150  ;;  %v91_v35 = vmul.f32 1.442695, %v84_v33 }
 0x121   :  { %93 = vadd.xlane.f32.xlu1 %v151_v34 }
 0x122   :  { %156 = vpow2.f32 %v91_v35 }
 0x123   :  { %158 = vpow2.f32 %v49_v39 }
 0x124   :  { %v153_v36 = vpop.eup %152  ;;  %160 = vpow2.f32 %v51_v40 }
 0x125   :  { %95 = vadd.xlane.f32.xlu0 %v153_v36  ;;  %162 = vpow2.f32 %v53_v41 }
 0x126   :  { %164 = vpow2.f32 %v55_v42 }
 0x128   :  { %v155_v37 = vpop.eup %154 }
 0x129   :  { %97 = vadd.xlane.f32.xlu1 %v155_v37 }
 0x12c   :  { %v157_v38 = vpop.eup %156 }
 0x12d   :  { %99 = vadd.xlane.f32.xlu1 %v157_v38  ;;  %v159_v43 = vpop.eup %158 }
 0x12e   :  { %v57_v45 = vmul.f32 %v159_v43, %v41_v44  ;;  %v161_v46 = vpop.eup %160 }
 0x12f   :  { %v58_v50 = vmul.f32 %v161_v46, %v42_v48  ;;  %v163_v51 = vpop.eup %162 }
 0x130   :  { %v59_v55 = vmul.f32 %v163_v51, %v43_v53  ;;  %v165_v56 = vpop.eup %164 }
 0x131   :  { %v60_v61 = vmul.f32 %v165_v56, %v44_v58 }
 0x1ae   :  { %v94_v47 = vpop.xlane.xlu1 %93 }
 0x1af   :  { %v101_v49 = vadd.f32 %v94_v47, %v57_v45 }
 0x1b1   :  { %106 = vst.msk [vmem:[#allocation3] sm:$0xff] %vm12_vm0, %v101_v49 }
 0x1b2   :  { %v96_v52 = vpop.xlane.xlu0 %95 }
 0x1b3   :  { %v102_v54 = vadd.f32 %v96_v52, %v58_v50 }
 0x1b5   :  { %107 = vst.msk [vmem:[#allocation3 + $0x8] sm:$0xff] %vm12_vm0, %v102_v54 }
 0x1b6   :  { %v98_v57 = vpop.xlane.xlu1 %97 }
 0x1b7   :  { %v103_v59 = vadd.f32 %v98_v57, %v59_v55 }
 0x1b8   :  { %v121_v60 = vld [vmem:[#allocation3] sm:$0xff] }
 0x1b9   :  { %166 = vlog2.f32 %v121_v60  ;;  %108 = vst.msk [vmem:[#allocation3 + $0x10] sm:$0xff] %vm12_vm0, %v103_v59 }
 0x1ba   :  { %v100_v62 = vpop.xlane.xlu1 %99 }
 0x1bb   :  { %v104_v63 = vadd.f32 %v100_v62, %v60_v61 }
 0x1bc   :  { %v122_v0 = vld [vmem:[#allocation3 + $0x8] sm:$0xff] }
 0x1bd   :  { %168 = vlog2.f32 %v122_v0  ;;  %109 = vst.msk [vmem:[#allocation3 + $0x18] sm:$0xff] %vm12_vm0, %v104_v63 }
 0x1c0   :  { %v123_v1 = vld [vmem:[#allocation3 + $0x10] sm:$0xff] }
 0x1c1   :  { %170 = vlog2.f32 %v123_v1 }
 0x1c3   :  { %v167_v2 = vpop.eup %166 }
 0x1c4   :  { %v126_v3 = vmul.f32 0.6931472, %v167_v2  ;;  %v124_v4 = vld [vmem:[#allocation3 + $0x18] sm:$0xff] }
 0x1c5   :  { %172 = vlog2.f32 %v124_v4 }
 0x1c6   :  { %v133_v6 = vadd.f32 %v126_v3, %v117_v5 }
 0x1c7   :  { %v169_v7 = vpop.eup %168 }
 0x1c8   :  { %137 = vst.msk [vmem:[%s232_s1] sm:$0xff] %vm12_vm0, %v133_v6  ;;  %v128_v8 = vmul.f32 0.6931472, %v169_v7 }
 0x1ca   :  { %v134_v10 = vadd.f32 %v128_v8, %v118_v9 }
 0x1cb   :  { %v171_v11 = vpop.eup %170 }
 0x1cc   :  { %138 = vst.msk [vmem:[%s232_s1 + $0x8] sm:$0xff] %vm12_vm0, %v134_v10  ;;  %v130_v12 = vmul.f32 0.6931472, %v171_v11 }
 0x1ce   :  { %v135_v14 = vadd.f32 %v130_v12, %v119_v13 }
 0x1cf   :  { %v173_v15 = vpop.eup %172 }
 0x1d0   :  { %139 = vst.msk [vmem:[%s232_s1 + $0x10] sm:$0xff] %vm12_vm0, %v135_v14  ;;  %v132_v16 = vmul.f32 0.6931472, %v173_v15 }
 0x1d2   :  { %v136_v18 = vadd.f32 %v132_v16, %v120_v17 }
 0x1d4   :  { %140 = vst.msk [vmem:[%s232_s1 + $0x18] sm:$0xff] %vm12_vm0, %v136_v18 }

// kernel: forward.66
= control target key start
LH: loop header
LB: loop body
LE: loop exit
PB: predicated region body
PF: predicated region fallthrough
CT: control target
= control target key end

     0   :  { %s1488_s12 = smov 0   ;;  %s1490_s13 = smov 0   ;;  %s1804_s0 = inlined_call_operand.vmem [shape: bf16[2,16,32], index: 0, kind: input, shape index: {}]   ;;  %s1805_s1 = inlined_call_operand.vmem [shape: bf16[2,16,64], index: 1, kind: input, shape index: {}]   ;;  %s1806_s2 = inlined_call_operand.vmem [shape: f32[2,16,16], index: 2, kind: input, shape index: {}]   ;;  %s1807_s3 = inlined_call_operand.vmem [shape: bf16[2,16,32], index: 3, kind: output, shape index: {}]  }
   0x1   :  { %s1492_s14 = smov 0  }
   0x2 LB: > { %s32_s15 = sadd.s32 1, %s1444_s13  ;;  %p1233_p0 = scmp.ge.s32.totalorder %s1448_s14, 1  ;;  %s1448_s14 = sphi %s1492_s14, %s13_s14   ;;  %s1444_s13 = sphi %s1490_s13, %s1809_s13   ;;  %s1440_s12 = sphi %s1488_s12, %s1808_s12  }
   0x3   : > { %p34_p1 = scmp.ge.s32.totalorder %s32_s15, 2  ;;  %p204_p2 = scmp.lt.s32.totalorder %s1448_s14, 3 }
   0x5   : > { %s1811_s15 = smov (%p34_p1, %s32_s15), 0  ;;  %p205_p3 = pnand %p1233_p0, %p204_p2 }
   0x6   : > { %p258_p4 = scmp.lt.s32.totalorder (!%p205_p3), %s1440_s12, 1  ;;  %v1450_v0 = vmov (!%p205_p3), 0.0   ;;  %vm1451_vm0 = vmmov (!%p205_p3), 0   ;;  %vm333_vm1 = vcmask (!%p205_p3), 64512   ;;  %vm305_vm2 = vcmask (!%p205_p3), 31744   ;;  %s1455_s27 = smov (!%p205_p3), 96  }
   0x7   : > { %208 = sbr.rel (%p205_p3) target bundleno = 1467 (0x5bb), region = 32  ;;  %1278 = vmatprep.subr.bf16.mxu0 (!%p205_p3), %v1450_v0  ;;  %1280 = vmatprep.mubr.msk.bf16.mxu0 (!%p205_p3), %vm1451_vm0, %v1450_v0  ;;  %v1452_v4 = vmov (!%p205_p3), -inf   ;;  %308 = vst.msk [vmem:[#allocation4] sm:$0xff] (!%p205_p3), %vm305_vm2, %v1450_v0  ;;  %309 = vst.msk [vmem:[#allocation4 + $0x8] sm:$0xff] (!%p205_p3), %vm305_vm2, %v1450_v0  ;;  %v1453_v7 = vmov (!%p205_p3), -1e+09  }
   0x8   : > { %1284 = vmatprep.subr.bf16.mxu1 (!%p205_p3), %v1450_v0  ;;  %1286 = vmatprep.mubr.msk.bf16.mxu1 (!%p205_p3), %vm1451_vm0, %v1450_v0  ;;  %306 = vst.msk [vmem:[#allocation3] sm:$0xff] (!%p205_p3), %vm305_vm2, %v1452_v4  ;;  %307 = vst.msk [vmem:[#allocation3 + $0x8] sm:$0xff] (!%p205_p3), %vm305_vm2, %v1452_v4  ;;  %vm383_vm5 = vcmask (!%p205_p3), 130048   ;;  %v1454_v18 = vmov (!%p205_p3), 0   ;;  %vm426_vm6 = vcmask (!%p205_p3), 7168   ;;  %s1456_s28 = smov (!%p205_p3), 120  }
   0x9   : > { %1368 = vset.pattern.permute.xlu1 (!%p205_p3), %v1454_v18  ;;  %s1457_s29 = smov (!%p205_p3), 112   ;;  %s1458_s30 = smov (!%p205_p3), 104   ;;  %vm592_vm7 = vcmask (!%p205_p3), 15368   ;;  %vm767_vm8 = vcmask (!%p205_p3), 23568   ;;  %vm942_vm9 = vcmask (!%p205_p3), 31768   ;;  %vm310_vm10 = vcmask (!%p205_p3), 261120  }
   0xa   : > { %s1461_s4 = smov (!%p205_p3), 88   ;;  %s1463_s5 = smov (!%p205_p3), 80   ;;  %311 = vst.msk [vmem:[#allocation2] sm:$0xff] (!%p205_p3), %vm310_vm10, %v1450_v0  ;;  %312 = vst.msk [vmem:[#allocation2 + $0x8] sm:$0xff] (!%p205_p3), %vm310_vm10, %v1450_v0  ;;  %vm667_vm11 = vcmask (!%p205_p3), 130112   ;;  %vm842_vm12 = vcmask (!%p205_p3), 195712  }
   0xb   : > { %s1464_s6 = smov (!%p205_p3), 72   ;;  %s1465_s7 = smov (!%p205_p3), 8   ;;  %vm1017_vm13 = vcmask (!%p205_p3), 261312   ;;  %vm1097_vm14 = vcmask (!%p205_p3), 257024  }
   0xc   : > { %s1466_s8 = smov (!%p205_p3), 16   ;;  %s1467_s9 = smov (!%p205_p3), 24  }
   0xe   : > { %s1813_s12 = smov (!%p258_p4, %s1440_s12), 1 }
   0xf   : > { %s1512_s16 = sshll.u32 %s1813_s12, 3  ;;  %s1258_s23 = sshll.u32 %s1813_s12, 4  ;;  %v1545_v19 = vld [vmem:[#allocation3] sm:$0xff]  ;;  %v1550_v22 = vld [vmem:[#allocation3 + $0x8] sm:$0xff] }
  0x10   : > { %s275_s19 = scalar_lea.vmem %s1805_s1, %s1512_s16  ;;  %s265_s22 = scalar_lea.vmem %s1804_s0, %s1512_s16 }
  0x11   : > { %v1518_v1 = vld [vmem:[%s275_s19] sm:$0xff]   ;;  %s288_s26 = scalar_lea.vmem %s1806_s2, %s1258_s23  ;;  %s298_s12 = scalar_lea.vmem %s1807_s3, %s1512_s16 }
  0x12   : > { %v338_v2 = vsel %vm333_vm1, %v1518_v1, 0  ;;  %v1389_v3 = vld [vmem:[%s265_s22] sm:$0xff]   ;;  %v314_v6 = vld [vmem:[%s288_s26 + $0x8] sm:$0xff] }
  0x13   : > { %1279 = vmatpush3.bf16.xpose.msra.mxu0 %v338_v2  ;;  %v313_v5 = vld [vmem:[%s288_s26] sm:$0xff]  ;;  %vm316_vm4 = vcmp.gt.f32.partialorder %v314_v6, 0.0 }
  0x14   : > { %1296 = vmatprep.subr.bf16.mxu0 %v1450_v0  ;;  %vm315_vm3 = vcmp.gt.f32.partialorder %v313_v5, 0.0  ;;  %v1537_v10 = vsel %vm316_vm4, 0.0, %v1453_v7 }
  0x15   : > { %v1535_v8 = vsel %vm315_vm3, 0.0, %v1453_v7 }
  0x1a   : > { %1281 = vmatmul.mubr.msk.bf16.vlgmr.msra.gmra.mrb[0].mxu0 %vm333_vm1, %v1389_v3 }
  0x1b   : > { %1298 = vmatprep.mubr.msk.bf16.mxu0 %vm1451_vm0, %v1450_v0 }
  0xed   : > { %v374_v9 = vpop.f32.mrb[0].mxu0 }
  0xee   : > { %v375_v11 = vadd.f32 %v374_v9, %v1535_v8  ;;  %v1282_v12 = vpop.f32.mrb[1].mxu0 }
  0xef   : > { %v377_v13 = vpop.f32.mrb[2].mxu0 }
  0xf0   : > { %v378_v14 = vadd.f32 %v377_v13, %v1537_v10  ;;  %v1283_v15 = vpop.f32.mrb[3].mxu0  ;;  %v384_v16 = vsel %vm383_vm5, %v375_v11, -inf  ;;  %v1459_v13 = vmov 1  }
  0xf1   : > { %385 = vmax.xlane.f32.xlu0 %v384_v16 }
  0xf2   : > { %v387_v17 = vsel %vm383_vm5, %v378_v14, -inf  ;;  %1370 = vset.pattern.permute.xlu0 %v1459_v13 }
  0xf5   : > { %388 = vmax.xlane.f32.xlu0 %v387_v17 }
 0x10b   : > { %444 = vrot.lane.b32.xlu0 %v1518_v1, %s1455_s27 }
 0x17e   : > { %v386_v20 = vpop.xlane.xlu0 %385 }
 0x17f   : > { %v1548_v21 = vmax.f32 %v1545_v19, %v386_v20 }
 0x181   : > { %v392_v23 = vsub.f32 %v1545_v19, %v1548_v21  ;;  %495 = vst.msk [vmem:[#allocation3] sm:$0xff] %vm426_vm6, %v1548_v21  ;;  %400 = vperm.xlu1 %1368, %v1548_v21  }
 0x182   : > { %v389_v24 = vpop.xlane.xlu0 %388 }
 0x183   : > { %v1558_v25 = vmax.f32 %v1550_v22, %v389_v24 }
 0x185   : > { %v393_v26 = vsub.f32 %v1550_v22, %v1558_v25  ;;  %496 = vst.msk [vmem:[#allocation3 + $0x8] sm:$0xff] %vm426_vm6, %v1558_v25  ;;  %405 = vperm.xlu1 %1368, %v1558_v25  }
 0x186   : > { %v445_v27 = vpop.permute.xlu0 %444 }
 0x187   : > { %1285 = vmatpush3.bf16.msra.mxu1 %v445_v27 }
 0x188   : > { %1290 = vmatprep.subr.bf16.mxu1 %v1450_v0 }
 0x189   : > { %499 = vrot.lane.b32.xlu1 %v1518_v1, %s1456_s28 }
 0x18a   : > { %1369 = vset.pattern.permute.xlu1 %v1459_v13 }
 0x18c   : > { %v1631_v16 = vld [vmem:[#allocation3 + $0x8] sm:$0xff] }
 0x18d   : > { %497 = vrot.lane.b32.xlu1 %v1389_v3, %s1456_s28 }
 0x191   : > { %674 = vrot.lane.b32.xlu1 %v1518_v1, %s1457_s29 }
 0x195   : > { %672 = vrot.lane.b32.xlu1 %v1389_v3, %s1457_s29 }
 0x199   : > { %849 = vrot.lane.b32.xlu1 %v1518_v1, %s1458_s30 }
 0x19d   : > { %847 = vrot.lane.b32.xlu1 %v1389_v3, %s1458_s30 }
 0x200   : > { %v401_v28 = vpop.permute.xlu1 %400 }
 0x201   : > { %v408_v29 = vsub.f32 %v375_v11, %v401_v28  ;;  %v1460_v28 = vmov 2  }
 0x203   : > { %v410_v30 = vmul.f32 1.442695, %v408_v29 }
 0x204   : > { %v406_v31 = vpop.permute.xlu1 %405 }
 0x205   : > { %v409_v32 = vsub.f32 %v378_v14, %v406_v31  ;;  %1390 = vpow2.f32 %v410_v30 }
 0x207   : > { %v412_v33 = vmul.f32 1.442695, %v409_v32 }
 0x208   : > { %v500_v34 = vpop.permute.xlu1 %499 }
 0x209   : > { %1392 = vpow2.f32 %v412_v33  ;;  %v505_v38 = vsel %vm333_vm1, %v500_v34, 0 }
 0x20c   : > { %v498_v35 = vpop.permute.xlu1 %497 }
 0x20f   : > { %v1569_v36 = vpop.eup %1390 }
 0x210   : > { %v675_v40 = vpop.permute.xlu1 %674 }
 0x211   : > { %v680_v42 = vsel %vm333_vm1, %v675_v40, 0 }
 0x213   : > { %v1571_v37 = vpop.eup %1392 }
 0x214   : > { %v443_v39 = vpack.c.bf16 %v1571_v37, %v1569_v36  ;;  %v673_v41 = vpop.permute.xlu1 %672 }
 0x216   : > { %1287 = vmatmul.mubr.msk.bf16.vlgmr.msra.gmra.mrb[0].mxu1 %vm383_vm5, %v443_v39 }
 0x217   : > { %1291 = vmatpush3.bf16.xpose.msra.mxu1 %v505_v38  ;;  %1292 = vmatprep.mubr.msk.bf16.mxu1 %vm1451_vm0, %v1450_v0 }
 0x218   : > { %1302 = vmatprep.subr.bf16.mxu1 %v1450_v0  ;;  %v850_v43 = vpop.permute.xlu1 %849 }
 0x219   : > { %v855_v44 = vsel %vm333_vm1, %v850_v43, 0 }
 0x21c   : > { %v848_v45 = vpop.permute.xlu1 %847 }
 0x21e   : > { %1293 = vmatmul.mubr.msk.bf16.vlgmr.msra.gmra.mrb[4].mxu1 %vm333_vm1, %v498_v35 }
 0x21f   : > { %1303 = vmatpush3.bf16.xpose.msra.mxu1 %v680_v42  ;;  %1304 = vmatprep.mubr.msk.bf16.mxu1 %vm1451_vm0, %v1450_v0 }
 0x220   : > { %1314 = vmatprep.subr.bf16.mxu1 %v1450_v0 }
 0x226   : > { %1305 = vmatmul.mubr.msk.bf16.vlgmr.msra.gmra.mrb[8].mxu1 %vm333_vm1, %v673_v41 }
 0x227   : > { %1315 = vmatpush3.bf16.xpose.msra.mxu1 %v855_v44  ;;  %1316 = vmatprep.mubr.msk.bf16.mxu1 %vm1451_vm0, %v1450_v0  ;;  %v1462_v44 = vmov 3  }
 0x22e   : > { %1317 = vmatmul.mubr.msk.bf16.vlgmr.msra.gmra.mrb[12].mxu1 %vm333_vm1, %v848_v45 }
 0x2e9   : > { %v1590_v46 = vpop.f32.mrb[0].mxu1 }
 0x2ea   : > { %v1288_v47 = vpop.f32.mrb[1].mxu1 }
 0x2eb   : > { %v1592_v48 = vpop.f32.mrb[2].mxu1 }
 0x2ec   : > { %v1289_v49 = vpop.f32.mrb[3].mxu1 }
 0x2f1   : > { %v541_v50 = vpop.f32.mrb[4].mxu1 }
 0x2f2   : > { %v1595_v51 = vadd.f32 %v541_v50, %v1535_v8  ;;  %v1294_v52 = vpop.f32.mrb[5].mxu1  ;;  %v418_v50 = vsel %vm383_vm5, %v1569_v36, 0.0  ;;  %v421_v36 = vsel %vm383_vm5, %v1571_v37, 0.0 }
 0x2f3   : > { %v544_v53 = vpop.f32.mrb[6].mxu1  ;;  %v394_v52 = vmul.f32 1.442695, %v392_v23 }
 0x2f4   : > { %v1598_v54 = vadd.f32 %v544_v53, %v1537_v10  ;;  %v1295_v55 = vpop.f32.mrb[7].mxu1  ;;  %v550_v56 = vsel %vm383_vm5, %v1595_v51, -inf }
 0x2f5   : > { %551 = vmax.xlane.f32.xlu0 %v550_v56  ;;  %1394 = vpow2.f32 %v394_v52  ;;  %v414_v52 = vld [vmem:[#allocation4] sm:$0xff] }
 0x2f6   : > { %v553_v57 = vsel %vm383_vm5, %v1598_v54, -inf }
 0x2f7   : > { %554 = vmax.xlane.f32.xlu1 %v553_v57 }
 0x2f9   : > { %v716_v58 = vpop.f32.mrb[8].mxu1 }
 0x2fa   : > { %v1605_v59 = vadd.f32 %v716_v58, %v1535_v8  ;;  %v1306_v60 = vpop.f32.mrb[9].mxu1 }
 0x2fb   : > { %v719_v61 = vpop.f32.mrb[10].mxu1 }
 0x2fc   : > { %v1608_v62 = vadd.f32 %v719_v61, %v1537_v10  ;;  %v1307_v63 = vpop.f32.mrb[11].mxu1  ;;  %v725_v2 = vsel %vm383_vm5, %v1605_v59, -inf }
 0x2fd   : > { %726 = vmax.xlane.f32.xlu0 %v725_v2 }
 0x2fe   : > { %v728_v3 = vsel %vm383_vm5, %v1608_v62, -inf }
 0x2ff   : > { %v1700_v53 = vpop.eup %1394 }
 0x301   : > { %729 = vmax.xlane.f32.xlu0 %v728_v3  ;;  %v891_v4 = vpop.f32.mrb[12].mxu1 }
 0x302   : > { %v1615_v5 = vadd.f32 %v891_v4, %v1535_v8  ;;  %v1318_v6 = vpop.f32.mrb[13].mxu1  ;;  %v1626_v8 = vld [vmem:[#allocation3] sm:$0xff] }
 0x303   : > { %v894_v7 = vpop.f32.mrb[14].mxu1 }
 0x304   : > { %v1618_v9 = vadd.f32 %v894_v7, %v1537_v10  ;;  %v1319_v11 = vpop.f32.mrb[15].mxu1  ;;  %v900_v12 = vsel %vm383_vm5, %v1615_v5, -inf }
 0x305   : > { %901 = vmax.xlane.f32.xlu1 %v900_v12 }
 0x306   : > { %v903_v14 = vsel %vm383_vm5, %v1618_v9, -inf }
 0x307   : > { %904 = vmax.xlane.f32.xlu0 %v903_v14 }
 0x382   : > { %v552_v15 = vpop.xlane.xlu0 %551 }
 0x383   : > { %v1629_v10 = vmax.f32 %v1626_v8, %v552_v15 }
 0x384   : > { %v555_v17 = vpop.xlane.xlu1 %554 }
 0x385   : > { %v558_v20 = vsub.f32 %v1626_v8, %v1629_v10  ;;  %670 = vst.msk [vmem:[#allocation3] sm:$0xff] %vm592_vm7, %v1629_v10  ;;  %v1638_v24 = vmax.f32 %v1631_v16, %v555_v17  ;;  %566 = vperm.xlu1 %1369, %v1629_v10  }
 0x387   : > { %v559_v27 = vsub.f32 %v1631_v16, %v1638_v24  ;;  %671 = vst.msk [vmem:[#allocation3 + $0x8] sm:$0xff] %vm592_vm7, %v1638_v24  ;;  %571 = vperm.xlu0 %1370, %v1638_v24   ;;  %v560_v4 = vmul.f32 1.442695, %v558_v20  ;;  %v415_v24 = vld [vmem:[#allocation4 + $0x8] sm:$0xff] }
 0x389   : > { %1371 = vset.pattern.permute.xlu1 %v1460_v28 }
 0x38a   : > { %v727_v29 = vpop.xlane.xlu0 %726 }
 0x38b   : > { %1373 = vset.pattern.permute.xlu0 %v1454_v18 }
 0x38c   : > { %v1648_v30 = vld [vmem:[#allocation3] sm:$0xff] }
 0x38d   : > { %v1651_v31 = vmax.f32 %v1648_v30, %v727_v29 }
 0x38e   : > { %v1653_v32 = vld [vmem:[#allocation3 + $0x8] sm:$0xff]  ;;  %v730_v33 = vpop.xlane.xlu0 %729 }
 0x38f   : > { %v733_v34 = vsub.f32 %v1648_v30, %v1651_v31  ;;  %845 = vst.msk [vmem:[#allocation3] sm:$0xff] %vm767_vm8, %v1651_v31  ;;  %v1660_v35 = vmax.f32 %v1653_v32, %v730_v33  ;;  %741 = vperm.xlu1 %1371, %v1651_v31  }
 0x391   : > { %v734_v38 = vsub.f32 %v1653_v32, %v1660_v35  ;;  %846 = vst.msk [vmem:[#allocation3 + $0x8] sm:$0xff] %vm767_vm8, %v1660_v35 }
 0x392   : > { %v902_v39 = vpop.xlane.xlu1 %901 }
 0x393   : > { %746 = vperm.xlu1 %1371, %v1660_v35  }
 0x394   : > { %v905_v41 = vpop.xlane.xlu0 %904 }
 0x396   : > { %v1668_v40 = vld [vmem:[#allocation3] sm:$0xff] }
 0x397   : > { %v1671_v42 = vmax.f32 %v1668_v40, %v902_v39  ;;  %610 = vrot.lane.b32.xlu1 %v1518_v1, %s1461_s4 }
 0x398   : > { %v1674_v43 = vld [vmem:[#allocation3 + $0x8] sm:$0xff]  ;;  %1372 = vset.pattern.permute.xlu1 %v1462_v44 }
 0x399   : > { %v908_v45 = vsub.f32 %v1668_v40, %v1671_v42  ;;  %1020 = vst.msk [vmem:[#allocation3] sm:$0xff] %vm942_vm9, %v1671_v42  ;;  %v1682_v47 = vmax.f32 %v1674_v43, %v905_v41 }
 0x39b   : > { %v909_v49 = vsub.f32 %v1674_v43, %v1682_v47  ;;  %1021 = vst.msk [vmem:[#allocation3 + $0x8] sm:$0xff] %vm942_vm9, %v1682_v47  ;;  %916 = vperm.xlu1 %1372, %v1671_v42  }
 0x39d   : > { %v912_v40 = vmul.f32 1.442695, %v909_v49 }
 0x39f   : > { %921 = vperm.xlu1 %1372, %v1682_v47  }
 0x3a3   : > { %785 = vrot.lane.b32.xlu1 %v1518_v1, %s1463_s5 }
 0x3a4   : > { %1374 = vset.pattern.permute.xlu1 %v1454_v18 }
 0x3a6   : > { %419 = vadd.xlane.f32.xlu0 %v418_v50 }
 0x3a7   : > { %960 = vrot.lane.b32.xlu1 %v1518_v1, %s1464_s6  ;;  %v396_v1 = vmul.f32 1.442695, %v393_v26 }
 0x3a9   : > { %1396 = vpow2.f32 %v396_v1 }
 0x3b3   : > { %v1709_v19 = vpop.eup %1396 }
 0x3bc   : > { %433 = vperm.xlu0 %1373, %v1700_v53  }
 0x3c0   : > { %1376 = vset.pattern.permute.xlu0 %v1459_v13 }
 0x3cb   : > { %422 = vadd.xlane.f32.xlu1 %v421_v36  ;;  %v416_v36 = vmul.f32 %v1700_v53, %v414_v52 }
 0x3dc   : > { %438 = vperm.xlu1 %1374, %v1709_v19  }
 0x3e0   : > { %1375 = vset.pattern.permute.xlu1 %v1459_v13 }
 0x404   : > { %v567_v21 = vpop.permute.xlu1 %566 }
 0x405   : > { %v574_v23 = vsub.f32 %v1595_v51, %v567_v21 }
 0x406   : > { %v572_v55 = vpop.permute.xlu0 %571 }
 0x407   : > { %v576_v56 = vmul.f32 1.442695, %v574_v23  ;;  %v575_v57 = vsub.f32 %v1598_v54, %v572_v55  ;;  %v429_v23 = vld [vmem:[#allocation2] sm:$0xff]  ;;  %v735_v55 = vmul.f32 1.442695, %v733_v34 }
 0x409   : > { %1398 = vpow2.f32 %v576_v56  ;;  %v578_v37 = vmul.f32 1.442695, %v575_v57 }
 0x40b   : > { %1400 = vpow2.f32 %v578_v37 }
 0x40e   : > { %v742_v58 = vpop.permute.xlu1 %741 }
 0x40f   : > { %v749_v22 = vsub.f32 %v1605_v59, %v742_v58 }
 0x411   : > { %v751_v25 = vmul.f32 1.442695, %v749_v22 }
 0x412   : > { %v747_v26 = vpop.permute.xlu1 %746 }
 0x413   : > { %v1399_v60 = vpop.eup %1398  ;;  %1402 = vpow2.f32 %v751_v25  ;;  %v750_v61 = vsub.f32 %v1608_v62, %v747_v26 }
 0x414   : > { %v584_v63 = vsel %vm383_vm5, %v1399_v60, 0.0 }
 0x415   : > { %v1401_v2 = vpop.eup %1400  ;;  %v753_v51 = vmul.f32 1.442695, %v750_v61  ;;  %585 = vadd.xlane.f32.xlu1 %v584_v63 }
 0x416   : > { %v611_v3 = vpop.permute.xlu1 %610  ;;  %v587_v54 = vsel %vm383_vm5, %v1401_v2, 0.0  ;;  %v609_v59 = vpack.c.bf16 %v1401_v2, %v1399_v60 }
 0x417   : > { %1404 = vpow2.f32 %v753_v51  ;;  %1297 = vmatpush3.bf16.msra.mxu0 %v611_v3  ;;  %588 = vadd.xlane.f32.xlu0 %v587_v54  ;;  %v910_v54 = vmul.f32 1.442695, %v908_v45 }
 0x418   : > { %1308 = vmatprep.subr.bf16.mxu0 %v1450_v0  ;;  %1406 = vpow2.f32 %v560_v4 }
 0x41a   : > { %v917_v6 = vpop.permute.xlu1 %916  ;;  %1299 = vmatmul.mubr.msk.bf16.vlgmr.msra.gmra.mrb[4].mxu0 %vm383_vm5, %v609_v59 }
 0x41b   : > { %v924_v62 = vsub.f32 %v1615_v5, %v917_v6  ;;  %1310 = vmatprep.mubr.msk.bf16.mxu0 %vm1451_vm0, %v1450_v0 }
 0x41d   : > { %v1403_v7 = vpop.eup %1402  ;;  %v926_v11 = vmul.f32 1.442695, %v924_v62 }
 0x41e   : > { %v922_v12 = vpop.permute.xlu1 %921  ;;  %v759_v14 = vsel %vm383_vm5, %v1403_v7, 0.0 }
 0x41f   : > { %1408 = vpow2.f32 %v926_v11  ;;  %v925_v8 = vsub.f32 %v1618_v9, %v922_v12  ;;  %760 = vadd.xlane.f32.xlu0 %v759_v14 }
 0x421   : > { %v1405_v15 = vpop.eup %1404  ;;  %v928_v10 = vmul.f32 1.442695, %v925_v8  ;;  %v737_v8 = vmul.f32 1.442695, %v734_v38 }
 0x422   : > { %v786_v17 = vpop.permute.xlu1 %785  ;;  %v784_v20 = vpack.c.bf16 %v1405_v15, %v1403_v7  ;;  %v1407_v5 = vpop.eup %1406  ;;  %v762_v16 = vsel %vm383_vm5, %v1405_v15, 0.0 }
 0x423   : > { %1410 = vpow2.f32 %v928_v10  ;;  %1309 = vmatpush3.bf16.msra.mxu0 %v786_v17 }
 0x424   : > { %1320 = vmatprep.subr.bf16.mxu0 %v1450_v0 }
 0x426   : > { %599 = vperm.xlu1 %1375, %v1407_v5   ;;  %1311 = vmatmul.mubr.msk.bf16.vlgmr.msra.gmra.mrb[8].mxu0 %vm383_vm5, %v784_v20  ;;  %v961_v29 = vpop.permute.xlu1 %960 }
 0x427   : > { %1321 = vmatpush3.bf16.msra.mxu0 %v961_v29  ;;  %1322 = vmatprep.mubr.msk.bf16.mxu0 %vm1451_vm0, %v1450_v0  ;;  %v562_v0 = vmul.f32 1.442695, %v559_v27  ;;  %v417_v27 = vmul.f32 %v1709_v19, %v415_v24 }
 0x429   : > { %v1409_v33 = vpop.eup %1408  ;;  %1412 = vpow2.f32 %v562_v0 }
 0x42a   : > { %v934_v9 = vsel %vm383_vm5, %v1409_v33, 0.0  ;;  %1378 = vset.pattern.permute.xlu1 %v1460_v28  ;;  %1414 = vpow2.f32 %v735_v55 }
 0x42b   : > { %935 = vadd.xlane.f32.xlu0 %v934_v9  ;;  %1416 = vpow2.f32 %v910_v54 }
 0x42c   : > { %1418 = vpow2.f32 %v737_v8 }
 0x42d   : > { %v1411_v39 = vpop.eup %1410  ;;  %1420 = vpow2.f32 %v912_v40 }
 0x42e   : > { %v937_v41 = vsel %vm383_vm5, %v1411_v39, 0.0  ;;  %v959_v50 = vpack.c.bf16 %v1411_v39, %v1409_v33 }
 0x42f   : > { %938 = vadd.xlane.f32.xlu0 %v937_v41 }
 0x430   : > { %1323 = vmatmul.mubr.msk.bf16.vlgmr.msra.gmra.mrb[12].mxu0 %vm383_vm5, %v959_v50 }
 0x433   : > { %v420_v1 = vpop.xlane.xlu0 %419  ;;  %v1413_v53 = vpop.eup %1412 }
 0x434   : > { %v424_v21 = vadd.f32 %v420_v1, %v416_v36  ;;  %v1415_v58 = vpop.eup %1414 }
 0x435   : > { %v1417_v62 = vpop.eup %1416 }
 0x436   : > { %427 = vst.msk [vmem:[#allocation4] sm:$0xff] %vm426_vm6, %v424_v21  ;;  %v1419_v15 = vpop.eup %1418 }
 0x43b   : > { %v434_v56 = vpop.permute.xlu0 %433 }
 0x43c   : > { %v441_v57 = vmul.f32 %v434_v56, %v429_v23 }
 0x43d   : > { %v580_v26 = vld [vmem:[#allocation4] sm:$0xff] }
 0x43e   : > { %v491_v37 = vadd.f32 %v1590_v46, %v441_v57  ;;  %v430_v46 = vld [vmem:[#allocation2 + $0x8] sm:$0xff]  ;;  %v582_v61 = vmul.f32 %v1407_v5, %v580_v26  ;;  %v1421_v5 = vpop.eup %1420 }
 0x440   : > { %493 = vst.msk [vmem:[#allocation2] sm:$0xff] %vm333_vm1, %v491_v37 }
 0x445   : > { %604 = vperm.xlu0 %1376, %v1413_v53  }
 0x449   : > { %1377 = vset.pattern.permute.xlu0 %v1460_v28 }
 0x44a   : > { %763 = vadd.xlane.f32.xlu1 %v762_v16  ;;  %774 = vperm.xlu0 %1377, %v1415_v58  }
 0x44e   : > { %1380 = vset.pattern.permute.xlu0 %v1462_v44 }
 0x458   : > { %v423_v30 = vpop.xlane.xlu1 %422 }
 0x459   : > { %v425_v31 = vadd.f32 %v423_v30, %v417_v27 }
 0x45b   : > { %428 = vst.msk [vmem:[#allocation4 + $0x8] sm:$0xff] %vm426_vm6, %v425_v31 }
 0x45c   : > { %v439_v34 = vpop.permute.xlu1 %438 }
 0x45d   : > { %v442_v22 = vmul.f32 %v439_v34, %v430_v46 }
 0x45f   : > { %v492_v25 = vadd.f32 %v1592_v48, %v442_v22 }
 0x461   : > { %494 = vst.msk [vmem:[#allocation2 + $0x8] sm:$0xff] %vm333_vm1, %v492_v25 }
 0x462   : > { %v581_v60 = vld [vmem:[#allocation4 + $0x8] sm:$0xff] }
 0x463   : > { %v583_v51 = vmul.f32 %v1413_v53, %v581_v60 }
 0x468   : > { %v596_v16 = vld [vmem:[#allocation2 + $0x8] sm:$0xff] }
 0x4a2   : > { %v586_v63 = vpop.xlane.xlu1 %585 }
 0x4a3   : > { %v590_v2 = vadd.f32 %v586_v63, %v582_v61 }
 0x4a4   : > { %v589_v3 = vpop.xlane.xlu0 %588 }
 0x4a5   : > { %593 = vst.msk [vmem:[#allocation4] sm:$0xff] %vm592_vm7, %v590_v2  ;;  %v591_v19 = vadd.f32 %v589_v3, %v583_v51 }
 0x4a6   : > { %v600_v42 = vpop.permute.xlu1 %599 }
 0x4a7   : > { %594 = vst.msk [vmem:[#allocation4 + $0x8] sm:$0xff] %vm592_vm7, %v591_v19 }
 0x4ac   : > { %v755_v4 = vld [vmem:[#allocation4] sm:$0xff]  ;;  %v761_v59 = vpop.xlane.xlu0 %760 }
 0x4ad   : > { %v757_v48 = vmul.f32 %v1415_v58, %v755_v4 }
 0x4ae   : > { %v756_v45 = vld [vmem:[#allocation4 + $0x8] sm:$0xff] }
 0x4af   : > { %v765_v6 = vadd.f32 %v761_v59, %v757_v48  ;;  %v758_v10 = vmul.f32 %v1419_v15, %v756_v45 }
 0x4b1   : > { %768 = vst.msk [vmem:[#allocation4] sm:$0xff] %vm767_vm8, %v765_v6 }
 0x4b8   : > { %v930_v7 = vld [vmem:[#allocation4] sm:$0xff]  ;;  %v936_v12 = vpop.xlane.xlu0 %935 }
 0x4b9   : > { %v932_v11 = vmul.f32 %v1417_v62, %v930_v7 }
 0x4bb   : > { %v940_v14 = vadd.f32 %v936_v12, %v932_v11 }
 0x4bc   : > { %v939_v9 = vpop.xlane.xlu0 %938 }
 0x4bd   : > { %943 = vst.msk [vmem:[#allocation4] sm:$0xff] %vm942_vm9, %v940_v14 }
 0x4c4   : > { %v1025_v49 = vld [vmem:[#allocation4] sm:$0xff]  ;;  %v605_v37 = vpop.permute.xlu0 %604 }
 0x4c5   : > { %1422 = vrcp.f32 %v1025_v49  ;;  %v608_v24 = vmul.f32 %v605_v37, %v596_v16 }
 0x4cf   : > { %v1423_v21 = vpop.eup %1422 }
 0x4d7   : > { %v764_v17 = vpop.xlane.xlu1 %763 }
 0x4d8   : > { %v766_v20 = vadd.f32 %v764_v17, %v758_v10 }
 0x4da   : > { %769 = vst.msk [vmem:[#allocation4 + $0x8] sm:$0xff] %vm767_vm8, %v766_v20 }
 0x4e1   : > { %v931_v29 = vld [vmem:[#allocation4 + $0x8] sm:$0xff] }
 0x4e2   : > { %v933_v33 = vmul.f32 %v1421_v5, %v931_v29 }
 0x4e4   : > { %v941_v32 = vadd.f32 %v939_v9, %v933_v33 }
 0x4e6   : > { %944 = vst.msk [vmem:[#allocation4 + $0x8] sm:$0xff] %vm942_vm9, %v941_v32 }
 0x4ed   : > { %v650_v35 = vpop.f32.mrb[4].mxu0  ;;  %v1026_v52 = vld [vmem:[#allocation4 + $0x8] sm:$0xff] }
 0x4ee   : > { %659 = vrot.lane.b32.xlu1 %v650_v35, %s1465_s7  ;;  %v1300_v38 = vpop.f32.mrb[5].mxu0  ;;  %1424 = vrcp.f32 %v1026_v52 }
 0x4ef   : > { %v653_v43 = vpop.f32.mrb[6].mxu0 }
 0x4f0   : > { %v1301_v47 = vpop.f32.mrb[7].mxu0 }
 0x4f2   : > { %661 = vrot.lane.b32.xlu1 %v653_v43, %s1465_s7 }
 0x4f6   : > { %779 = vperm.xlu1 %1378, %v1419_v15  }
 0x4f8   : > { %v1425_v56 = vpop.eup %1424 }
 0x4f9   : > { %v825_v39 = vpop.f32.mrb[8].mxu0 }
 0x4fa   : > { %834 = vrot.lane.b32.xlu1 %v825_v39, %s1466_s8  ;;  %v1312_v41 = vpop.f32.mrb[9].mxu0 }
 0x4fb   : > { %v828_v50 = vpop.f32.mrb[10].mxu0  ;;  %1379 = vset.pattern.permute.xlu1 %v1462_v44 }
 0x4fc   : > { %836 = vrot.lane.b32.xlu0 %v828_v50, %s1466_s8  ;;  %v1313_v36 = vpop.f32.mrb[11].mxu0 }
 0x4fe   : > { %949 = vperm.xlu1 %1379, %v1417_v62  }
 0x500   : > { %954 = vperm.xlu0 %1380, %v1421_v5  }
 0x502   : > { %1382 = vset.pattern.permute.xlu1 %v1454_v18 }
 0x503   : > { %v1000_v1 = vpop.f32.mrb[12].mxu0 }
 0x504   : > { %1381 = vset.pattern.permute.xlu0 %v1454_v18  ;;  %1009 = vrot.lane.b32.xlu1 %v1000_v1, %s1467_s9  ;;  %v1324_v0 = vpop.f32.mrb[13].mxu0  ;;  %v595_v18 = vld [vmem:[#allocation2] sm:$0xff] }
 0x505   : > { %1033 = vperm.xlu0 %1381, %v1423_v21   ;;  %v1003_v23 = vpop.f32.mrb[14].mxu0  ;;  %v607_v57 = vmul.f32 %v600_v42, %v595_v18 }
 0x506   : > { %v1325_v55 = vpop.f32.mrb[15].mxu0 }
 0x508   : > { %1011 = vrot.lane.b32.xlu1 %v1003_v23, %s1467_s9 }
 0x509   : > { %1384 = vset.pattern.permute.xlu0 %v1459_v13 }
 0x50a   : > { %1052 = vperm.xlu0 %1384, %v1425_v56  }
 0x50c   : > { %1038 = vperm.xlu1 %1382, %v1425_v56  }
 0x50e   : > { %1386 = vset.pattern.permute.xlu0 %v1462_v44 }
 0x50f   : > { %1076 = vperm.xlu0 %1386, %v1423_v21  }
 0x510   : > { %1383 = vset.pattern.permute.xlu1 %v1459_v13 }
 0x511   : > { %1048 = vperm.xlu1 %1383, %v1423_v21  }
 0x515   : > { %1385 = vset.pattern.permute.xlu1 %v1460_v28  ;;  %v775_v28 = vpop.permute.xlu0 %774 }
 0x516   : > { %1062 = vperm.xlu1 %1385, %v1423_v21  }
 0x51a   : > { %1066 = vperm.xlu1 %1385, %v1425_v56  }
 0x51e   : > { %1387 = vset.pattern.permute.xlu1 %v1462_v44 }
 0x51f   : > { %1080 = vperm.xlu1 %1387, %v1425_v56  }
 0x560   : > { %v660_v53 = vpop.permute.xlu1 %659 }
 0x561   : > { %v665_v58 = vadd.f32 %v660_v53, %v607_v57 }
 0x563   : > { %668 = vst.msk [vmem:[#allocation2] sm:$0xff] %vm667_vm11, %v665_v58 }
 0x564   : > { %v662_v27 = vpop.permute.xlu1 %661 }
 0x565   : > { %v666_v13 = vadd.f32 %v662_v27, %v608_v24 }
 0x567   : > { %669 = vst.msk [vmem:[#allocation2 + $0x8] sm:$0xff] %vm667_vm11, %v666_v13 }
 0x56a   : > { %v770_v46 = vld [vmem:[#allocation2] sm:$0xff] }
 0x56b   : > { %v782_v25 = vmul.f32 %v775_v28, %v770_v46 }
 0x56e   : > { %v771_v30 = vld [vmem:[#allocation2 + $0x8] sm:$0xff]  ;;  %v837_v34 = vpop.permute.xlu0 %836 }
 0x575   : > { %v780_v31 = vpop.permute.xlu1 %779 }
 0x576   : > { %v783_v44 = vmul.f32 %v780_v31, %v771_v30 }
 0x578   : > { %v841_v22 = vadd.f32 %v837_v34, %v783_v44 }
 0x579   : > { %v835_v26 = vpop.permute.xlu1 %834 }
 0x57a   : > { %844 = vst.msk [vmem:[#allocation2 + $0x8] sm:$0xff] %vm842_vm12, %v841_v22  ;;  %v840_v60 = vadd.f32 %v835_v26, %v782_v25 }
 0x57c   : > { %843 = vst.msk [vmem:[#allocation2] sm:$0xff] %vm842_vm12, %v840_v60 }
 0x57d   : > { %v950_v61 = vpop.permute.xlu1 %949 }
 0x57f   : > { %v955_v3 = vpop.permute.xlu0 %954 }
 0x581   : > { %v946_v63 = vld [vmem:[#allocation2 + $0x8] sm:$0xff]  ;;  %v1010_v2 = vpop.permute.xlu1 %1009 }
 0x582   : > { %v958_v54 = vmul.f32 %v955_v3, %v946_v63 }
 0x583   : > { %v945_v51 = vld [vmem:[#allocation2] sm:$0xff] }
 0x584   : > { %v957_v19 = vmul.f32 %v950_v61, %v945_v51  ;;  %v1034_v6 = vpop.permute.xlu0 %1033 }
 0x585   : > { %v1012_v4 = vpop.permute.xlu1 %1011 }
 0x586   : > { %v1015_v48 = vadd.f32 %v1010_v2, %v957_v19  ;;  %v1016_v59 = vadd.f32 %v1012_v4, %v958_v54 }
 0x588   : > { %1018 = vst.msk [vmem:[#allocation2] sm:$0xff] %vm1017_vm13, %v1015_v48  ;;  %1019 = vst.msk [vmem:[#allocation2 + $0x8] sm:$0xff] %vm1017_vm13, %v1016_v59 }
 0x589   : > { %v1053_v40 = vpop.permute.xlu0 %1052 }
 0x58b   : > { %v1039_v11 = vpop.permute.xlu1 %1038 }
 0x58e   : > { %v1077_v32 = vpop.permute.xlu0 %1076 }
 0x58f   : > { %v1029_v62 = vld [vmem:[#allocation2] sm:$0xff]  ;;  %v1030_v7 = vld [vmem:[#allocation2 + $0x8] sm:$0xff] }
 0x590   : > { %v1041_v12 = vmul.f32 %v1034_v6, %v1029_v62  ;;  %v1042_v14 = vmul.f32 %v1039_v11, %v1030_v7  ;;  %v1049_v8 = vpop.permute.xlu1 %1048 }
 0x592   : > { %1043 = vst.msk [vmem:[#allocation2] sm:$0xff] %vm333_vm1, %v1041_v12  ;;  %1044 = vst.msk [vmem:[#allocation2 + $0x8] sm:$0xff] %vm333_vm1, %v1042_v14 }
 0x595   : > { %v1063_v17 = vpop.permute.xlu1 %1062 }
 0x599   : > { %v1045_v42 = vld [vmem:[#allocation2] sm:$0xff]  ;;  %v1046_v45 = vld [vmem:[#allocation2 + $0x8] sm:$0xff]  ;;  %v1067_v29 = vpop.permute.xlu1 %1066 }
 0x59a   : > { %v1055_v15 = vmul.f32 %v1049_v8, %v1045_v42  ;;  %v1056_v10 = vmul.f32 %v1053_v40, %v1046_v45 }
 0x59c   : > { %1057 = vst.msk [vmem:[#allocation2] sm:$0xff] %vm667_vm11, %v1055_v15  ;;  %1058 = vst.msk [vmem:[#allocation2 + $0x8] sm:$0xff] %vm667_vm11, %v1056_v10 }
 0x59e   : > { %v1081_v43 = vpop.permute.xlu1 %1080 }
 0x5a3   : > { %v1059_v20 = vld [vmem:[#allocation2] sm:$0xff]  ;;  %v1060_v5 = vld [vmem:[#allocation2 + $0x8] sm:$0xff] }
 0x5a4   : > { %v1069_v33 = vmul.f32 %v1063_v17, %v1059_v20  ;;  %v1070_v9 = vmul.f32 %v1067_v29, %v1060_v5 }
 0x5a6   : > { %1071 = vst.msk [vmem:[#allocation2] sm:$0xff] %vm842_vm12, %v1069_v33  ;;  %1072 = vst.msk [vmem:[#allocation2 + $0x8] sm:$0xff] %vm842_vm12, %v1070_v9 }
 0x5ad   : > { %v1073_v35 = vld [vmem:[#allocation2] sm:$0xff]  ;;  %v1074_v38 = vld [vmem:[#allocation2 + $0x8] sm:$0xff] }
 0x5ae   : > { %v1083_v47 = vmul.f32 %v1077_v32, %v1073_v35  ;;  %v1084_v49 = vmul.f32 %v1081_v43, %v1074_v38 }
 0x5b0   : > { %1085 = vst.msk [vmem:[#allocation2] sm:$0xff] %vm1017_vm13, %v1083_v47  ;;  %1086 = vst.msk [vmem:[#allocation2 + $0x8] sm:$0xff] %vm1017_vm13, %v1084_v49 }
 0x5b7   : > { %v1087_v39 = vld [vmem:[#allocation2] sm:$0xff]  ;;  %v1088_v41 = vld [vmem:[#allocation2 + $0x8] sm:$0xff] }
 0x5b8   : > { %v1260_v50 = vpack.c.bf16 %v1087_v39, %v1087_v39  ;;  %v1261_v52 = vpack.c.bf16 %v1088_v41, %v1088_v41 }
 0x5ba   : > { %1098 = vst.msk [vmem:[%s298_s12] sm:$0xf] %vm1097_vm14, %v1260_v50  ;;  %1099 = vst.msk [vmem:[%s298_s12 + $0x4] sm:$0xf] %vm1097_vm14, %v1261_v52 }
 0x5bb PF: > { %s13_s14 = sadd.s32 1, %s1448_s14   ;;  %s1808_s12 = smov %s1444_s13 }
 0x5bc   : > { %p10_p5 = scmp.ge.s32.totalorder %s13_s14, 4   ;;  %s1809_s13 = smov %s1811_s15 }
 0x5be   :  { %12 = sbr.rel (!%p10_p5) target bundleno = 2 (0x2), region = 76 }

</bundles_post_ra>
